<compile_context>
chip_gen: v7x
topology: tpu7x:2x2x1
jax: 0.10.0
libtpu: 0.0.40
codegen_flags: <defaults>
</compile_context>

<pallas_src>
import math

import jax
import jax.numpy as jnp
from jax.experimental import pallas as pl
from jax.experimental.pallas import tpu as pltpu

LANE = 128


def _round_up(x, m):
    return ((x + m - 1) // m) * m


def _num_tensorcores():
    """2 batch tiles on v7x (2 TCs/chip); 1 tile on single-TC v5e/v6e."""
    try:
        d = jax.devices()[0]
        nc = getattr(d, "num_cores", None)
        if nc:
            return int(nc)
        kind = str(getattr(d, "device_kind", "")).lower()
        if "v7" in kind or "7x" in kind:
            return 2
    except Exception:
        pass
    return 1


# ----------------------------- kernel ---------------------------------------


def make_mlp_kernel(obs_size, compute_dtype):
    """Fused 3-layer MLP kernel: (TB, obs) x packed weights -> (TB, P)."""

    def mlp_kernel(x_ref, w_ref, b_ref, o_ref):
        # Fold the module's x.float() / dtype cast into the kernel.
        x = x_ref[...].astype(compute_dtype)              # (TB, obs)
        b = b_ref[...]                                    # (3, P) f32

        # Layer 1: Linear + ReLU. Indexed ref load of only the real obs rows
        # (NOT a full-block load followed by a vreg slice).
        w1 = w_ref[0, :obs_size, :]                       # (obs, P)
        h = jnp.dot(x, w1, preferred_element_type=jnp.float32)
        h = jnp.maximum(h + b[0:1, :], 0.0)

        # Layer 2: Linear + ReLU (padded hidden lanes are zero rows -> no-op).
        h = jnp.dot(h.astype(compute_dtype), w_ref[1],
                    preferred_element_type=jnp.float32)
        h = jnp.maximum(h + b[1:2, :], 0.0)

        # Output layer: Linear, lane-dense (padded to P=128 output lanes);
        # cast once at the store (bf16 output path halves the writeback).
        o = jnp.dot(h.astype(compute_dtype), w_ref[2],
                    preferred_element_type=jnp.float32)
        o_ref[...] = (o + b[2:3, :]).astype(o_ref.dtype)

    return mlp_kernel


# ----------------------------- packing / wrapper -----------------------------


def pack_simple_net(params, compute_dtype=jnp.bfloat16):
    """Pack (w1,b1),(w2,b2),(w3,b3) into one weight slab + one bias slab.

    Weight slab: (3, P, P) in compute_dtype, zero-padded (P = 128-multiple).
    Bias slab:   (3, P) in f32 (bias + ReLU happen on the f32 accumulator).
    Zero padding is mathematically transparent (padded lanes stay exactly 0
    through ReLU and the subsequent contractions).
    Pack ONCE and reuse; do not call this per forward step.
    """
    (w1, b1), (w2, b2), (w3, b3) = params
    obs, hid = w1.shape
    act = w3.shape[1]
    P = _round_up(max(obs, hid, act, 8), LANE)

    W = jnp.zeros((3, P, P), compute_dtype)
    W = W.at[0, :obs, :hid].set(w1.astype(compute_dtype))
    W = W.at[1, :hid, :hid].set(w2.astype(compute_dtype))
    W = W.at[2, :hid, :act].set(w3.astype(compute_dtype))

    Bs = jnp.zeros((3, P), jnp.float32)
    Bs = Bs.at[0, :hid].set(b1.reshape(-1).astype(jnp.float32))
    Bs = Bs.at[1, :hid].set(b2.reshape(-1).astype(jnp.float32))
    Bs = Bs.at[2, :act].set(b3.reshape(-1).astype(jnp.float32))

    meta = dict(obs_size=obs, hidden_size=hid, n_actions=act)
    return W, Bs, meta


def simple_net_forward(x, W, Bs, *, obs_size, hidden_size, n_actions,
                       out_dtype=jnp.float32, block_b=None):
    """SimpleNet forward. x: (B, obs_size) -> (B, n_actions) in out_dtype."""
    B, obs = x.shape
    assert obs == obs_size
    P = W.shape[-1]
    compute_dtype = W.dtype

    # Grid depth: one tile per TensorCore (v7x: 2, v5e/v6e: 1). Fewer, bigger
    # tiles beat MXU-row fill at this model size; working set is << VMEM.
    if block_b is None:
        n_tiles = _num_tensorcores()
        if B < 16:
            n_tiles = 1
    else:
        n_tiles = max(1, -(-B // block_b))

    if n_tiles == 1:
        TB = B                              # full-dim block, no pad needed
    else:
        TB = _round_up(-(-B // n_tiles), 8)
    Bp = n_tiles * TB
    if Bp != B:
        # TODO(synk): a masked tail tile would avoid this HBM pad copy; the
        # common case (TB divides B) never hits it.
        x = jnp.pad(x, ((0, Bp - B), (0, 0)))
    grid = (n_tiles,)

    # Advisory cost estimate on LOGICAL dims (not the 128-padded slabs).
    hid = hidden_size
    flops = 2 * B * (obs * hid + hid * hid + hid * n_actions)
    bytes_accessed = (B * obs * x.dtype.itemsize
                      + (obs * hid + hid * hid + hid * n_actions) * W.dtype.itemsize
                      + 3 * hid * Bs.dtype.itemsize
                      + B * n_actions * jnp.dtype(out_dtype).itemsize)

    def _build(single_buffer_constants):
        const_kw = {}
        if single_buffer_constants:
            # Constant index_map -> double buffering buys nothing.
            const_kw["pipeline_mode"] = pl.Buffered(1)
        return pl.pallas_call(
            make_mlp_kernel(obs_size, compute_dtype),
            out_shape=jax.ShapeDtypeStruct((Bp, P), out_dtype),
            grid=grid,
            in_specs=[
                pl.BlockSpec((TB, obs), lambda i: (i, 0)),           # x tile
                pl.BlockSpec((3, P, P), lambda i: (0, 0, 0), **const_kw),  # W
                pl.BlockSpec((3, P), lambda i: (0, 0), **const_kw),        # b
            ],
            out_specs=pl.BlockSpec((TB, P), lambda i: (i, 0)),
            compiler_params=pltpu.CompilerParams(
                dimension_semantics=("parallel",)),  # megacore / 2-TC split
            cost_estimate=pl.CostEstimate(
                flops=int(flops), transcendentals=0,
                bytes_accessed=int(bytes_accessed)),
        )

    try:
        out = _build(True)(x, W, Bs)
    except Exception:
        # Older/newer jax without Buffered(1) support for constant operands.
        out = _build(False)(x, W, Bs)

    # Slice back to logical shape. If the consumer is jitted downstream, this
    # fuses; it can also be skipped by the caller to keep the lane-dense slab.
    return out[:B, :n_actions]


# ----------------------------- init / reference ------------------------------


def init_linear(key, in_features, out_features):
    """Matches torch.nn.Linear default init (uniform +/- 1/sqrt(in))."""
    kw, kb = jax.random.split(key)
    bound = 1.0 / math.sqrt(in_features)
    # Stored as (in, out): forward is y = x @ W + b  (== PyTorch x @ W_pt.T + b).
    w = jax.random.uniform(kw, (in_features, out_features), jnp.float32, -bound, bound)
    b = jax.random.uniform(kb, (out_features,), jnp.float32, -bound, bound)
    return w, b


def init_simple_net(key, obs_size, n_actions, hidden_layers, hidden_size):
    # Specialized to hidden_layers=2 => 3 Linear layers total, as in create_net.
    assert hidden_layers == 2, "kernel is specialized to hidden_layers=2"
    k1, k2, k3 = jax.random.split(key, 3)
    return (init_linear(k1, obs_size, hidden_size),
            init_linear(k2, hidden_size, hidden_size),
            init_linear(k3, hidden_size, n_actions))


def reference_forward(x, params):
    x = x.astype(jnp.float32)
    (w1, b1), (w2, b2), (w3, b3) = params
    h = jnp.maximum(x @ w1 + b1, 0.0)
    h = jnp.maximum(h @ w2 + b2, 0.0)
    return h @ w3 + b3


# ----------------------------- main ------------------------------------------

if __name__ == "__main__":
    # SimpleNet(obs_size=16, n_actions=8, hidden_layers=2, hidden_size=32)
    obs_size, n_actions, hidden_layers, hidden_size = 16, 8, 2, 32
    batch = 512  # divides cleanly into 1 tile (v5e/v6e) or 2x256 tiles (v7x)

    key = jax.random.PRNGKey(0)
    k_params, k_x = jax.random.split(key)
    params = init_simple_net(k_params, obs_size, n_actions, hidden_layers, hidden_size)
    x = jax.random.normal(k_x, (batch, obs_size), jnp.float32)

    ref = reference_forward(x, params)

    # Pack ONCE (hot path must only contain the pallas_call).
    Wf, Bf, meta = pack_simple_net(params, compute_dtype=jnp.float32)
    Wb, Bb, meta_b = pack_simple_net(params, compute_dtype=jnp.bfloat16)

    # f32 MXU-input / f32-output path: matches PyTorch x.float() semantics.
    out_f32 = simple_net_forward(x, Wf, Bf, **meta)
    out_f32 = jax.block_until_ready(out_f32)
    assert out_f32.shape == (batch, n_actions)
    assert out_f32.dtype == jnp.float32
    assert jnp.allclose(out_f32, ref, atol=1e-4, rtol=1e-4)

    # bf16 MXU-input / bf16-output path (f32 accumulation): perf-opt variant.
    out_bf16 = simple_net_forward(x, Wb, Bb, out_dtype=jnp.bfloat16, **meta_b)
    out_bf16 = jax.block_until_ready(out_bf16)
    assert out_bf16.shape == (batch, n_actions)
    assert jnp.allclose(out_bf16.astype(jnp.float32), ref, atol=5e-2, rtol=5e-2)

    print("KERNEL_OK")
</pallas_src>

<mosaic_0001>
module attributes {stable_mosaic.version = 11 : i64} {
  func.func @mlp_kernel(%arg0: i32, %arg1: memref<512x16xf32, #tpu.memory_space<vmem>>, %arg2: memref<3x128x128xf32, #tpu.memory_space<vmem>>, %arg3: memref<3x128xf32, #tpu.memory_space<vmem>>, %arg4: memref<512x128xf32, #tpu.memory_space<vmem>>) attributes {dimension_semantics = [#tpu.dimension_semantics<parallel>], iteration_bounds = array<i64: 1>, scalar_prefetch = 0 : i64, scratch_operands = 0 : i64, tpu.core_type = #tpu.core_type<tc>, window_params = [{transform_indices = @transform_0, window_bounds = array<i64: 512, 16>}, {pipeline_mode = #tpu.pipeline_mode<synchronous>, transform_indices = @transform_1, window_bounds = array<i64: 3, 128, 128>}, {pipeline_mode = #tpu.pipeline_mode<synchronous>, transform_indices = @transform_2, window_bounds = array<i64: 3, 128>}, {transform_indices = @transform_3, window_bounds = array<i64: 512, 128>}]} {
    %c0 = arith.constant 0 : index
    %c0_0 = arith.constant 0 : index
    %0 = vector.load %arg1[%c0, %c0_0] : memref<512x16xf32, #tpu.memory_space<vmem>>, vector<512x16xf32>
    %c0_1 = arith.constant 0 : index
    %c0_2 = arith.constant 0 : index
    %1 = vector.load %arg3[%c0_1, %c0_2] : memref<3x128xf32, #tpu.memory_space<vmem>>, vector<3x128xf32>
    %c0_3 = arith.constant 0 : index
    %c0_4 = arith.constant 0 : index
    %c0_5 = arith.constant 0 : index
    %2 = vector.load %arg2[%c0_3, %c0_4, %c0_5] : memref<3x128x128xf32, #tpu.memory_space<vmem>>, vector<1x16x128xf32>
    %3 = vector.shape_cast %2 : vector<1x16x128xf32> to vector<16x128xf32>
    %cst = arith.constant dense<0.000000e+00> : vector<512x128xf32>
    %4 = tpu.matmul %0, %3, %cst {dimension_numbers = #tpu.dot_dimension_numbers<[1], [0], [0], [1], [0, 0, 1, 1], [], []>} : vector<512x16xf32>, vector<16x128xf32>, vector<512x128xf32> -> vector<512x128xf32>
    %5 = vector.extract_strided_slice %1 {offsets = [0, 0], sizes = [1, 128], strides = [1, 1]} : vector<3x128xf32> to vector<1x128xf32>
    %6 = vector.broadcast %5 : vector<1x128xf32> to vector<512x128xf32>
    %7 = arith.addf %4, %6 : vector<512x128xf32>
    %cst_6 = arith.constant 0.000000e+00 : f32
    %8 = vector.broadcast %cst_6 : f32 to vector<512x128xf32>
    %9 = arith.maximumf %7, %8 : vector<512x128xf32>
    %c1 = arith.constant 1 : index
    %c0_7 = arith.constant 0 : index
    %c0_8 = arith.constant 0 : index
    %10 = vector.load %arg2[%c1, %c0_7, %c0_8] : memref<3x128x128xf32, #tpu.memory_space<vmem>>, vector<1x128x128xf32>
    %11 = vector.shape_cast %10 : vector<1x128x128xf32> to vector<128x128xf32>
    %cst_9 = arith.constant dense<0.000000e+00> : vector<512x128xf32>
    %12 = tpu.matmul %9, %11, %cst_9 {dimension_numbers = #tpu.dot_dimension_numbers<[1], [0], [0], [1], [0, 0, 1, 1], [], []>} : vector<512x128xf32>, vector<128x128xf32>, vector<512x128xf32> -> vector<512x128xf32>
    %13 = vector.extract_strided_slice %1 {offsets = [1, 0], sizes = [1, 128], strides = [1, 1]} : vector<3x128xf32> to vector<1x128xf32>
    %14 = vector.broadcast %13 : vector<1x128xf32> to vector<512x128xf32>
    %15 = arith.addf %12, %14 : vector<512x128xf32>
    %cst_10 = arith.constant 0.000000e+00 : f32
    %16 = vector.broadcast %cst_10 : f32 to vector<512x128xf32>
    %17 = arith.maximumf %15, %16 : vector<512x128xf32>
    %c2 = arith.constant 2 : index
    %c0_11 = arith.constant 0 : index
    %c0_12 = arith.constant 0 : index
    %18 = vector.load %arg2[%c2, %c0_11, %c0_12] : memref<3x128x128xf32, #tpu.memory_space<vmem>>, vector<1x128x128xf32>
    %19 = vector.shape_cast %18 : vector<1x128x128xf32> to vector<128x128xf32>
    %cst_13 = arith.constant dense<0.000000e+00> : vector<512x128xf32>
    %20 = tpu.matmul %17, %19, %cst_13 {dimension_numbers = #tpu.dot_dimension_numbers<[1], [0], [0], [1], [0, 0, 1, 1], [], []>} : vector<512x128xf32>, vector<128x128xf32>, vector<512x128xf32> -> vector<512x128xf32>
    %21 = vector.extract_strided_slice %1 {offsets = [2, 0], sizes = [1, 128], strides = [1, 1]} : vector<3x128xf32> to vector<1x128xf32>
    %22 = vector.broadcast %21 : vector<1x128xf32> to vector<512x128xf32>
    %23 = arith.addf %20, %22 : vector<512x128xf32>
    %c0_14 = arith.constant 0 : index
    %c0_15 = arith.constant 0 : index
    %24 = vector.load %arg4[%c0_14, %c0_15] : memref<512x128xf32, #tpu.memory_space<vmem>>, vector<512x128xf32>
    tpu.vector_store %arg4[%c0_14, %c0_15], %23 {strides = array<i32>} : memref<512x128xf32, #tpu.memory_space<vmem>>, vector<512x128xf32>,
    return
  }
  func.func @transform_0(%arg0: i32) -> (i32, i32) {
    %c0_i32 = arith.constant 0 : i32
    %c0_i32_0 = arith.constant 0 : i32
    return %arg0, %c0_i32 : i32, i32
  }
  func.func @transform_1(%arg0: i32) -> (i32, i32, i32) {
    %c0_i32 = arith.constant 0 : i32
    %c0_i32_0 = arith.constant 0 : i32
    %c0_i32_1 = arith.constant 0 : i32
    %c0_i32_2 = arith.constant 0 : i32
    return %c0_i32, %c0_i32_0, %c0_i32_1 : i32, i32, i32
  }
  func.func @transform_2(%arg0: i32) -> (i32, i32) {
    %c0_i32 = arith.constant 0 : i32
    %c0_i32_0 = arith.constant 0 : i32
    %c0_i32_1 = arith.constant 0 : i32
    return %c0_i32, %c0_i32_0 : i32, i32
  }
  func.func @transform_3(%arg0: i32) -> (i32, i32) {
    %c0_i32 = arith.constant 0 : i32
    %c0_i32_0 = arith.constant 0 : i32
    return %arg0, %c0_i32 : i32, i32
  }
}

module attributes {stable_mosaic.version = 11 : i64} {
  func.func @mlp_kernel(%arg0: i32, %arg1: memref<512x16xf32, #tpu.memory_space<vmem>>, %arg2: memref<3x128x128xf32, #tpu.memory_space<vmem>>, %arg3: memref<3x128xf32, #tpu.memory_space<vmem>>, %arg4: memref<512x128xf32, #tpu.memory_space<vmem>>) attributes {dimension_semantics = [#tpu.dimension_semantics<parallel>], iteration_bounds = array<i64: 1>, scalar_prefetch = 0 : i64, scratch_operands = 0 : i64, tpu.core_type = #tpu.core_type<tc>, window_params = [{transform_indices = @transform_0, window_bounds = array<i64: 512, 16>}, {pipeline_mode = #tpu.pipeline_mode<synchronous>, transform_indices = @transform_1, window_bounds = array<i64: 3, 128, 128>}, {pipeline_mode = #tpu.pipeline_mode<synchronous>, transform_indices = @transform_2, window_bounds = array<i64: 3, 128>}, {transform_indices = @transform_3, window_bounds = array<i64: 512, 128>}]} {
    %c0 = arith.constant 0 : index
    %c0_0 = arith.constant 0 : index
    %0 = vector.load %arg1[%c0, %c0_0] : memref<512x16xf32, #tpu.memory_space<vmem>>, vector<512x16xf32>
    %c0_1 = arith.constant 0 : index
    %c0_2 = arith.constant 0 : index
    %1 = vector.load %arg3[%c0_1, %c0_2] : memref<3x128xf32, #tpu.memory_space<vmem>>, vector<3x128xf32>
    %c0_3 = arith.constant 0 : index
    %c0_4 = arith.constant 0 : index
    %c0_5 = arith.constant 0 : index
    %2 = vector.load %arg2[%c0_3, %c0_4, %c0_5] : memref<3x128x128xf32, #tpu.memory_space<vmem>>, vector<1x16x128xf32>
    %3 = vector.shape_cast %2 : vector<1x16x128xf32> to vector<16x128xf32>
    %cst = arith.constant dense<0.000000e+00> : vector<512x128xf32>
    %4 = tpu.matmul %0, %3, %cst {dimension_numbers = #tpu.dot_dimension_numbers<[1], [0], [0], [1], [0, 0, 1, 1], [], []>} : vector<512x16xf32>, vector<16x128xf32>, vector<512x128xf32> -> vector<512x128xf32>
    %5 = vector.extract_strided_slice %1 {offsets = [0, 0], sizes = [1, 128], strides = [1, 1]} : vector<3x128xf32> to vector<1x128xf32>
    %6 = vector.broadcast %5 : vector<1x128xf32> to vector<512x128xf32>
    %7 = arith.addf %4, %6 : vector<512x128xf32>
    %cst_6 = arith.constant 0.000000e+00 : f32
    %8 = vector.broadcast %cst_6 : f32 to vector<512x128xf32>
    %9 = arith.maximumf %7, %8 : vector<512x128xf32>
    %c1 = arith.constant 1 : index
    %c0_7 = arith.constant 0 : index
    %c0_8 = arith.constant 0 : index
    %10 = vector.load %arg2[%c1, %c0_7, %c0_8] : memref<3x128x128xf32, #tpu.memory_space<vmem>>, vector<1x128x128xf32>
    %11 = vector.shape_cast %10 : vector<1x128x128xf32> to vector<128x128xf32>
    %cst_9 = arith.constant dense<0.000000e+00> : vector<512x128xf32>
    %12 = tpu.matmul %9, %11, %cst_9 {dimension_numbers = #tpu.dot_dimension_numbers<[1], [0], [0], [1], [0, 0, 1, 1], [], []>} : vector<512x128xf32>, vector<128x128xf32>, vector<512x128xf32> -> vector<512x128xf32>
    %13 = vector.extract_strided_slice %1 {offsets = [1, 0], sizes = [1, 128], strides = [1, 1]} : vector<3x128xf32> to vector<1x128xf32>
    %14 = vector.broadcast %13 : vector<1x128xf32> to vector<512x128xf32>
    %15 = arith.addf %12, %14 : vector<512x128xf32>
    %cst_10 = arith.constant 0.000000e+00 : f32
    %16 = vector.broadcast %cst_10 : f32 to vector<512x128xf32>
    %17 = arith.maximumf %15, %16 : vector<512x128xf32>
    %c2 = arith.constant 2 : index
    %c0_11 = arith.constant 0 : index
    %c0_12 = arith.constant 0 : index
    %18 = vector.load %arg2[%c2, %c0_11, %c0_12] : memref<3x128x128xf32, #tpu.memory_space<vmem>>, vector<1x128x128xf32>
    %19 = vector.shape_cast %18 : vector<1x128x128xf32> to vector<128x128xf32>
    %cst_13 = arith.constant dense<0.000000e+00> : vector<512x128xf32>
    %20 = tpu.matmul %17, %19, %cst_13 {dimension_numbers = #tpu.dot_dimension_numbers<[1], [0], [0], [1], [0, 0, 1, 1], [], []>} : vector<512x128xf32>, vector<128x128xf32>, vector<512x128xf32> -> vector<512x128xf32>
    %21 = vector.extract_strided_slice %1 {offsets = [2, 0], sizes = [1, 128], strides = [1, 1]} : vector<3x128xf32> to vector<1x128xf32>
    %22 = vector.broadcast %21 : vector<1x128xf32> to vector<512x128xf32>
    %23 = arith.addf %20, %22 : vector<512x128xf32>
    %c0_14 = arith.constant 0 : index
    %c0_15 = arith.constant 0 : index
    %24 = vector.load %arg4[%c0_14, %c0_15] : memref<512x128xf32, #tpu.memory_space<vmem>>, vector<512x128xf32>
    tpu.vector_store %arg4[%c0_14, %c0_15], %23 {strides = array<i32>} : memref<512x128xf32, #tpu.memory_space<vmem>>, vector<512x128xf32>,
    return
  }
  func.func @transform_0(%arg0: i32) -> (i32, i32) {
    %c0_i32 = arith.constant 0 : i32
    %c0_i32_0 = arith.constant 0 : i32
    return %arg0, %c0_i32 : i32, i32
  }
  func.func @transform_1(%arg0: i32) -> (i32, i32, i32) {
    %c0_i32 = arith.constant 0 : i32
    %c0_i32_0 = arith.constant 0 : i32
    %c0_i32_1 = arith.constant 0 : i32
    %c0_i32_2 = arith.constant 0 : i32
    return %c0_i32, %c0_i32_0, %c0_i32_1 : i32, i32, i32
  }
  func.func @transform_2(%arg0: i32) -> (i32, i32) {
    %c0_i32 = arith.constant 0 : i32
    %c0_i32_0 = arith.constant 0 : i32
    %c0_i32_1 = arith.constant 0 : i32
    return %c0_i32, %c0_i32_0 : i32, i32
  }
  func.func @transform_3(%arg0: i32) -> (i32, i32) {
    %c0_i32 = arith.constant 0 : i32
    %c0_i32_0 = arith.constant 0 : i32
    return %arg0, %c0_i32 : i32, i32
  }
}

</mosaic_0001>

<bundles_post_ra>
// kernel: tpu_custom_call.1
= control target key start
LH: loop header
LB: loop body
LE: loop exit
PB: predicated region body
PF: predicated region fallthrough
CT: control target
= control target key end

     0   :  { %vm86_vm0 = vcmask 130048   ;;  %s3162_s0 = inlined_call_operand.vmem [shape: f32[512,16], index: 0, kind: input, shape index: {}]   ;;  %s3163_s1 = inlined_call_operand.vmem [shape: f32[3,128,128], index: 1, kind: input, shape index: {}]   ;;  %s3164_s2 = inlined_call_operand.vmem [shape: f32[3,128], index: 2, kind: input, shape index: {}]   ;;  %s3165_s3 = inlined_call_operand.hbm [shape: f32[512,128], index: 3, kind: output, shape index: {}]  }
   0x1   :  { %v80_v0 = vld [vmem:[%s3163_s1] sm:$0xff]  ;;  %v81_v1 = vld [vmem:[%s3163_s1 + $0x8] sm:$0xff]  ;;  %v17_v5 = vld [vmem:[%s3162_s0 + $0x10] sm:$0xff] }
   0x2   :  { %v15_v2 = vld [vmem:[%s3162_s0] sm:$0xff]  ;;  %v2362_v3 = vpack.c.bf16 %v81_v1, %v80_v0  ;;  %v16_v4 = vld [vmem:[%s3162_s0 + $0x8] sm:$0xff]  ;;  %v18_v6 = vld [vmem:[%s3162_s0 + $0x18] sm:$0xff] }
   0x3   :  { %2010 = vmatprep.mubr.msk.f32.mxu0 %vm86_vm0, %v15_v2  ;;  %v19_v7 = vld [vmem:[%s3162_s0 + $0x20] sm:$0xff]  ;;  %v48_v9 = vld [vmem:[%s3162_s0 + $0x108] sm:$0xff]  ;;  %v49_v11 = vld [vmem:[%s3162_s0 + $0x110] sm:$0xff] }
   0x4   :  { %2363 = vmatprep.subr.bf16.mxu0 %v2362_v3  ;;  %2430 = vmatprep.subr.bf16.mxu1 %v2362_v3  ;;  %v47_v8 = vld [vmem:[%s3162_s0 + $0x100] sm:$0xff]  ;;  %v20_v10 = vld [vmem:[%s3162_s0 + $0x28] sm:$0xff]  ;;  %v21_v12 = vld [vmem:[%s3162_s0 + $0x30] sm:$0xff] }
   0x5   :  { %2365 = vmatpush3.bf16.msra.mxu0 %v2362_v3  ;;  %2431 = vmatpush3.bf16.msra.mxu1 %v2362_v3  ;;  %v50_v13 = vld [vmem:[%s3162_s0 + $0x118] sm:$0xff]  ;;  %v51_v14 = vld [vmem:[%s3162_s0 + $0x120] sm:$0xff]  ;;  %v52_v17 = vld [vmem:[%s3162_s0 + $0x128] sm:$0xff] }
   0x6   :  { %2058 = vmatprep.mubr.msk.f32.mxu1 %vm86_vm0, %v47_v8  ;;  %v22_v15 = vld [vmem:[%s3162_s0 + $0x38] sm:$0xff]  ;;  %v23_v16 = vld [vmem:[%s3162_s0 + $0x40] sm:$0xff]  ;;  %v53_v18 = vld [vmem:[%s3162_s0 + $0x130] sm:$0xff] }
   0x7   :  { %v24_v19 = vld [vmem:[%s3162_s0 + $0x48] sm:$0xff]  ;;  %v25_v20 = vld [vmem:[%s3162_s0 + $0x50] sm:$0xff]  ;;  %v54_v21 = vld [vmem:[%s3162_s0 + $0x138] sm:$0xff] }
   0x8   :  { %2011 = vmatmul.mubr.msk.f32.vlgmr.msra.gmra.mrb[0].mxu0 %vm86_vm0, %v16_v4  ;;  %2059 = vmatmul.mubr.msk.f32.vlgmr.msra.gmra.mrb[0].mxu1 %vm86_vm0, %v48_v9  ;;  %v1748_v22 = vld [vmem:[%s3163_s1 + $0x80] sm:$0xff]  ;;  %v1749_v23 = vld [vmem:[%s3163_s1 + $0x88] sm:$0xff]  ;;  %v1750_v24 = vld [vmem:[%s3163_s1 + $0x90] sm:$0xff] }
   0x9   :  { %2013 = vmatprep.mubr.msk.f32.mxu0 %vm86_vm0, %v17_v5  ;;  %2061 = vmatprep.mubr.msk.f32.mxu1 %vm86_vm0, %v49_v11  ;;  %v55_v25 = vld [vmem:[%s3162_s0 + $0x140] sm:$0xff]  ;;  %v2366_v26 = vpack.c.bf16 %v1749_v23, %v1748_v22  ;;  %v1751_v27 = vld [vmem:[%s3163_s1 + $0x98] sm:$0xff]  ;;  %v1753_v31 = vld [vmem:[%s3163_s1 + $0xa8] sm:$0xff] }
   0xa   :  { %v26_v28 = vld [vmem:[%s3162_s0 + $0x58] sm:$0xff]  ;;  %v2370_v29 = vpack.c.bf16 %v1751_v27, %v1750_v24  ;;  %v1752_v30 = vld [vmem:[%s3163_s1 + $0xa0] sm:$0xff]  ;;  %v56_v33 = vld [vmem:[%s3162_s0 + $0x148] sm:$0xff] }
   0xb   :  { %v27_v32 = vld [vmem:[%s3162_s0 + $0x60] sm:$0xff]  ;;  %2367 = vmatprep.subr.bf16.mxu1 %v2366_v26  ;;  %v57_v34 = vld [vmem:[%s3162_s0 + $0x150] sm:$0xff]  ;;  %v2374_v35 = vpack.c.bf16 %v1753_v31, %v1752_v30 }
   0xc   :  { %2014 = vmatmul.mubr.msk.f32.gmra.mrb[2].mxu0 %vm86_vm0, %v18_v6  ;;  %2062 = vmatmul.mubr.msk.f32.gmra.mrb[2].mxu1 %vm86_vm0, %v50_v13 }
   0xd   :  { %2016 = vmatprep.mubr.msk.f32.mxu0 %vm86_vm0, %v19_v7  ;;  %2064 = vmatprep.mubr.msk.f32.mxu1 %vm86_vm0, %v51_v14 }
   0xe   :  { %2369 = vmatpush3.bf16.msra.mxu1 %v2366_v26 }
   0xf   :  { %2371 = vmatprep.subr.bf16.mxu1 %v2370_v29 }
  0x10   :  { %2017 = vmatmul.mubr.msk.f32.gmra.mrb[4].mxu0 %vm86_vm0, %v20_v10  ;;  %2065 = vmatmul.mubr.msk.f32.gmra.mrb[4].mxu1 %vm86_vm0, %v52_v17 }
  0x11   :  { %2019 = vmatprep.mubr.msk.f32.mxu0 %vm86_vm0, %v21_v12  ;;  %2067 = vmatprep.mubr.msk.f32.mxu1 %vm86_vm0, %v53_v18 }
  0x14   :  { %2020 = vmatmul.mubr.msk.f32.gmra.mrb[6].mxu0 %vm86_vm0, %v22_v15  ;;  %2068 = vmatmul.mubr.msk.f32.gmra.mrb[6].mxu1 %vm86_vm0, %v54_v21 }
  0x15   :  { %2022 = vmatprep.mubr.msk.f32.mxu0 %vm86_vm0, %v23_v16  ;;  %2070 = vmatprep.mubr.msk.f32.mxu1 %vm86_vm0, %v55_v25 }
  0x18   :  { %2023 = vmatmul.mubr.msk.f32.gmra.mrb[8].mxu0 %vm86_vm0, %v24_v19 }
  0x19   :  { %2025 = vmatprep.mubr.msk.f32.mxu0 %vm86_vm0, %v25_v20 }
  0x1c   :  { %2026 = vmatmul.mubr.msk.f32.gmra.mrb[10].mxu0 %vm86_vm0, %v26_v28 }
  0x1d   :  { %8 = vsyncpa [#allocation3], 0  ;;  %2028 = vmatprep.mubr.msk.f32.mxu0 %vm86_vm0, %v27_v32  ;;  %v28_v36 = vld [vmem:[%s3162_s0 + $0x68] sm:$0xff]  ;;  %v1754_v37 = vld [vmem:[%s3163_s1 + $0xb0] sm:$0xff]  ;;  %2071 = vmatmul.mubr.msk.f32.gmra.mrb[8].mxu1 %vm86_vm0, %v56_v33  ;;  %v82_v27 = vlaneseq }
  0x1e   :  { %v1755_v38 = vld [vmem:[%s3163_s1 + $0xb8] sm:$0xff]  ;;  %v29_v39 = vld [vmem:[%s3162_s0 + $0x70] sm:$0xff]  ;;  %2073 = vmatprep.mubr.msk.f32.mxu1 %vm86_vm0, %v57_v34  ;;  %2373 = vmatpush3.bf16.msra.mxu1 %v2370_v29  ;;  %v59_v41 = vld [vmem:[%s3162_s0 + $0x160] sm:$0xff] }
  0x1f   :  { %v58_v40 = vld [vmem:[%s3162_s0 + $0x158] sm:$0xff]  ;;  %2375 = vmatprep.subr.bf16.mxu1 %v2374_v35  ;;  %v2378_v42 = vpack.c.bf16 %v1755_v38, %v1754_v37  ;;  %v1756_v44 = vld [vmem:[%s3163_s1 + $0xc0] sm:$0xff]  ;;  %v1757_v45 = vld [vmem:[%s3163_s1 + $0xc8] sm:$0xff]  ;;  %v2793_v28 = vshrl.u32 %v82_v27, 7 }
  0x20   :  { %2029 = vmatmul.mubr.msk.f32.gmra.mrb[12].mxu0 %vm86_vm0, %v28_v36  ;;  %v30_v43 = vld [vmem:[%s3162_s0 + $0x78] sm:$0xff]  ;;  %v31_v46 = vld [vmem:[%s3162_s0 + $0x80] sm:$0xff]  ;;  %v60_v47 = vld [vmem:[%s3162_s0 + $0x168] sm:$0xff]  ;;  %v2382_v49 = vpack.c.bf16 %v1757_v45, %v1756_v44 }
  0x21   :  { %2031 = vmatprep.mubr.msk.f32.mxu0 %vm86_vm0, %v29_v39  ;;  %2074 = vmatmul.mubr.msk.f32.gmra.mrb[10].mxu1 %vm86_vm0, %v58_v40  ;;  %v61_v48 = vld [vmem:[%s3162_s0 + $0x170] sm:$0xff]  ;;  %v32_v50 = vld [vmem:[%s3162_s0 + $0x88] sm:$0xff]  ;;  %v1759_v52 = vld [vmem:[%s3163_s1 + $0xd8] sm:$0xff]  ;;  %v84_v29 = vsub.s32 0, %v2793_v28 }
  0x22   :  { %2076 = vmatprep.mubr.msk.f32.mxu1 %vm86_vm0, %v59_v41  ;;  %2377 = vmatpush3.bf16.msra.mxu1 %v2374_v35  ;;  %v1758_v51 = vld [vmem:[%s3163_s1 + $0xd0] sm:$0xff]  ;;  %v62_v54 = vld [vmem:[%s3162_s0 + $0x178] sm:$0xff]  ;;  %v63_v55 = vld [vmem:[%s3162_s0 + $0x180] sm:$0xff] }
  0x23   :  { %2379 = vmatprep.subr.bf16.mxu1 %v2378_v42  ;;  %v33_v53 = vld [vmem:[%s3162_s0 + $0x90] sm:$0xff]  ;;  %v2386_v56 = vpack.c.bf16 %v1759_v52, %v1758_v51  ;;  %v34_v57 = vld [vmem:[%s3162_s0 + $0x98] sm:$0xff]  ;;  %v1760_v58 = vld [vmem:[%s3163_s1 + $0xe0] sm:$0xff] }
  0x24   :  { %2032 = vmatmul.mubr.msk.f32.gmra.mrb[14].mxu0 %vm86_vm0, %v30_v43  ;;  %v1761_v59 = vld [vmem:[%s3163_s1 + $0xe8] sm:$0xff]  ;;  %v35_v60 = vld [vmem:[%s3162_s0 + $0xa0] sm:$0xff]  ;;  %v65_v62 = vld [vmem:[%s3162_s0 + $0x190] sm:$0xff] }
  0x25   :  { %2034 = vmatprep.mubr.msk.f32.mxu0 %vm86_vm0, %v31_v46  ;;  %2077 = vmatmul.mubr.msk.f32.gmra.mrb[12].mxu1 %vm86_vm0, %v60_v47  ;;  %v64_v61 = vld [vmem:[%s3162_s0 + $0x188] sm:$0xff]  ;;  %v2390_v63 = vpack.c.bf16 %v1761_v59, %v1760_v58  ;;  %v1762_v1 = vld [vmem:[%s3163_s1 + $0xf0] sm:$0xff]  ;;  %v1763_v2 = vld [vmem:[%s3163_s1 + $0xf8] sm:$0xff] }
  0x26   :  { %2079 = vmatprep.mubr.msk.f32.mxu1 %vm86_vm0, %v61_v48  ;;  %2381 = vmatpush3.bf16.msra.mxu1 %v2378_v42  ;;  %v36_v0 = vld [vmem:[%s3162_s0 + $0xa8] sm:$0xff]  ;;  %v37_v3 = vld [vmem:[%s3162_s0 + $0xb0] sm:$0xff]  ;;  %v66_v4 = vld [vmem:[%s3162_s0 + $0x198] sm:$0xff]  ;;  %v2394_v6 = vpack.c.bf16 %v1763_v2, %v1762_v1 }
  0x27   :  { %2383 = vmatprep.subr.bf16.mxu1 %v2382_v49  ;;  %v67_v5 = vld [vmem:[%s3162_s0 + $0x1a0] sm:$0xff]  ;;  %v38_v7 = vld [vmem:[%s3162_s0 + $0xb8] sm:$0xff]  ;;  %v68_v9 = vld [vmem:[%s3162_s0 + $0x1a8] sm:$0xff] }
  0x28   :  { %2035 = vmatmul.mubr.msk.f32.gmra.mrb[16].mxu0 %vm86_vm0, %v32_v50  ;;  %v39_v8 = vld [vmem:[%s3162_s0 + $0xc0] sm:$0xff]  ;;  %v69_v10 = vld [vmem:[%s3162_s0 + $0x1b0] sm:$0xff]  ;;  %v40_v11 = vld [vmem:[%s3162_s0 + $0xc8] sm:$0xff] }
  0x29   :  { %2037 = vmatprep.mubr.msk.f32.mxu0 %vm86_vm0, %v33_v53  ;;  %2080 = vmatmul.mubr.msk.f32.gmra.mrb[14].mxu1 %vm86_vm0, %v62_v54  ;;  %v41_v12 = vld [vmem:[%s3162_s0 + $0xd0] sm:$0xff]  ;;  %v70_v13 = vld [vmem:[%s3162_s0 + $0x1b8] sm:$0xff]  ;;  %v71_v14 = vld [vmem:[%s3162_s0 + $0x1c0] sm:$0xff] }
  0x2a   :  { %2082 = vmatprep.mubr.msk.f32.mxu1 %vm86_vm0, %v63_v55  ;;  %2385 = vmatpush3.bf16.msra.mxu1 %v2382_v49  ;;  %v42_v15 = vld [vmem:[%s3162_s0 + $0xd8] sm:$0xff]  ;;  %v43_v16 = vld [vmem:[%s3162_s0 + $0xe0] sm:$0xff]  ;;  %v72_v17 = vld [vmem:[%s3162_s0 + $0x1c8] sm:$0xff] }
  0x2b   :  { %2387 = vmatprep.subr.bf16.mxu1 %v2386_v56  ;;  %v73_v18 = vld [vmem:[%s3162_s0 + $0x1d0] sm:$0xff]  ;;  %v44_v19 = vld [vmem:[%s3162_s0 + $0xe8] sm:$0xff]  ;;  %v74_v21 = vld [vmem:[%s3162_s0 + $0x1d8] sm:$0xff] }
  0x2c   :  { %2038 = vmatmul.mubr.msk.f32.gmra.mrb[18].mxu0 %vm86_vm0, %v34_v57  ;;  %v45_v20 = vld [vmem:[%s3162_s0 + $0xf0] sm:$0xff]  ;;  %v75_v22 = vld [vmem:[%s3162_s0 + $0x1e0] sm:$0xff]  ;;  %v46_v23 = vld [vmem:[%s3162_s0 + $0xf8] sm:$0xff] }
  0x2d   :  { %2040 = vmatprep.mubr.msk.f32.mxu0 %vm86_vm0, %v35_v60  ;;  %2083 = vmatmul.mubr.msk.f32.gmra.mrb[16].mxu1 %vm86_vm0, %v64_v61  ;;  %v76_v24 = vld [vmem:[%s3162_s0 + $0x1e8] sm:$0xff]  ;;  %v77_v25 = vld [vmem:[%s3162_s0 + $0x1f0] sm:$0xff]  ;;  %v78_v26 = vld [vmem:[%s3162_s0 + $0x1f8] sm:$0xff] }
  0x2e   :  { %2085 = vmatprep.mubr.msk.f32.mxu1 %vm86_vm0, %v65_v62  ;;  %2389 = vmatpush3.bf16.msra.mxu1 %v2386_v56  ;;  %v2799_v30 = vld [vmem:[%s3164_s2] sm:$0x7]  ;;  %v1765_v37 = vld [vmem:[%s3163_s1 + $0x108] sm:$0xff]  ;;  %v1766_v38 = vld [vmem:[%s3163_s1 + $0x110] sm:$0xff] }
  0x2f   :  { %2391 = vmatprep.subr.bf16.mxu1 %v2390_v63  ;;  %v2802_v31 = vrot.slane %v2799_v30, %v84_v29  ;;  %v1764_v36 = vld [vmem:[%s3163_s1 + $0x100] sm:$0xff]  ;;  %v1767_v42 = vld [vmem:[%s3163_s1 + $0x118] sm:$0xff]  ;;  %v1769_v48 = vld [vmem:[%s3163_s1 + $0x128] sm:$0xff] }
  0x30   :  { %2041 = vmatmul.mubr.msk.f32.gmra.mrb[20].mxu0 %vm86_vm0, %v36_v0  ;;  %v2398_v41 = vpack.c.bf16 %v1765_v37, %v1764_v36  ;;  %v2402_v46 = vpack.c.bf16 %v1767_v42, %v1766_v38  ;;  %v1768_v47 = vld [vmem:[%s3163_s1 + $0x120] sm:$0xff]  ;;  %v1770_v58 = vld [vmem:[%s3163_s1 + $0x130] sm:$0xff]  ;;  %v1771_v59 = vld [vmem:[%s3163_s1 + $0x138] sm:$0xff] }
  0x31   :  { %2043 = vmatprep.mubr.msk.f32.mxu0 %vm86_vm0, %v37_v3  ;;  %2086 = vmatmul.mubr.msk.f32.gmra.mrb[18].mxu1 %vm86_vm0, %v66_v4  ;;  %v2406_v54 = vpack.c.bf16 %v1769_v48, %v1768_v47  ;;  %v2410_v1 = vpack.c.bf16 %v1771_v59, %v1770_v58  ;;  %v1776_v27 = vld [vmem:[%s3163_s1 + $0x160] sm:$0xff]  ;;  %v1777_v29 = vld [vmem:[%s3163_s1 + $0x168] sm:$0xff]  ;;  %v1779_v42 = vld [vmem:[%s3163_s1 + $0x178] sm:$0xff] }
  0x32   :  { %2088 = vmatprep.mubr.msk.f32.mxu1 %vm86_vm0, %v67_v5  ;;  %2393 = vmatpush3.bf16.msra.mxu1 %v2390_v63  ;;  %v1772_v5 = vld [vmem:[%s3163_s1 + $0x140] sm:$0xff]  ;;  %v2422_v37 = vpack.c.bf16 %v1777_v29, %v1776_v27 }
  0x33   :  { %2395 = vmatprep.subr.bf16.mxu1 %v2394_v6  ;;  %2399 = vmatprep.subr.bf16.mxu0 %v2398_v41 }
  0x34   :  { %2044 = vmatmul.mubr.msk.f32.gmra.mrb[22].mxu0 %vm86_vm0, %v38_v7 }
  0x35   :  { %2046 = vmatprep.mubr.msk.f32.mxu0 %vm86_vm0, %v39_v8  ;;  %2089 = vmatmul.mubr.msk.f32.gmra.mrb[20].mxu1 %vm86_vm0, %v68_v9 }
  0x36   :  { %2091 = vmatprep.mubr.msk.f32.mxu1 %vm86_vm0, %v69_v10  ;;  %2397 = vmatpush3.bf16.msra.mxu1 %v2394_v6  ;;  %v1773_v6 = vld [vmem:[%s3163_s1 + $0x148] sm:$0xff] }
  0x37   :  { %2401 = vmatpush3.bf16.msra.mxu0 %v2398_v41  ;;  %v1778_v41 = vld [vmem:[%s3163_s1 + $0x170] sm:$0xff] }
  0x38   :  { %2047 = vmatmul.mubr.msk.f32.gmra.mrb[24].mxu0 %vm86_vm0, %v40_v11  ;;  %2403 = vmatprep.subr.bf16.mxu0 %v2402_v46  ;;  %v2426_v48 = vpack.c.bf16 %v1779_v42, %v1778_v41 }
  0x39   :  { %2049 = vmatprep.mubr.msk.f32.mxu0 %vm86_vm0, %v41_v12  ;;  %2092 = vmatmul.mubr.msk.f32.gmra.mrb[22].mxu1 %vm86_vm0, %v70_v13  ;;  %v2414_v12 = vpack.c.bf16 %v1773_v6, %v1772_v5 }
  0x3a   :  { %2094 = vmatprep.mubr.msk.f32.mxu1 %vm86_vm0, %v71_v14 }
  0x3b   :  { %2405 = vmatpush3.bf16.msra.mxu0 %v2402_v46 }
  0x3c   :  { %2050 = vmatmul.mubr.msk.f32.gmra.mrb[26].mxu0 %vm86_vm0, %v42_v15  ;;  %2407 = vmatprep.subr.bf16.mxu0 %v2406_v54 }
  0x3d   :  { %2052 = vmatprep.mubr.msk.f32.mxu0 %vm86_vm0, %v43_v16  ;;  %2095 = vmatmul.mubr.msk.f32.gmra.mrb[24].mxu1 %vm86_vm0, %v72_v17  ;;  %v1774_v16 = vld [vmem:[%s3163_s1 + $0x150] sm:$0xff]  ;;  %v1775_v17 = vld [vmem:[%s3163_s1 + $0x158] sm:$0xff] }
  0x3e   :  { %2097 = vmatprep.mubr.msk.f32.mxu1 %vm86_vm0, %v73_v18 }
  0x3f   :  { %2409 = vmatpush3.bf16.msra.mxu0 %v2406_v54 }
  0x40   :  { %2053 = vmatmul.mubr.msk.f32.gmra.mrb[28].mxu0 %vm86_vm0, %v44_v19  ;;  %2411 = vmatprep.subr.bf16.mxu0 %v2410_v1 }
  0x41   :  { %2055 = vmatprep.mubr.msk.f32.mxu0 %vm86_vm0, %v45_v20  ;;  %2098 = vmatmul.mubr.msk.f32.gmra.mrb[26].mxu1 %vm86_vm0, %v74_v21 }
  0x42   :  { %2100 = vmatprep.mubr.msk.f32.mxu1 %vm86_vm0, %v75_v22 }
  0x43   :  { %2413 = vmatpush3.bf16.msra.mxu0 %v2410_v1 }
  0x44   :  { %2056 = vmatmul.mubr.msk.f32.gmra.mrb[30].mxu0 %vm86_vm0, %v46_v23  ;;  %2415 = vmatprep.subr.bf16.mxu0 %v2414_v12  ;;  %v2418_v23 = vpack.c.bf16 %v1775_v17, %v1774_v16 }
  0x45   :  { %2101 = vmatmul.mubr.msk.f32.gmra.mrb[28].mxu1 %vm86_vm0, %v76_v24 }
  0x46   :  { %2103 = vmatprep.mubr.msk.f32.mxu1 %vm86_vm0, %v77_v25 }
  0x47   :  { %2417 = vmatpush3.bf16.msra.mxu0 %v2414_v12 }
  0x48   :  { %2419 = vmatprep.subr.bf16.mxu0 %v2418_v23 }
  0x49   :  { %2104 = vmatmul.mubr.msk.f32.gmra.mrb[30].mxu1 %vm86_vm0, %v78_v26 }
  0x4b   :  { %2421 = vmatpush3.bf16.msra.mxu0 %v2418_v23 }
  0x4c   :  { %2423 = vmatprep.subr.bf16.mxu0 %v2422_v37 }
  0x4f   :  { %2425 = vmatpush3.bf16.msra.mxu0 %v2422_v37 }
  0x50   :  { %2427 = vmatprep.subr.bf16.mxu0 %v2426_v48 }
  0x53   :  { %2429 = vmatpush3.bf16.msra.mxu0 %v2426_v48 }
  0xdb   :  { %v2012_v32 = vpop.f32.mrb[0].mxu0  ;;  %v2826_v50 = vpop.f32.mrb[0].mxu1 }
  0xdc   :  { %v351_v33 = vadd.f32 %v2012_v32, %v2802_v31  ;;  %v345_v34 = vpop.f32.mrb[1].mxu0  ;;  %v2828_v51 = vpop.f32.mrb[1].mxu1 }
  0xdd   :  { %v346_v35 = vadd.f32 %v345_v34, %v2802_v31 }
  0xde   :  { %v665_v43 = vmax.f32 %v351_v33, 0.0 }
  0xdf   :  { %v664_v39 = vmax.f32 %v346_v35, 0.0  ;;  %v2015_v40 = vpop.f32.mrb[2].mxu0  ;;  %v2838_v61 = vpop.f32.mrb[2].mxu1 }
  0xe0   :  { %v361_v44 = vadd.f32 %v2015_v40, %v2802_v31  ;;  %v355_v45 = vpop.f32.mrb[3].mxu0  ;;  %v2840_v62 = vpop.f32.mrb[3].mxu1 }
  0xe1   :  { %v356_v49 = vadd.f32 %v355_v45, %v2802_v31  ;;  %2138 = vmatprep.mubr.f32.mxu1 %v664_v39 }
  0xe2   :  { %2139 = vmatmul.mubr.f32.vlgmr.msra.gmra.mrb[32].mxu1 %v665_v43  ;;  %v667_v55 = vmax.f32 %v361_v44, 0.0 }
  0xe3   :  { %v666_v52 = vmax.f32 %v356_v49, 0.0  ;;  %v2018_v53 = vpop.f32.mrb[4].mxu0  ;;  %v2850_v8 = vpop.f32.mrb[4].mxu1 }
  0xe4   :  { %v371_v56 = vadd.f32 %v2018_v53, %v2802_v31  ;;  %v365_v57 = vpop.f32.mrb[5].mxu0  ;;  %v2852_v9 = vpop.f32.mrb[5].mxu1 }
  0xe5   :  { %v366_v60 = vadd.f32 %v365_v57, %v2802_v31  ;;  %2141 = vmatprep.mubr.f32.mxu1 %v666_v52 }
  0xe6   :  { %2142 = vmatmul.mubr.f32.gmra.mrb[34].mxu1 %v667_v55  ;;  %v669_v2 = vmax.f32 %v371_v56, 0.0 }
  0xe7   :  { %v668_v63 = vmax.f32 %v366_v60, 0.0  ;;  %v2021_v0 = vpop.f32.mrb[6].mxu0  ;;  %v2862_v19 = vpop.f32.mrb[6].mxu1 }
  0xe8   :  { %v381_v3 = vadd.f32 %v2021_v0, %v2802_v31  ;;  %v375_v4 = vpop.f32.mrb[7].mxu0  ;;  %v2864_v20 = vpop.f32.mrb[7].mxu1 }
  0xe9   :  { %v376_v7 = vadd.f32 %v375_v4, %v2802_v31  ;;  %2144 = vmatprep.mubr.f32.mxu1 %v668_v63 }
  0xea   :  { %2145 = vmatmul.mubr.f32.gmra.mrb[36].mxu1 %v669_v2  ;;  %v671_v13 = vmax.f32 %v381_v3, 0.0 }
  0xeb   :  { %v670_v10 = vmax.f32 %v376_v7, 0.0  ;;  %v2024_v11 = vpop.f32.mrb[8].mxu0 }
  0xec   :  { %v391_v14 = vadd.f32 %v2024_v11, %v2802_v31  ;;  %v385_v15 = vpop.f32.mrb[9].mxu0 }
  0xed   :  { %v386_v18 = vadd.f32 %v385_v15, %v2802_v31  ;;  %2147 = vmatprep.mubr.f32.mxu1 %v670_v10 }
  0xee   :  { %2148 = vmatmul.mubr.f32.gmra.mrb[38].mxu1 %v671_v13  ;;  %v673_v24 = vmax.f32 %v391_v14, 0.0 }
  0xef   :  { %v672_v21 = vmax.f32 %v386_v18, 0.0  ;;  %v2027_v22 = vpop.f32.mrb[10].mxu0 }
  0xf0   :  { %v401_v25 = vadd.f32 %v2027_v22, %v2802_v31  ;;  %v395_v26 = vpop.f32.mrb[11].mxu0  ;;  %v2874_v33 = vpop.f32.mrb[8].mxu1 }
  0xf1   :  { %v396_v32 = vadd.f32 %v395_v26, %v2802_v31  ;;  %2150 = vmatprep.mubr.f32.mxu1 %v672_v21  ;;  %v2876_v34 = vpop.f32.mrb[9].mxu1 }
  0xf2   :  { %2151 = vmatmul.mubr.f32.gmra.mrb[40].mxu1 %v673_v24  ;;  %v675_v38 = vmax.f32 %v401_v25, 0.0 }
  0xf3   :  { %v674_v35 = vmax.f32 %v396_v32, 0.0  ;;  %v2030_v36 = vpop.f32.mrb[12].mxu0 }
  0xf4   :  { %v411_v39 = vadd.f32 %v2030_v36, %v2802_v31  ;;  %v405_v40 = vpop.f32.mrb[13].mxu0  ;;  %v2886_v44 = vpop.f32.mrb[10].mxu1 }
  0xf5   :  { %v406_v43 = vadd.f32 %v405_v40, %v2802_v31  ;;  %2153 = vmatprep.mubr.f32.mxu1 %v674_v35  ;;  %v2888_v45 = vpop.f32.mrb[11].mxu1 }
  0xf6   :  { %2154 = vmatmul.mubr.f32.gmra.mrb[42].mxu1 %v675_v38  ;;  %v677_v49 = vmax.f32 %v411_v39, 0.0 }
  0xf7   :  { %v676_v46 = vmax.f32 %v406_v43, 0.0  ;;  %v2033_v47 = vpop.f32.mrb[14].mxu0 }
  0xf8   :  { %v421_v52 = vadd.f32 %v2033_v47, %v2802_v31  ;;  %v415_v53 = vpop.f32.mrb[15].mxu0  ;;  %v2892_v55 = vpop.f32.mrb[12].mxu1 }
  0xf9   :  { %v416_v54 = vadd.f32 %v415_v53, %v2802_v31  ;;  %2156 = vmatprep.mubr.f32.mxu1 %v676_v46  ;;  %v2894_v56 = vpop.f32.mrb[13].mxu1 }
  0xfa   :  { %2157 = vmatmul.mubr.f32.gmra.mrb[44].mxu1 %v677_v49  ;;  %v679_v59 = vmax.f32 %v421_v52, 0.0 }
  0xfb   :  { %v678_v57 = vmax.f32 %v416_v54, 0.0  ;;  %v2036_v58 = vpop.f32.mrb[16].mxu0 }
  0xfc   :  { %v431_v60 = vadd.f32 %v2036_v58, %v2802_v31  ;;  %v425_v63 = vpop.f32.mrb[17].mxu0  ;;  %v2898_v1 = vpop.f32.mrb[14].mxu1 }
  0xfd   :  { %v426_v0 = vadd.f32 %v425_v63, %v2802_v31  ;;  %2159 = vmatprep.mubr.f32.mxu1 %v678_v57  ;;  %v2900_v2 = vpop.f32.mrb[15].mxu1 }
  0xfe   :  { %2160 = vmatmul.mubr.f32.gmra.mrb[46].mxu1 %v679_v59  ;;  %v681_v5 = vmax.f32 %v431_v60, 0.0 }
  0xff   :  { %v680_v3 = vmax.f32 %v426_v0, 0.0  ;;  %v2039_v4 = vpop.f32.mrb[18].mxu0 }
 0x100   :  { %v441_v6 = vadd.f32 %v2039_v4, %v2802_v31  ;;  %v435_v7 = vpop.f32.mrb[19].mxu0  ;;  %v2904_v11 = vpop.f32.mrb[16].mxu1 }
 0x101   :  { %v436_v10 = vadd.f32 %v435_v7, %v2802_v31  ;;  %2162 = vmatprep.mubr.f32.mxu1 %v680_v3  ;;  %v2906_v12 = vpop.f32.mrb[17].mxu1 }
 0x102   :  { %2163 = vmatmul.mubr.f32.gmra.mrb[48].mxu1 %v681_v5  ;;  %v683_v15 = vmax.f32 %v441_v6, 0.0 }
 0x103   :  { %v682_v13 = vmax.f32 %v436_v10, 0.0  ;;  %v2042_v14 = vpop.f32.mrb[20].mxu0  ;;  %v506_v10 = vadd.f32 %v2828_v51, %v2802_v31  ;;  %v511_v51 = vadd.f32 %v2826_v50, %v2802_v31  ;;  %v536_v50 = vadd.f32 %v2864_v20, %v2802_v31 }
 0x104   :  { %v451_v16 = vadd.f32 %v2042_v14, %v2802_v31  ;;  %v445_v17 = vpop.f32.mrb[21].mxu0  ;;  %v2910_v21 = vpop.f32.mrb[18].mxu1  ;;  %v556_v20 = vadd.f32 %v2888_v45, %v2802_v31  ;;  %v576_v45 = vadd.f32 %v2900_v2, %v2802_v31 }
 0x105   :  { %v446_v18 = vadd.f32 %v445_v17, %v2802_v31  ;;  %2165 = vmatprep.mubr.f32.mxu1 %v682_v13  ;;  %v2912_v22 = vpop.f32.mrb[19].mxu1 }
 0x106   :  { %2166 = vmatmul.mubr.f32.gmra.mrb[50].mxu1 %v683_v15  ;;  %v685_v25 = vmax.f32 %v451_v16, 0.0  ;;  %v596_v2 = vadd.f32 %v2912_v22, %v2802_v31 }
 0x107   :  { %v684_v23 = vmax.f32 %v446_v18, 0.0  ;;  %v2045_v24 = vpop.f32.mrb[22].mxu0 }
 0x108   :  { %v461_v26 = vadd.f32 %v2045_v24, %v2802_v31  ;;  %v455_v27 = vpop.f32.mrb[23].mxu0  ;;  %v2916_v32 = vpop.f32.mrb[20].mxu1  ;;  %v696_v24 = vmax.f32 %v506_v10, 0.0 }
 0x109   :  { %v456_v29 = vadd.f32 %v455_v27, %v2802_v31  ;;  %2168 = vmatprep.mubr.f32.mxu1 %v684_v23  ;;  %v2918_v35 = vpop.f32.mrb[21].mxu1 }
 0x10a   :  { %2169 = vmatmul.mubr.f32.gmra.mrb[52].mxu1 %v685_v25  ;;  %v687_v38 = vmax.f32 %v461_v26, 0.0  ;;  %v516_v25 = vadd.f32 %v2840_v62, %v2802_v31 }
 0x10b   :  { %v686_v36 = vmax.f32 %v456_v29, 0.0  ;;  %v2048_v37 = vpop.f32.mrb[24].mxu0 }
 0x10c   :  { %v471_v39 = vadd.f32 %v2048_v37, %v2802_v31  ;;  %v465_v40 = vpop.f32.mrb[25].mxu0  ;;  %v2922_v42 = vpop.f32.mrb[22].mxu1  ;;  %v526_v37 = vadd.f32 %v2852_v9, %v2802_v31  ;;  %v546_v9 = vadd.f32 %v2876_v34, %v2802_v31  ;;  %v566_v34 = vadd.f32 %v2894_v56, %v2802_v31 }
 0x10d   :  { %v466_v41 = vadd.f32 %v465_v40, %v2802_v31  ;;  %2171 = vmatprep.mubr.f32.mxu1 %v686_v36  ;;  %v2924_v43 = vpop.f32.mrb[23].mxu1  ;;  %v698_v36 = vmax.f32 %v516_v25, 0.0  ;;  %v586_v56 = vadd.f32 %v2906_v12, %v2802_v31  ;;  %v606_v12 = vadd.f32 %v2918_v35, %v2802_v31 }
 0x10e   :  { %2172 = vmatmul.mubr.f32.gmra.mrb[54].mxu1 %v687_v38  ;;  %v689_v48 = vmax.f32 %v471_v39, 0.0  ;;  %v697_v38 = vmax.f32 %v511_v51, 0.0  ;;  %v521_v39 = vadd.f32 %v2838_v61, %v2802_v31  ;;  %v700_v62 = vmax.f32 %v526_v37, 0.0 }
 0x10f   :  { %v688_v46 = vmax.f32 %v466_v41, 0.0  ;;  %v2051_v47 = vpop.f32.mrb[26].mxu0  ;;  %v531_v41 = vadd.f32 %v2850_v8, %v2802_v31  ;;  %v541_v61 = vadd.f32 %v2862_v19, %v2802_v31  ;;  %v551_v8 = vadd.f32 %v2874_v33, %v2802_v31 }
 0x110   :  { %v481_v49 = vadd.f32 %v2051_v47, %v2802_v31  ;;  %v475_v52 = vpop.f32.mrb[27].mxu0  ;;  %v2928_v54 = vpop.f32.mrb[24].mxu1  ;;  %v699_v40 = vmax.f32 %v521_v39, 0.0  ;;  %v561_v19 = vadd.f32 %v2886_v44, %v2802_v31  ;;  %v571_v33 = vadd.f32 %v2892_v55, %v2802_v31 }
 0x111   :  { %v476_v53 = vadd.f32 %v475_v52, %v2802_v31  ;;  %2174 = vmatprep.mubr.f32.mxu1 %v688_v46  ;;  %v2930_v57 = vpop.f32.mrb[25].mxu1  ;;  %v702_v46 = vmax.f32 %v536_v50, 0.0  ;;  %v701_v47 = vmax.f32 %v531_v41, 0.0  ;;  %v706_v52 = vmax.f32 %v556_v20, 0.0 }
 0x112   :  { %2175 = vmatmul.mubr.f32.gmra.mrb[56].mxu1 %v689_v48  ;;  %v691_v60 = vmax.f32 %v481_v49, 0.0  ;;  %v704_v48 = vmax.f32 %v546_v9, 0.0  ;;  %v703_v49 = vmax.f32 %v541_v61, 0.0  ;;  %v581_v44 = vadd.f32 %v2898_v1, %v2802_v31 }
 0x113   :  { %v690_v58 = vmax.f32 %v476_v53, 0.0  ;;  %v2054_v59 = vpop.f32.mrb[28].mxu0  ;;  %v705_v53 = vmax.f32 %v551_v8, 0.0  ;;  %v591_v55 = vadd.f32 %v2904_v11, %v2802_v31  ;;  %v601_v1 = vadd.f32 %v2910_v21, %v2802_v31 }
 0x114   :  { %v491_v63 = vadd.f32 %v2054_v59, %v2802_v31  ;;  %v485_v0 = vpop.f32.mrb[29].mxu0  ;;  %v2934_v4 = vpop.f32.mrb[26].mxu1  ;;  %v707_v59 = vmax.f32 %v561_v19, 0.0  ;;  %v716_v10 = vmax.f32 %v606_v12, 0.0  ;;  %v616_v22 = vadd.f32 %v2924_v43, %v2802_v31 }
 0x115   :  { %v486_v3 = vadd.f32 %v485_v0, %v2802_v31  ;;  %2177 = vmatprep.mubr.f32.mxu1 %v690_v58  ;;  %v2936_v5 = vpop.f32.mrb[27].mxu1  ;;  %v708_v58 = vmax.f32 %v566_v34, 0.0  ;;  %v712_v0 = vmax.f32 %v586_v56, 0.0  ;;  %v611_v11 = vadd.f32 %v2916_v32, %v2802_v31 }
 0x116   :  { %2178 = vmatmul.mubr.f32.gmra.mrb[58].mxu1 %v691_v60  ;;  %v693_v13 = vmax.f32 %v491_v63, 0.0  ;;  %v710_v60 = vmax.f32 %v576_v45, 0.0  ;;  %v709_v63 = vmax.f32 %v571_v33, 0.0  ;;  %v626_v35 = vadd.f32 %v2930_v57, %v2802_v31 }
 0x117   :  { %v692_v6 = vmax.f32 %v486_v3, 0.0  ;;  %v2057_v7 = vpop.f32.mrb[30].mxu0  ;;  %v711_v3 = vmax.f32 %v581_v44, 0.0  ;;  %v621_v21 = vadd.f32 %v2922_v42, %v2802_v31  ;;  %v636_v43 = vadd.f32 %v2936_v5, %v2802_v31 }
 0x118   :  { %v501_v14 = vadd.f32 %v2057_v7, %v2802_v31  ;;  %v495_v15 = vpop.f32.mrb[31].mxu0  ;;  %v2942_v17 = vpop.f32.mrb[28].mxu1  ;;  %v713_v7 = vmax.f32 %v591_v55, 0.0  ;;  %v631_v32 = vadd.f32 %v2928_v54, %v2802_v31  ;;  %v641_v42 = vadd.f32 %v2934_v4, %v2802_v31 }
 0x119   :  { %v496_v16 = vadd.f32 %v495_v15, %v2802_v31  ;;  %2180 = vmatprep.mubr.f32.mxu1 %v692_v6  ;;  %v2944_v18 = vpop.f32.mrb[29].mxu1  ;;  %v714_v6 = vmax.f32 %v596_v2, 0.0  ;;  %v717_v15 = vmax.f32 %v611_v11, 0.0  ;;  %v651_v54 = vadd.f32 %v2942_v17, %v2802_v31 }
 0x11a   :  { %2181 = vmatmul.mubr.f32.gmra.mrb[60].mxu1 %v693_v13  ;;  %v695_v26 = vmax.f32 %v501_v14, 0.0  ;;  %v715_v13 = vmax.f32 %v601_v1, 0.0  ;;  %v718_v14 = vmax.f32 %v616_v22, 0.0  ;;  %v646_v57 = vadd.f32 %v2944_v18, %v2802_v31 }
 0x11b   :  { %v694_v23 = vmax.f32 %v496_v16, 0.0  ;;  %v720_v16 = vmax.f32 %v626_v35, 0.0  ;;  %v721_v25 = vmax.f32 %v631_v32, 0.0  ;;  %v723_v51 = vmax.f32 %v641_v42, 0.0 }
 0x11c   :  { %v2950_v27 = vpop.f32.mrb[30].mxu1  ;;  %v725_v37 = vmax.f32 %v651_v54, 0.0 }
 0x11d   :  { %2183 = vmatprep.mubr.f32.mxu1 %v694_v23  ;;  %v2952_v29 = vpop.f32.mrb[31].mxu1  ;;  %v719_v23 = vmax.f32 %v621_v21, 0.0  ;;  %v661_v18 = vadd.f32 %v2950_v27, %v2802_v31 }
 0x11e   :  { %2184 = vmatmul.mubr.f32.gmra.mrb[62].mxu1 %v695_v26  ;;  %v724_v26 = vmax.f32 %v646_v57, 0.0  ;;  %v656_v5 = vadd.f32 %v2952_v29, %v2802_v31 }
 0x11f   :  { %2186 = vmatprep.mubr.f32.mxu1 %v696_v24  ;;  %v722_v24 = vmax.f32 %v636_v43, 0.0  ;;  %v727_v4 = vmax.f32 %v661_v18, 0.0 }
 0x122   :  { %2187 = vmatmul.mubr.f32.gmra.mrb[64].mxu1 %v697_v38  ;;  %v747_v38 = vsub.s32 1, %v2793_v28 }
 0x123   :  { %2189 = vmatprep.mubr.f32.mxu1 %v698_v36  ;;  %v726_v36 = vmax.f32 %v656_v5, 0.0 }
 0x124   :  { %v3014_v39 = vrot.slane %v2799_v30, %v747_v38 }
 0x126   :  { %2190 = vmatmul.mubr.f32.gmra.mrb[66].mxu1 %v699_v40 }
 0x127   :  { %2192 = vmatprep.mubr.f32.mxu1 %v700_v62 }
 0x12a   :  { %2193 = vmatmul.mubr.f32.gmra.mrb[68].mxu1 %v701_v47 }
 0x12b   :  { %2195 = vmatprep.mubr.f32.mxu1 %v702_v46 }
 0x12e   :  { %2196 = vmatmul.mubr.f32.gmra.mrb[70].mxu1 %v703_v49 }
 0x12f   :  { %2198 = vmatprep.mubr.f32.mxu1 %v704_v48 }
 0x132   :  { %2199 = vmatmul.mubr.f32.gmra.mrb[72].mxu1 %v705_v53 }
 0x133   :  { %2201 = vmatprep.mubr.f32.mxu1 %v706_v52 }
 0x136   :  { %2202 = vmatmul.mubr.f32.gmra.mrb[74].mxu1 %v707_v59 }
 0x137   :  { %2204 = vmatprep.mubr.f32.mxu1 %v708_v58 }
 0x13a   :  { %2205 = vmatmul.mubr.f32.gmra.mrb[76].mxu1 %v709_v63 }
 0x13b   :  { %2207 = vmatprep.mubr.f32.mxu1 %v710_v60 }
 0x13e   :  { %2208 = vmatmul.mubr.f32.gmra.mrb[78].mxu1 %v711_v3 }
 0x13f   :  { %2210 = vmatprep.mubr.f32.mxu1 %v712_v0 }
 0x142   :  { %2211 = vmatmul.mubr.f32.gmra.mrb[80].mxu1 %v713_v7 }
 0x143   :  { %2213 = vmatprep.mubr.f32.mxu1 %v714_v6 }
 0x146   :  { %2214 = vmatmul.mubr.f32.gmra.mrb[82].mxu1 %v715_v13 }
 0x147   :  { %2216 = vmatprep.mubr.f32.mxu1 %v716_v10 }
 0x14a   :  { %2217 = vmatmul.mubr.f32.gmra.mrb[84].mxu1 %v717_v15 }
 0x14b   :  { %2219 = vmatprep.mubr.f32.mxu1 %v718_v14 }
 0x14e   :  { %2220 = vmatmul.mubr.f32.gmra.mrb[86].mxu1 %v719_v23 }
 0x14f   :  { %2222 = vmatprep.mubr.f32.mxu1 %v720_v16 }
 0x152   :  { %2223 = vmatmul.mubr.f32.gmra.mrb[88].mxu1 %v721_v25 }
 0x153   :  { %2225 = vmatprep.mubr.f32.mxu1 %v722_v24 }
 0x156   :  { %2226 = vmatmul.mubr.f32.gmra.mrb[90].mxu1 %v723_v51 }
 0x157   :  { %2228 = vmatprep.mubr.f32.mxu1 %v724_v26 }
 0x15a   :  { %2229 = vmatmul.mubr.f32.gmra.mrb[92].mxu1 %v725_v37 }
 0x15b   :  { %2231 = vmatprep.mubr.f32.mxu1 %v726_v36 }
 0x15e   :  { %2232 = vmatmul.mubr.f32.gmra.mrb[94].mxu1 %v727_v4 }
 0x1b5   :  { %v2140_v29 = vpop.f32.mrb[32].mxu1 }
 0x1b6   :  { %v821_v62 = vadd.f32 %v2140_v29, %v3014_v39  ;;  %v815_v17 = vpop.f32.mrb[33].mxu1 }
 0x1b7   :  { %v816_v50 = vadd.f32 %v815_v17, %v3014_v39 }
 0x1b8   :  { %v1135_v46 = vmax.f32 %v821_v62, 0.0 }
 0x1b9   :  { %v1134_v40 = vmax.f32 %v816_v50, 0.0  ;;  %v2143_v41 = vpop.f32.mrb[34].mxu1 }
 0x1ba   :  { %v831_v31 = vadd.f32 %v2143_v41, %v3014_v39  ;;  %v825_v27 = vpop.f32.mrb[35].mxu1 }
 0x1bb   :  { %v826_v9 = vadd.f32 %v825_v27, %v3014_v39  ;;  %2266 = vmatprep.mubr.f32.mxu0 %v1134_v40 }
 0x1bc   :  { %2267 = vmatmul.mubr.f32.vlgmr.msra.gmra.mrb[32].mxu0 %v1135_v46  ;;  %v1137_v30 = vmax.f32 %v831_v31, 0.0 }
 0x1bd   :  { %v1136_v47 = vmax.f32 %v826_v9, 0.0  ;;  %v2146_v61 = vpop.f32.mrb[36].mxu1 }
 0x1be   :  { %v841_v48 = vadd.f32 %v2146_v61, %v3014_v39  ;;  %v835_v20 = vpop.f32.mrb[37].mxu1 }
 0x1bf   :  { %v836_v49 = vadd.f32 %v835_v20, %v3014_v39  ;;  %2269 = vmatprep.mubr.f32.mxu0 %v1136_v47 }
 0x1c0   :  { %2270 = vmatmul.mubr.f32.gmra.mrb[34].mxu0 %v1137_v30  ;;  %v1139_v34 = vmax.f32 %v841_v48, 0.0 }
 0x1c1   :  { %v1138_v8 = vmax.f32 %v836_v49, 0.0  ;;  %v2149_v52 = vpop.f32.mrb[38].mxu1 }
 0x1c2   :  { %v851_v53 = vadd.f32 %v2149_v52, %v3014_v39  ;;  %v845_v19 = vpop.f32.mrb[39].mxu1 }
 0x1c3   :  { %v846_v58 = vadd.f32 %v845_v19, %v3014_v39  ;;  %2272 = vmatprep.mubr.f32.mxu0 %v1138_v8 }
 0x1c4   :  { %2273 = vmatmul.mubr.f32.gmra.mrb[36].mxu0 %v1139_v34  ;;  %v1141_v33 = vmax.f32 %v851_v53, 0.0 }
 0x1c5   :  { %v1140_v45 = vmax.f32 %v846_v58, 0.0  ;;  %v2152_v59 = vpop.f32.mrb[40].mxu1 }
 0x1c6   :  { %v861_v60 = vadd.f32 %v2152_v59, %v3014_v39  ;;  %v855_v56 = vpop.f32.mrb[41].mxu1 }
 0x1c7   :  { %v856_v63 = vadd.f32 %v855_v56, %v3014_v39  ;;  %2275 = vmatprep.mubr.f32.mxu0 %v1140_v45 }
 0x1c8   :  { %2276 = vmatmul.mubr.f32.gmra.mrb[38].mxu0 %v1141_v33  ;;  %v1143_v2 = vmax.f32 %v861_v60, 0.0 }
 0x1c9   :  { %v1142_v44 = vmax.f32 %v856_v63, 0.0  ;;  %v2155_v0 = vpop.f32.mrb[42].mxu1 }
 0x1ca   :  { %v871_v3 = vadd.f32 %v2155_v0, %v3014_v39  ;;  %v865_v55 = vpop.f32.mrb[43].mxu1 }
 0x1cb   :  { %v866_v6 = vadd.f32 %v865_v55, %v3014_v39  ;;  %2278 = vmatprep.mubr.f32.mxu0 %v1142_v44 }
 0x1cc   :  { %2279 = vmatmul.mubr.f32.gmra.mrb[40].mxu0 %v1143_v2  ;;  %v1145_v1 = vmax.f32 %v871_v3, 0.0 }
 0x1cd   :  { %v1144_v12 = vmax.f32 %v866_v6, 0.0  ;;  %v2158_v7 = vpop.f32.mrb[44].mxu1 }
 0x1ce   :  { %v881_v10 = vadd.f32 %v2158_v7, %v3014_v39  ;;  %v875_v22 = vpop.f32.mrb[45].mxu1 }
 0x1cf   :  { %v876_v13 = vadd.f32 %v875_v22, %v3014_v39  ;;  %2281 = vmatprep.mubr.f32.mxu0 %v1144_v12 }
 0x1d0   :  { %2282 = vmatmul.mubr.f32.gmra.mrb[42].mxu0 %v1145_v1  ;;  %v1147_v35 = vmax.f32 %v881_v10, 0.0 }
 0x1d1   :  { %v1146_v11 = vmax.f32 %v876_v13, 0.0  ;;  %v2161_v14 = vpop.f32.mrb[46].mxu1 }
 0x1d2   :  { %v891_v15 = vadd.f32 %v2161_v14, %v3014_v39  ;;  %v885_v21 = vpop.f32.mrb[47].mxu1 }
 0x1d3   :  { %v886_v16 = vadd.f32 %v885_v21, %v3014_v39  ;;  %2284 = vmatprep.mubr.f32.mxu0 %v1146_v11 }
 0x1d4   :  { %2285 = vmatmul.mubr.f32.gmra.mrb[44].mxu0 %v1147_v35  ;;  %v1149_v32 = vmax.f32 %v891_v15, 0.0 }
 0x1d5   :  { %v1148_v43 = vmax.f32 %v886_v16, 0.0  ;;  %v2164_v23 = vpop.f32.mrb[48].mxu1 }
 0x1d6   :  { %v901_v24 = vadd.f32 %v2164_v23, %v3014_v39  ;;  %v895_v57 = vpop.f32.mrb[49].mxu1 }
 0x1d7   :  { %v896_v25 = vadd.f32 %v895_v57, %v3014_v39  ;;  %2287 = vmatprep.mubr.f32.mxu0 %v1148_v43 }
 0x1d8   :  { %2288 = vmatmul.mubr.f32.gmra.mrb[46].mxu0 %v1149_v32  ;;  %v1151_v5 = vmax.f32 %v901_v24, 0.0 }
 0x1d9   :  { %v1150_v42 = vmax.f32 %v896_v25, 0.0  ;;  %v2167_v26 = vpop.f32.mrb[50].mxu1 }
 0x1da   :  { %v911_v51 = vadd.f32 %v2167_v26, %v3014_v39  ;;  %v905_v54 = vpop.f32.mrb[51].mxu1 }
 0x1db   :  { %v906_v36 = vadd.f32 %v905_v54, %v3014_v39  ;;  %2290 = vmatprep.mubr.f32.mxu0 %v1150_v42 }
 0x1dc   :  { %2291 = vmatmul.mubr.f32.gmra.mrb[48].mxu0 %v1151_v5  ;;  %v1153_v4 = vmax.f32 %v911_v51, 0.0 }
 0x1dd   :  { %v1152_v37 = vmax.f32 %v906_v36, 0.0  ;;  %v2170_v18 = vpop.f32.mrb[52].mxu1 }
 0x1de   :  { %v921_v38 = vadd.f32 %v2170_v18, %v3014_v39  ;;  %v915_v29 = vpop.f32.mrb[53].mxu1 }
 0x1df   :  { %v916_v62 = vadd.f32 %v915_v29, %v3014_v39  ;;  %2293 = vmatprep.mubr.f32.mxu0 %v1152_v37 }
 0x1e0   :  { %2294 = vmatmul.mubr.f32.gmra.mrb[50].mxu0 %v1153_v4  ;;  %v1155_v40 = vmax.f32 %v921_v38, 0.0 }
 0x1e1   :  { %v1154_v17 = vmax.f32 %v916_v62, 0.0  ;;  %v2173_v50 = vpop.f32.mrb[54].mxu1 }
 0x1e2   :  { %v931_v41 = vadd.f32 %v2173_v50, %v3014_v39  ;;  %v925_v46 = vpop.f32.mrb[55].mxu1 }
 0x1e3   :  { %v926_v31 = vadd.f32 %v925_v46, %v3014_v39  ;;  %2296 = vmatprep.mubr.f32.mxu0 %v1154_v17 }
 0x1e4   :  { %2297 = vmatmul.mubr.f32.gmra.mrb[52].mxu0 %v1155_v40  ;;  %v1157_v47 = vmax.f32 %v931_v41, 0.0 }
 0x1e5   :  { %v1156_v27 = vmax.f32 %v926_v31, 0.0  ;;  %v2176_v9 = vpop.f32.mrb[56].mxu1 }
 0x1e6   :  { %v941_v61 = vadd.f32 %v2176_v9, %v3014_v39  ;;  %v935_v30 = vpop.f32.mrb[57].mxu1 }
 0x1e7   :  { %v936_v48 = vadd.f32 %v935_v30, %v3014_v39  ;;  %2299 = vmatprep.mubr.f32.mxu0 %v1156_v27 }
 0x1e8   :  { %2300 = vmatmul.mubr.f32.gmra.mrb[54].mxu0 %v1157_v47  ;;  %v1159_v8 = vmax.f32 %v941_v61, 0.0 }
 0x1e9   :  { %v1158_v20 = vmax.f32 %v936_v48, 0.0  ;;  %v2179_v49 = vpop.f32.mrb[58].mxu1 }
 0x1ea   :  { %v951_v52 = vadd.f32 %v2179_v49, %v3014_v39  ;;  %v945_v34 = vpop.f32.mrb[59].mxu1 }
 0x1eb   :  { %v946_v53 = vadd.f32 %v945_v34, %v3014_v39  ;;  %2302 = vmatprep.mubr.f32.mxu0 %v1158_v20 }
 0x1ec   :  { %2303 = vmatmul.mubr.f32.gmra.mrb[56].mxu0 %v1159_v8  ;;  %v1161_v45 = vmax.f32 %v951_v52, 0.0 }
 0x1ed   :  { %v1160_v19 = vmax.f32 %v946_v53, 0.0  ;;  %v2182_v58 = vpop.f32.mrb[60].mxu1 }
 0x1ee   :  { %v961_v59 = vadd.f32 %v2182_v58, %v3014_v39  ;;  %v955_v33 = vpop.f32.mrb[61].mxu1 }
 0x1ef   :  { %v956_v60 = vadd.f32 %v955_v33, %v3014_v39  ;;  %2305 = vmatprep.mubr.f32.mxu0 %v1160_v19 }
 0x1f0   :  { %2306 = vmatmul.mubr.f32.gmra.mrb[58].mxu0 %v1161_v45  ;;  %v1163_v44 = vmax.f32 %v961_v59, 0.0 }
 0x1f1   :  { %v1162_v56 = vmax.f32 %v956_v60, 0.0  ;;  %v2185_v63 = vpop.f32.mrb[62].mxu1 }
 0x1f2   :  { %v971_v0 = vadd.f32 %v2185_v63, %v3014_v39  ;;  %v965_v2 = vpop.f32.mrb[63].mxu1 }
 0x1f3   :  { %v966_v3 = vadd.f32 %v965_v2, %v3014_v39  ;;  %2308 = vmatprep.mubr.f32.mxu0 %v1162_v56 }
 0x1f4   :  { %2309 = vmatmul.mubr.f32.gmra.mrb[60].mxu0 %v1163_v44  ;;  %v1165_v12 = vmax.f32 %v971_v0, 0.0 }
 0x1f5   :  { %v1164_v55 = vmax.f32 %v966_v3, 0.0  ;;  %v2188_v6 = vpop.f32.mrb[64].mxu1 }
 0x1f6   :  { %v981_v7 = vadd.f32 %v2188_v6, %v3014_v39  ;;  %v975_v1 = vpop.f32.mrb[65].mxu1 }
 0x1f7   :  { %v976_v10 = vadd.f32 %v975_v1, %v3014_v39  ;;  %2311 = vmatprep.mubr.f32.mxu0 %v1164_v55 }
 0x1f8   :  { %2312 = vmatmul.mubr.f32.gmra.mrb[62].mxu0 %v1165_v12  ;;  %v1167_v11 = vmax.f32 %v981_v7, 0.0 }
 0x1f9   :  { %v1166_v22 = vmax.f32 %v976_v10, 0.0  ;;  %v2191_v13 = vpop.f32.mrb[66].mxu1 }
 0x1fa   :  { %v991_v14 = vadd.f32 %v2191_v13, %v3014_v39  ;;  %v985_v35 = vpop.f32.mrb[67].mxu1 }
 0x1fb   :  { %v986_v15 = vadd.f32 %v985_v35, %v3014_v39  ;;  %2314 = vmatprep.mubr.f32.mxu0 %v1166_v22 }
 0x1fc   :  { %2315 = vmatmul.mubr.f32.gmra.mrb[64].mxu0 %v1167_v11  ;;  %v1169_v43 = vmax.f32 %v991_v14, 0.0 }
 0x1fd   :  { %v1168_v21 = vmax.f32 %v986_v15, 0.0  ;;  %v2194_v16 = vpop.f32.mrb[68].mxu1 }
 0x1fe   :  { %v1001_v23 = vadd.f32 %v2194_v16, %v3014_v39  ;;  %v995_v32 = vpop.f32.mrb[69].mxu1 }
 0x1ff   :  { %v996_v24 = vadd.f32 %v995_v32, %v3014_v39  ;;  %2317 = vmatprep.mubr.f32.mxu0 %v1168_v21 }
 0x200   :  { %2318 = vmatmul.mubr.f32.gmra.mrb[66].mxu0 %v1169_v43  ;;  %v1171_v42 = vmax.f32 %v1001_v23, 0.0 }
 0x201   :  { %v1170_v57 = vmax.f32 %v996_v24, 0.0  ;;  %v2197_v25 = vpop.f32.mrb[70].mxu1 }
 0x202   :  { %v1011_v26 = vadd.f32 %v2197_v25, %v3014_v39  ;;  %v1005_v5 = vpop.f32.mrb[71].mxu1 }
 0x203   :  { %v1006_v51 = vadd.f32 %v1005_v5, %v3014_v39  ;;  %2320 = vmatprep.mubr.f32.mxu0 %v1170_v57 }
 0x204   :  { %2321 = vmatmul.mubr.f32.gmra.mrb[68].mxu0 %v1171_v42  ;;  %v1173_v37 = vmax.f32 %v1011_v26, 0.0 }
 0x205   :  { %v1172_v54 = vmax.f32 %v1006_v51, 0.0  ;;  %v2200_v36 = vpop.f32.mrb[72].mxu1 }
 0x206   :  { %v1021_v18 = vadd.f32 %v2200_v36, %v3014_v39  ;;  %v1015_v4 = vpop.f32.mrb[73].mxu1 }
 0x207   :  { %v1016_v38 = vadd.f32 %v1015_v4, %v3014_v39  ;;  %2323 = vmatprep.mubr.f32.mxu0 %v1172_v54 }
 0x208   :  { %2324 = vmatmul.mubr.f32.gmra.mrb[70].mxu0 %v1173_v37  ;;  %v1175_v17 = vmax.f32 %v1021_v18, 0.0 }
 0x209   :  { %v1174_v29 = vmax.f32 %v1016_v38, 0.0  ;;  %v2203_v62 = vpop.f32.mrb[74].mxu1 }
 0x20a   :  { %v1031_v50 = vadd.f32 %v2203_v62, %v3014_v39  ;;  %v1025_v40 = vpop.f32.mrb[75].mxu1 }
 0x20b   :  { %v1026_v41 = vadd.f32 %v1025_v40, %v3014_v39  ;;  %2326 = vmatprep.mubr.f32.mxu0 %v1174_v29 }
 0x20c   :  { %2327 = vmatmul.mubr.f32.gmra.mrb[72].mxu0 %v1175_v17  ;;  %v1177_v27 = vmax.f32 %v1031_v50, 0.0 }
 0x20d   :  { %v1176_v46 = vmax.f32 %v1026_v41, 0.0  ;;  %v2206_v31 = vpop.f32.mrb[76].mxu1 }
 0x20e   :  { %v1041_v9 = vadd.f32 %v2206_v31, %v3014_v39  ;;  %v1035_v47 = vpop.f32.mrb[77].mxu1  ;;  %v2435_v31 = vld [vmem:[%s3164_s2] sm:$0x7]  ;;  %s2460_s2 = smov [#allocation2]  }
 0x20f   :  { %v1036_v61 = vadd.f32 %v1035_v47, %v3014_v39  ;;  %2329 = vmatprep.mubr.f32.mxu0 %v1176_v46  ;;  %v1217_v46 = vsub.s32 2, %v2793_v28  ;;  %s1673_s20 = sshll.u32 %s2460_s2, 4  ;;  %s1674_s20 = int_to_ptr.vmem [resolvable:$true] %s1673_s20 }
 0x210   :  { %2330 = vmatmul.mubr.f32.gmra.mrb[74].mxu0 %v1177_v27  ;;  %v1179_v20 = vmax.f32 %v1041_v9, 0.0  ;;  %s2436_s21 = scalar_lea.vmem %s1674_s20, 8192  ;;  %p2441_p1 = scmp.lt.s32.totalorder %s1674_s20, %s1674_s20 }
 0x211   :  { %v1178_v30 = vmax.f32 %v1036_v61, 0.0  ;;  %v2209_v48 = vpop.f32.mrb[78].mxu1  ;;  %v3084_v27 = vrot.slane %v2435_v31, %v1217_v46  ;;  %p2437_p0 = scmp.ne.s32.totalorder %s1674_s20, %s2436_s21  ;;  %p2442_p2 = scmp.lt.s32.totalorder %s2436_s21, %s2436_s21 }
 0x212   :  { %v1051_v49 = vadd.f32 %v2209_v48, %v3014_v39  ;;  %v1045_v8 = vpop.f32.mrb[79].mxu1 }
 0x213   :  { %v1046_v52 = vadd.f32 %v1045_v8, %v3014_v39  ;;  %2332 = vmatprep.mubr.f32.mxu0 %v1178_v30  ;;  %p2443_p3 = por %p2442_p2, %p2441_p1 }
 0x214   :  { %2333 = vmatmul.mubr.f32.gmra.mrb[76].mxu0 %v1179_v20  ;;  %v1181_v19 = vmax.f32 %v1051_v49, 0.0 }
 0x215   :  { %v1180_v34 = vmax.f32 %v1046_v52, 0.0  ;;  %v2212_v53 = vpop.f32.mrb[80].mxu1  ;;  %p2444_p4 = pnand %p2443_p3, %p2437_p0 }
 0x216   :  { %v1061_v58 = vadd.f32 %v2212_v53, %v3014_v39  ;;  %v1055_v45 = vpop.f32.mrb[81].mxu1 }
 0x217   :  { %v1056_v59 = vadd.f32 %v1055_v45, %v3014_v39  ;;  %2335 = vmatprep.mubr.f32.mxu0 %v1180_v34 }
 0x218   :  { %2336 = vmatmul.mubr.f32.gmra.mrb[78].mxu0 %v1181_v19  ;;  %v1183_v56 = vmax.f32 %v1061_v58, 0.0 }
 0x219   :  { %v1182_v33 = vmax.f32 %v1056_v59, 0.0  ;;  %v2215_v60 = vpop.f32.mrb[82].mxu1 }
 0x21a   :  { %v1071_v63 = vadd.f32 %v2215_v60, %v3014_v39  ;;  %v1065_v44 = vpop.f32.mrb[83].mxu1 }
 0x21b   :  { %v1066_v0 = vadd.f32 %v1065_v44, %v3014_v39  ;;  %2338 = vmatprep.mubr.f32.mxu0 %v1182_v33 }
 0x21c   :  { %2339 = vmatmul.mubr.f32.gmra.mrb[80].mxu0 %v1183_v56  ;;  %v1185_v55 = vmax.f32 %v1071_v63, 0.0 }
 0x21d   :  { %v1184_v2 = vmax.f32 %v1066_v0, 0.0  ;;  %v2218_v3 = vpop.f32.mrb[84].mxu1 }
 0x21e   :  { %v1081_v6 = vadd.f32 %v2218_v3, %v3014_v39  ;;  %v1075_v12 = vpop.f32.mrb[85].mxu1 }
 0x21f   :  { %v1076_v7 = vadd.f32 %v1075_v12, %v3014_v39  ;;  %2341 = vmatprep.mubr.f32.mxu0 %v1184_v2 }
 0x220   :  { %2342 = vmatmul.mubr.f32.gmra.mrb[82].mxu0 %v1185_v55  ;;  %v1187_v22 = vmax.f32 %v1081_v6, 0.0 }
 0x221   :  { %v1186_v1 = vmax.f32 %v1076_v7, 0.0  ;;  %v2221_v10 = vpop.f32.mrb[86].mxu1 }
 0x222   :  { %v1091_v13 = vadd.f32 %v2221_v10, %v3014_v39  ;;  %v1085_v11 = vpop.f32.mrb[87].mxu1 }
 0x223   :  { %v1086_v14 = vadd.f32 %v1085_v11, %v3014_v39  ;;  %2344 = vmatprep.mubr.f32.mxu0 %v1186_v1 }
 0x224   :  { %2345 = vmatmul.mubr.f32.gmra.mrb[84].mxu0 %v1187_v22  ;;  %v1189_v21 = vmax.f32 %v1091_v13, 0.0 }
 0x225   :  { %v1188_v35 = vmax.f32 %v1086_v14, 0.0  ;;  %v2224_v15 = vpop.f32.mrb[88].mxu1 }
 0x226   :  { %v1101_v16 = vadd.f32 %v2224_v15, %v3014_v39  ;;  %v1095_v43 = vpop.f32.mrb[89].mxu1 }
 0x227   :  { %v1096_v23 = vadd.f32 %v1095_v43, %v3014_v39  ;;  %2347 = vmatprep.mubr.f32.mxu0 %v1188_v35 }
 0x228   :  { %2348 = vmatmul.mubr.f32.gmra.mrb[86].mxu0 %v1189_v21  ;;  %v1191_v57 = vmax.f32 %v1101_v16, 0.0 }
 0x229   :  { %v1190_v32 = vmax.f32 %v1096_v23, 0.0  ;;  %v2227_v24 = vpop.f32.mrb[90].mxu1 }
 0x22a   :  { %v1111_v25 = vadd.f32 %v2227_v24, %v3014_v39  ;;  %v1105_v42 = vpop.f32.mrb[91].mxu1 }
 0x22b   :  { %v1106_v26 = vadd.f32 %v1105_v42, %v3014_v39  ;;  %2350 = vmatprep.mubr.f32.mxu0 %v1190_v32 }
 0x22c   :  { %2351 = vmatmul.mubr.f32.gmra.mrb[88].mxu0 %v1191_v57  ;;  %v1193_v54 = vmax.f32 %v1111_v25, 0.0 }
 0x22d   :  { %v1192_v5 = vmax.f32 %v1106_v26, 0.0  ;;  %v2230_v51 = vpop.f32.mrb[92].mxu1 }
 0x22e   :  { %v1121_v36 = vadd.f32 %v2230_v51, %v3014_v39  ;;  %v1115_v37 = vpop.f32.mrb[93].mxu1 }
 0x22f   :  { %v1116_v18 = vadd.f32 %v1115_v37, %v3014_v39  ;;  %2353 = vmatprep.mubr.f32.mxu0 %v1192_v5 }
 0x230   :  { %2354 = vmatmul.mubr.f32.gmra.mrb[90].mxu0 %v1193_v54  ;;  %v1195_v29 = vmax.f32 %v1121_v36, 0.0 }
 0x231   :  { %v1194_v4 = vmax.f32 %v1116_v18, 0.0  ;;  %v2233_v38 = vpop.f32.mrb[94].mxu1 }
 0x232   :  { %v1131_v62 = vadd.f32 %v2233_v38, %v3014_v39  ;;  %v1125_v17 = vpop.f32.mrb[95].mxu1 }
 0x233   :  { %v1126_v50 = vadd.f32 %v1125_v17, %v3014_v39  ;;  %2356 = vmatprep.mubr.f32.mxu0 %v1194_v4 }
 0x234   :  { %2357 = vmatmul.mubr.f32.gmra.mrb[92].mxu0 %v1195_v29  ;;  %v1197_v41 = vmax.f32 %v1131_v62, 0.0 }
 0x235   :  { %v1196_v40 = vmax.f32 %v1126_v50, 0.0 }
 0x237   :  { %2359 = vmatprep.mubr.f32.mxu0 %v1196_v40 }
 0x238   :  { %2360 = vmatmul.mubr.f32.gmra.mrb[94].mxu0 %v1197_v41 }
 0x28f   :  { %v2268_v9 = vpop.f32.mrb[32].mxu0 }
 0x290   :  { %v1291_v47 = vadd.f32 %v2268_v9, %v3084_v27  ;;  %v1285_v61 = vpop.f32.mrb[33].mxu0 }
 0x291   :  { %v1286_v39 = vadd.f32 %v1285_v61, %v3084_v27 }
 0x292   :  { %1605 = vst [vmem:[#allocation2 + $0x8] sm:$0xff] %v1291_v47 }
 0x293   :  { %1604 = vst [vmem:[#allocation2] sm:$0xff] %v1286_v39  ;;  %v2271_v30 = vpop.f32.mrb[34].mxu0 }
 0x294   :  { %v1301_v48 = vadd.f32 %v2271_v30, %v3084_v27  ;;  %v1295_v20 = vpop.f32.mrb[35].mxu0 }
 0x295   :  { %v1296_v28 = vadd.f32 %v1295_v20, %v3084_v27 }
 0x296   :  { %1607 = vst [vmem:[#allocation2 + $0x18] sm:$0xff] %v1301_v48 }
 0x297   :  { %1606 = vst [vmem:[#allocation2 + $0x10] sm:$0xff] %v1296_v28  ;;  %v2274_v49 = vpop.f32.mrb[36].mxu0 }
 0x298   :  { %v1311_v8 = vadd.f32 %v2274_v49, %v3084_v27  ;;  %v1305_v52 = vpop.f32.mrb[37].mxu0 }
 0x299   :  { %v1306_v34 = vadd.f32 %v1305_v52, %v3084_v27 }
 0x29a   :  { %1609 = vst [vmem:[#allocation2 + $0x28] sm:$0xff] %v1311_v8 }
 0x29b   :  { %1608 = vst [vmem:[#allocation2 + $0x20] sm:$0xff] %v1306_v34  ;;  %v2277_v53 = vpop.f32.mrb[38].mxu0 }
 0x29c   :  { %v1321_v19 = vadd.f32 %v2277_v53, %v3084_v27  ;;  %v1315_v58 = vpop.f32.mrb[39].mxu0 }
 0x29d   :  { %v1316_v45 = vadd.f32 %v1315_v58, %v3084_v27 }
 0x29e   :  { %1611 = vst [vmem:[#allocation2 + $0x38] sm:$0xff] %v1321_v19 }
 0x29f   :  { %1610 = vst [vmem:[#allocation2 + $0x30] sm:$0xff] %v1316_v45  ;;  %v2280_v59 = vpop.f32.mrb[40].mxu0 }
 0x2a0   :  { %v1331_v33 = vadd.f32 %v2280_v59, %v3084_v27  ;;  %v1325_v60 = vpop.f32.mrb[41].mxu0 }
 0x2a1   :  { %v1326_v56 = vadd.f32 %v1325_v60, %v3084_v27 }
 0x2a2   :  { %1613 = vst [vmem:[#allocation2 + $0x48] sm:$0xff] %v1331_v33 }
 0x2a3   :  { %1612 = vst [vmem:[#allocation2 + $0x40] sm:$0xff] %v1326_v56  ;;  %v2283_v63 = vpop.f32.mrb[42].mxu0 }
 0x2a4   :  { %v1341_v44 = vadd.f32 %v2283_v63, %v3084_v27  ;;  %v1335_v0 = vpop.f32.mrb[43].mxu0 }
 0x2a5   :  { %v1336_v2 = vadd.f32 %v1335_v0, %v3084_v27 }
 0x2a6   :  { %1615 = vst [vmem:[#allocation2 + $0x58] sm:$0xff] %v1341_v44 }
 0x2a7   :  { %1614 = vst [vmem:[#allocation2 + $0x50] sm:$0xff] %v1336_v2  ;;  %v2286_v3 = vpop.f32.mrb[44].mxu0 }
 0x2a8   :  { %v1351_v55 = vadd.f32 %v2286_v3, %v3084_v27  ;;  %v1345_v6 = vpop.f32.mrb[45].mxu0 }
 0x2a9   :  { %v1346_v12 = vadd.f32 %v1345_v6, %v3084_v27 }
 0x2aa   :  { %1617 = vst [vmem:[#allocation2 + $0x68] sm:$0xff] %v1351_v55 }
 0x2ab   :  { %1616 = vst [vmem:[#allocation2 + $0x60] sm:$0xff] %v1346_v12  ;;  %v2289_v7 = vpop.f32.mrb[46].mxu0 }
 0x2ac   :  { %v1361_v1 = vadd.f32 %v2289_v7, %v3084_v27  ;;  %v1355_v10 = vpop.f32.mrb[47].mxu0 }
 0x2ad   :  { %v1356_v22 = vadd.f32 %v1355_v10, %v3084_v27 }
 0x2ae   :  { %1619 = vst [vmem:[#allocation2 + $0x78] sm:$0xff] %v1361_v1 }
 0x2af   :  { %1618 = vst [vmem:[#allocation2 + $0x70] sm:$0xff] %v1356_v22  ;;  %v2292_v13 = vpop.f32.mrb[48].mxu0 }
 0x2b0   :  { %v1371_v11 = vadd.f32 %v2292_v13, %v3084_v27  ;;  %v1365_v14 = vpop.f32.mrb[49].mxu0 }
 0x2b1   :  { %v1366_v35 = vadd.f32 %v1365_v14, %v3084_v27 }
 0x2b2   :  { %1621 = vst [vmem:[#allocation2 + $0x88] sm:$0xff] %v1371_v11 }
 0x2b3   :  { %1620 = vst [vmem:[#allocation2 + $0x80] sm:$0xff] %v1366_v35  ;;  %v2295_v15 = vpop.f32.mrb[50].mxu0 }
 0x2b4   :  { %v1381_v21 = vadd.f32 %v2295_v15, %v3084_v27  ;;  %v1375_v16 = vpop.f32.mrb[51].mxu0 }
 0x2b5   :  { %v1376_v43 = vadd.f32 %v1375_v16, %v3084_v27 }
 0x2b6   :  { %1623 = vst [vmem:[#allocation2 + $0x98] sm:$0xff] %v1381_v21 }
 0x2b7   :  { %1622 = vst [vmem:[#allocation2 + $0x90] sm:$0xff] %v1376_v43  ;;  %v2298_v23 = vpop.f32.mrb[52].mxu0 }
 0x2b8   :  { %v1391_v32 = vadd.f32 %v2298_v23, %v3084_v27  ;;  %v1385_v24 = vpop.f32.mrb[53].mxu0 }
 0x2b9   :  { %v1386_v57 = vadd.f32 %v1385_v24, %v3084_v27 }
 0x2ba   :  { %1625 = vst [vmem:[#allocation2 + $0xa8] sm:$0xff] %v1391_v32 }
 0x2bb   :  { %1624 = vst [vmem:[#allocation2 + $0xa0] sm:$0xff] %v1386_v57  ;;  %v2301_v25 = vpop.f32.mrb[54].mxu0 }
 0x2bc   :  { %v1401_v42 = vadd.f32 %v2301_v25, %v3084_v27  ;;  %v1395_v26 = vpop.f32.mrb[55].mxu0 }
 0x2bd   :  { %v1396_v5 = vadd.f32 %v1395_v26, %v3084_v27 }
 0x2be   :  { %1627 = vst [vmem:[#allocation2 + $0xb8] sm:$0xff] %v1401_v42 }
 0x2bf   :  { %1626 = vst [vmem:[#allocation2 + $0xb0] sm:$0xff] %v1396_v5  ;;  %v2304_v51 = vpop.f32.mrb[56].mxu0 }
 0x2c0   :  { %v1411_v54 = vadd.f32 %v2304_v51, %v3084_v27  ;;  %v1405_v36 = vpop.f32.mrb[57].mxu0 }
 0x2c1   :  { %v1406_v37 = vadd.f32 %v1405_v36, %v3084_v27 }
 0x2c2   :  { %1629 = vst [vmem:[#allocation2 + $0xc8] sm:$0xff] %v1411_v54 }
 0x2c3   :  { %1628 = vst [vmem:[#allocation2 + $0xc0] sm:$0xff] %v1406_v37  ;;  %v2307_v18 = vpop.f32.mrb[58].mxu0 }
 0x2c4   :  { %v1421_v4 = vadd.f32 %v2307_v18, %v3084_v27  ;;  %v1415_v38 = vpop.f32.mrb[59].mxu0 }
 0x2c5   :  { %v1416_v29 = vadd.f32 %v1415_v38, %v3084_v27 }
 0x2c6   :  { %1631 = vst [vmem:[#allocation2 + $0xd8] sm:$0xff] %v1421_v4 }
 0x2c7   :  { %1630 = vst [vmem:[#allocation2 + $0xd0] sm:$0xff] %v1416_v29  ;;  %v2310_v62 = vpop.f32.mrb[60].mxu0 }
 0x2c8   :  { %v1431_v17 = vadd.f32 %v2310_v62, %v3084_v27  ;;  %v1425_v50 = vpop.f32.mrb[61].mxu0 }
 0x2c9   :  { %v1426_v40 = vadd.f32 %v1425_v50, %v3084_v27 }
 0x2ca   :  { %1633 = vst [vmem:[#allocation2 + $0xe8] sm:$0xff] %v1431_v17 }
 0x2cb   :  { %1632 = vst [vmem:[#allocation2 + $0xe0] sm:$0xff] %v1426_v40  ;;  %v2313_v41 = vpop.f32.mrb[62].mxu0 }
 0x2cc   :  { %v1441_v46 = vadd.f32 %v2313_v41, %v3084_v27  ;;  %v1435_v31 = vpop.f32.mrb[63].mxu0 }
 0x2cd   :  { %v1436_v9 = vadd.f32 %v1435_v31, %v3084_v27 }
 0x2ce   :  { %1635 = vst [vmem:[#allocation2 + $0xf8] sm:$0xff] %v1441_v46 }
 0x2cf   :  { %1634 = vst [vmem:[#allocation2 + $0xf0] sm:$0xff] %v1436_v9  ;;  %v2316_v47 = vpop.f32.mrb[64].mxu0 }
 0x2d0   :  { %v1451_v61 = vadd.f32 %v2316_v47, %v3084_v27  ;;  %v1445_v39 = vpop.f32.mrb[65].mxu0 }
 0x2d1   :  { %v1446_v30 = vadd.f32 %v1445_v39, %v3084_v27 }
 0x2d2   :  { %1637 = vst [vmem:[#allocation2 + $0x108] sm:$0xff] %v1451_v61 }
 0x2d3   :  { %1636 = vst [vmem:[#allocation2 + $0x100] sm:$0xff] %v1446_v30  ;;  %v2319_v48 = vpop.f32.mrb[66].mxu0 }
 0x2d4   :  { %v1461_v20 = vadd.f32 %v2319_v48, %v3084_v27  ;;  %v1455_v28 = vpop.f32.mrb[67].mxu0 }
 0x2d5   :  { %v1456_v49 = vadd.f32 %v1455_v28, %v3084_v27 }
 0x2d6   :  { %1639 = vst [vmem:[#allocation2 + $0x118] sm:$0xff] %v1461_v20 }
 0x2d7   :  { %1638 = vst [vmem:[#allocation2 + $0x110] sm:$0xff] %v1456_v49  ;;  %v2322_v8 = vpop.f32.mrb[68].mxu0 }
 0x2d8   :  { %v1471_v52 = vadd.f32 %v2322_v8, %v3084_v27  ;;  %v1465_v34 = vpop.f32.mrb[69].mxu0 }
 0x2d9   :  { %v1466_v53 = vadd.f32 %v1465_v34, %v3084_v27 }
 0x2da   :  { %1641 = vst [vmem:[#allocation2 + $0x128] sm:$0xff] %v1471_v52 }
 0x2db   :  { %1640 = vst [vmem:[#allocation2 + $0x120] sm:$0xff] %v1466_v53  ;;  %v2325_v19 = vpop.f32.mrb[70].mxu0 }
 0x2dc   :  { %v1481_v58 = vadd.f32 %v2325_v19, %v3084_v27  ;;  %v1475_v45 = vpop.f32.mrb[71].mxu0 }
 0x2dd   :  { %v1476_v59 = vadd.f32 %v1475_v45, %v3084_v27 }
 0x2de   :  { %1643 = vst [vmem:[#allocation2 + $0x138] sm:$0xff] %v1481_v58 }
 0x2df   :  { %1642 = vst [vmem:[#allocation2 + $0x130] sm:$0xff] %v1476_v59  ;;  %v2328_v33 = vpop.f32.mrb[72].mxu0 }
 0x2e0   :  { %v1491_v60 = vadd.f32 %v2328_v33, %v3084_v27  ;;  %v1485_v56 = vpop.f32.mrb[73].mxu0 }
 0x2e1   :  { %v1486_v63 = vadd.f32 %v1485_v56, %v3084_v27 }
 0x2e2   :  { %1645 = vst [vmem:[#allocation2 + $0x148] sm:$0xff] %v1491_v60 }
 0x2e3   :  { %1644 = vst [vmem:[#allocation2 + $0x140] sm:$0xff] %v1486_v63  ;;  %v2331_v44 = vpop.f32.mrb[74].mxu0 }
 0x2e4   :  { %v1501_v0 = vadd.f32 %v2331_v44, %v3084_v27  ;;  %v1495_v2 = vpop.f32.mrb[75].mxu0 }
 0x2e5   :  { %v1496_v3 = vadd.f32 %v1495_v2, %v3084_v27 }
 0x2e6   :  { %1647 = vst [vmem:[#allocation2 + $0x158] sm:$0xff] %v1501_v0 }
 0x2e7   :  { %1646 = vst [vmem:[#allocation2 + $0x150] sm:$0xff] %v1496_v3  ;;  %v2334_v55 = vpop.f32.mrb[76].mxu0 }
 0x2e8   :  { %v1511_v6 = vadd.f32 %v2334_v55, %v3084_v27  ;;  %v1505_v12 = vpop.f32.mrb[77].mxu0 }
 0x2e9   :  { %v1506_v7 = vadd.f32 %v1505_v12, %v3084_v27 }
 0x2ea   :  { %1649 = vst [vmem:[#allocation2 + $0x168] sm:$0xff] %v1511_v6 }
 0x2eb   :  { %1648 = vst [vmem:[#allocation2 + $0x160] sm:$0xff] %v1506_v7  ;;  %v2337_v1 = vpop.f32.mrb[78].mxu0 }
 0x2ec   :  { %v1521_v10 = vadd.f32 %v2337_v1, %v3084_v27  ;;  %v1515_v22 = vpop.f32.mrb[79].mxu0 }
 0x2ed   :  { %v1516_v13 = vadd.f32 %v1515_v22, %v3084_v27 }
 0x2ee   :  { %1651 = vst [vmem:[#allocation2 + $0x178] sm:$0xff] %v1521_v10 }
 0x2ef   :  { %1650 = vst [vmem:[#allocation2 + $0x170] sm:$0xff] %v1516_v13  ;;  %v2340_v11 = vpop.f32.mrb[80].mxu0 }
 0x2f0   :  { %v1531_v14 = vadd.f32 %v2340_v11, %v3084_v27  ;;  %v1525_v35 = vpop.f32.mrb[81].mxu0 }
 0x2f1   :  { %v1526_v15 = vadd.f32 %v1525_v35, %v3084_v27 }
 0x2f2   :  { %1653 = vst [vmem:[#allocation2 + $0x188] sm:$0xff] %v1531_v14 }
 0x2f3   :  { %1652 = vst [vmem:[#allocation2 + $0x180] sm:$0xff] %v1526_v15  ;;  %v2343_v21 = vpop.f32.mrb[82].mxu0 }
 0x2f4   :  { %v1541_v16 = vadd.f32 %v2343_v21, %v3084_v27  ;;  %v1535_v43 = vpop.f32.mrb[83].mxu0 }
 0x2f5   :  { %v1536_v23 = vadd.f32 %v1535_v43, %v3084_v27 }
 0x2f6   :  { %1655 = vst [vmem:[#allocation2 + $0x198] sm:$0xff] %v1541_v16 }
 0x2f7   :  { %1654 = vst [vmem:[#allocation2 + $0x190] sm:$0xff] %v1536_v23  ;;  %v2346_v32 = vpop.f32.mrb[84].mxu0 }
 0x2f8   :  { %v1551_v24 = vadd.f32 %v2346_v32, %v3084_v27  ;;  %v1545_v57 = vpop.f32.mrb[85].mxu0 }
 0x2f9   :  { %v1546_v25 = vadd.f32 %v1545_v57, %v3084_v27 }
 0x2fa   :  { %1657 = vst [vmem:[#allocation2 + $0x1a8] sm:$0xff] %v1551_v24 }
 0x2fb   :  { %1656 = vst [vmem:[#allocation2 + $0x1a0] sm:$0xff] %v1546_v25  ;;  %v2349_v42 = vpop.f32.mrb[86].mxu0 }
 0x2fc   :  { %v1561_v26 = vadd.f32 %v2349_v42, %v3084_v27  ;;  %v1555_v5 = vpop.f32.mrb[87].mxu0 }
 0x2fd   :  { %v1556_v51 = vadd.f32 %v1555_v5, %v3084_v27 }
 0x2fe   :  { %1659 = vst [vmem:[#allocation2 + $0x1b8] sm:$0xff] %v1561_v26 }
 0x2ff   :  { %1658 = vst [vmem:[#allocation2 + $0x1b0] sm:$0xff] %v1556_v51  ;;  %v2352_v54 = vpop.f32.mrb[88].mxu0 }
 0x300   :  { %v1571_v36 = vadd.f32 %v2352_v54, %v3084_v27  ;;  %v1565_v37 = vpop.f32.mrb[89].mxu0 }
 0x301   :  { %v1566_v18 = vadd.f32 %v1565_v37, %v3084_v27 }
 0x302   :  { %1661 = vst [vmem:[#allocation2 + $0x1c8] sm:$0xff] %v1571_v36 }
 0x303   :  { %1660 = vst [vmem:[#allocation2 + $0x1c0] sm:$0xff] %v1566_v18  ;;  %v2355_v4 = vpop.f32.mrb[90].mxu0 }
 0x304   :  { %v1581_v38 = vadd.f32 %v2355_v4, %v3084_v27  ;;  %v1575_v29 = vpop.f32.mrb[91].mxu0 }
 0x305   :  { %v1576_v62 = vadd.f32 %v1575_v29, %v3084_v27 }
 0x306   :  { %1663 = vst [vmem:[#allocation2 + $0x1d8] sm:$0xff] %v1581_v38 }
 0x307   :  { %1662 = vst [vmem:[#allocation2 + $0x1d0] sm:$0xff] %v1576_v62  ;;  %v2358_v17 = vpop.f32.mrb[92].mxu0 }
 0x308   :  { %v1591_v50 = vadd.f32 %v2358_v17, %v3084_v27  ;;  %v1585_v40 = vpop.f32.mrb[93].mxu0 }
 0x309   :  { %v1586_v41 = vadd.f32 %v1585_v40, %v3084_v27 }
 0x30a   :  { %1665 = vst [vmem:[#allocation2 + $0x1e8] sm:$0xff] %v1591_v50 }
 0x30b   :  { %1664 = vst [vmem:[#allocation2 + $0x1e0] sm:$0xff] %v1586_v41  ;;  %v2361_v46 = vpop.f32.mrb[94].mxu0 }
 0x30c   :  { %v1601_v31 = vadd.f32 %v2361_v46, %v3084_v27  ;;  %v1595_v9 = vpop.f32.mrb[95].mxu0 }
 0x30d   :  { %v1596_v47 = vadd.f32 %v1595_v9, %v3084_v27 }
 0x30e   :  { %1667 = vst [vmem:[#allocation2 + $0x1f8] sm:$0xff] %v1601_v31 }
 0x30f   :  { %1666 = vst [vmem:[#allocation2 + $0x1f0] sm:$0xff] %v1596_v47 }
 0x310   :  { %2447 = shalt.err (!%p2444_p4)
}
 0x311   :  { %s2448_s24 = scalar_lea.hbm %s3165_s3, 8192 }
 0x312   :  { %p2449_p5 = scmp.ne.s32.totalorder %s3165_s3, %s2448_s24  ;;  %p2452_p6 = scmp.lt.u32.totalorder %s2448_s24, %s3165_s3 }
 0x314   :  { %p2454_p7 = pnand %p2452_p6, %p2449_p5 }
 0x316   :  { %2457 = shalt.err (!%p2454_p7)
}
 0x317   :  { %s2461_s29 = smov 128   ;;  %s2462_s30 = smov 8  }
 0x318   :  { %1679 = dma.vmem_to_hbm [thread:$0]  %s1674_s20, 8192, %s3165_s3, [#allocation3], %s2461_s29, %s2461_s29, %s2462_s30  }
 0x319   :  { %2458 = dma.done.wait [#allocation3], 8192  }
 0x31a   :  { %2459 = vsyncadd [#allocation3], 4294959104 }
 0x31b   :  { %1683 = vsyncpa [#allocation3], 1 }

// kernel: tpu_custom_call.1
= control target key start
LH: loop header
LB: loop body
LE: loop exit
PB: predicated region body
PF: predicated region fallthrough
CT: control target
= control target key end

     0   :  { %vm86_vm0 = vcmask 130048   ;;  %s3162_s0 = inlined_call_operand.vmem [shape: f32[512,16], index: 0, kind: input, shape index: {}]   ;;  %s3163_s1 = inlined_call_operand.vmem [shape: f32[3,128,128], index: 1, kind: input, shape index: {}]   ;;  %s3164_s2 = inlined_call_operand.vmem [shape: f32[3,128], index: 2, kind: input, shape index: {}]   ;;  %s3165_s3 = inlined_call_operand.hbm [shape: f32[512,128], index: 3, kind: output, shape index: {}]  }
   0x1   :  { %v80_v0 = vld [vmem:[%s3163_s1] sm:$0xff]  ;;  %v81_v1 = vld [vmem:[%s3163_s1 + $0x8] sm:$0xff]  ;;  %v17_v5 = vld [vmem:[%s3162_s0 + $0x10] sm:$0xff] }
   0x2   :  { %v15_v2 = vld [vmem:[%s3162_s0] sm:$0xff]  ;;  %v2362_v3 = vpack.c.bf16 %v81_v1, %v80_v0  ;;  %v16_v4 = vld [vmem:[%s3162_s0 + $0x8] sm:$0xff]  ;;  %v18_v6 = vld [vmem:[%s3162_s0 + $0x18] sm:$0xff] }
   0x3   :  { %2010 = vmatprep.mubr.msk.f32.mxu0 %vm86_vm0, %v15_v2  ;;  %v19_v7 = vld [vmem:[%s3162_s0 + $0x20] sm:$0xff]  ;;  %v48_v9 = vld [vmem:[%s3162_s0 + $0x108] sm:$0xff]  ;;  %v49_v11 = vld [vmem:[%s3162_s0 + $0x110] sm:$0xff] }
   0x4   :  { %2363 = vmatprep.subr.bf16.mxu0 %v2362_v3  ;;  %2430 = vmatprep.subr.bf16.mxu1 %v2362_v3  ;;  %v47_v8 = vld [vmem:[%s3162_s0 + $0x100] sm:$0xff]  ;;  %v20_v10 = vld [vmem:[%s3162_s0 + $0x28] sm:$0xff]  ;;  %v21_v12 = vld [vmem:[%s3162_s0 + $0x30] sm:$0xff] }
   0x5   :  { %2365 = vmatpush3.bf16.msra.mxu0 %v2362_v3  ;;  %2431 = vmatpush3.bf16.msra.mxu1 %v2362_v3  ;;  %v50_v13 = vld [vmem:[%s3162_s0 + $0x118] sm:$0xff]  ;;  %v51_v14 = vld [vmem:[%s3162_s0 + $0x120] sm:$0xff]  ;;  %v52_v17 = vld [vmem:[%s3162_s0 + $0x128] sm:$0xff] }
   0x6   :  { %2058 = vmatprep.mubr.msk.f32.mxu1 %vm86_vm0, %v47_v8  ;;  %v22_v15 = vld [vmem:[%s3162_s0 + $0x38] sm:$0xff]  ;;  %v23_v16 = vld [vmem:[%s3162_s0 + $0x40] sm:$0xff]  ;;  %v53_v18 = vld [vmem:[%s3162_s0 + $0x130] sm:$0xff] }
   0x7   :  { %v24_v19 = vld [vmem:[%s3162_s0 + $0x48] sm:$0xff]  ;;  %v25_v20 = vld [vmem:[%s3162_s0 + $0x50] sm:$0xff]  ;;  %v54_v21 = vld [vmem:[%s3162_s0 + $0x138] sm:$0xff] }
   0x8   :  { %2011 = vmatmul.mubr.msk.f32.vlgmr.msra.gmra.mrb[0].mxu0 %vm86_vm0, %v16_v4  ;;  %2059 = vmatmul.mubr.msk.f32.vlgmr.msra.gmra.mrb[0].mxu1 %vm86_vm0, %v48_v9  ;;  %v1748_v22 = vld [vmem:[%s3163_s1 + $0x80] sm:$0xff]  ;;  %v1749_v23 = vld [vmem:[%s3163_s1 + $0x88] sm:$0xff]  ;;  %v1750_v24 = vld [vmem:[%s3163_s1 + $0x90] sm:$0xff] }
   0x9   :  { %2013 = vmatprep.mubr.msk.f32.mxu0 %vm86_vm0, %v17_v5  ;;  %2061 = vmatprep.mubr.msk.f32.mxu1 %vm86_vm0, %v49_v11  ;;  %v55_v25 = vld [vmem:[%s3162_s0 + $0x140] sm:$0xff]  ;;  %v2366_v26 = vpack.c.bf16 %v1749_v23, %v1748_v22  ;;  %v1751_v27 = vld [vmem:[%s3163_s1 + $0x98] sm:$0xff]  ;;  %v1753_v31 = vld [vmem:[%s3163_s1 + $0xa8] sm:$0xff] }
   0xa   :  { %v26_v28 = vld [vmem:[%s3162_s0 + $0x58] sm:$0xff]  ;;  %v2370_v29 = vpack.c.bf16 %v1751_v27, %v1750_v24  ;;  %v1752_v30 = vld [vmem:[%s3163_s1 + $0xa0] sm:$0xff]  ;;  %v56_v33 = vld [vmem:[%s3162_s0 + $0x148] sm:$0xff] }
   0xb   :  { %v27_v32 = vld [vmem:[%s3162_s0 + $0x60] sm:$0xff]  ;;  %2367 = vmatprep.subr.bf16.mxu1 %v2366_v26  ;;  %v57_v34 = vld [vmem:[%s3162_s0 + $0x150] sm:$0xff]  ;;  %v2374_v35 = vpack.c.bf16 %v1753_v31, %v1752_v30 }
   0xc   :  { %2014 = vmatmul.mubr.msk.f32.gmra.mrb[2].mxu0 %vm86_vm0, %v18_v6  ;;  %2062 = vmatmul.mubr.msk.f32.gmra.mrb[2].mxu1 %vm86_vm0, %v50_v13 }
   0xd   :  { %2016 = vmatprep.mubr.msk.f32.mxu0 %vm86_vm0, %v19_v7  ;;  %2064 = vmatprep.mubr.msk.f32.mxu1 %vm86_vm0, %v51_v14 }
   0xe   :  { %2369 = vmatpush3.bf16.msra.mxu1 %v2366_v26 }
   0xf   :  { %2371 = vmatprep.subr.bf16.mxu1 %v2370_v29 }
  0x10   :  { %2017 = vmatmul.mubr.msk.f32.gmra.mrb[4].mxu0 %vm86_vm0, %v20_v10  ;;  %2065 = vmatmul.mubr.msk.f32.gmra.mrb[4].mxu1 %vm86_vm0, %v52_v17 }
  0x11   :  { %2019 = vmatprep.mubr.msk.f32.mxu0 %vm86_vm0, %v21_v12  ;;  %2067 = vmatprep.mubr.msk.f32.mxu1 %vm86_vm0, %v53_v18 }
  0x14   :  { %2020 = vmatmul.mubr.msk.f32.gmra.mrb[6].mxu0 %vm86_vm0, %v22_v15  ;;  %2068 = vmatmul.mubr.msk.f32.gmra.mrb[6].mxu1 %vm86_vm0, %v54_v21 }
  0x15   :  { %2022 = vmatprep.mubr.msk.f32.mxu0 %vm86_vm0, %v23_v16  ;;  %2070 = vmatprep.mubr.msk.f32.mxu1 %vm86_vm0, %v55_v25 }
  0x18   :  { %2023 = vmatmul.mubr.msk.f32.gmra.mrb[8].mxu0 %vm86_vm0, %v24_v19 }
  0x19   :  { %2025 = vmatprep.mubr.msk.f32.mxu0 %vm86_vm0, %v25_v20 }
  0x1c   :  { %2026 = vmatmul.mubr.msk.f32.gmra.mrb[10].mxu0 %vm86_vm0, %v26_v28 }
  0x1d   :  { %8 = vsyncpa [#allocation3], 0  ;;  %2028 = vmatprep.mubr.msk.f32.mxu0 %vm86_vm0, %v27_v32  ;;  %v28_v36 = vld [vmem:[%s3162_s0 + $0x68] sm:$0xff]  ;;  %v1754_v37 = vld [vmem:[%s3163_s1 + $0xb0] sm:$0xff]  ;;  %2071 = vmatmul.mubr.msk.f32.gmra.mrb[8].mxu1 %vm86_vm0, %v56_v33  ;;  %v82_v27 = vlaneseq }
  0x1e   :  { %v1755_v38 = vld [vmem:[%s3163_s1 + $0xb8] sm:$0xff]  ;;  %v29_v39 = vld [vmem:[%s3162_s0 + $0x70] sm:$0xff]  ;;  %2073 = vmatprep.mubr.msk.f32.mxu1 %vm86_vm0, %v57_v34  ;;  %2373 = vmatpush3.bf16.msra.mxu1 %v2370_v29  ;;  %v59_v41 = vld [vmem:[%s3162_s0 + $0x160] sm:$0xff] }
  0x1f   :  { %v58_v40 = vld [vmem:[%s3162_s0 + $0x158] sm:$0xff]  ;;  %2375 = vmatprep.subr.bf16.mxu1 %v2374_v35  ;;  %v2378_v42 = vpack.c.bf16 %v1755_v38, %v1754_v37  ;;  %v1756_v44 = vld [vmem:[%s3163_s1 + $0xc0] sm:$0xff]  ;;  %v1757_v45 = vld [vmem:[%s3163_s1 + $0xc8] sm:$0xff]  ;;  %v2793_v28 = vshrl.u32 %v82_v27, 7 }
  0x20   :  { %2029 = vmatmul.mubr.msk.f32.gmra.mrb[12].mxu0 %vm86_vm0, %v28_v36  ;;  %v30_v43 = vld [vmem:[%s3162_s0 + $0x78] sm:$0xff]  ;;  %v31_v46 = vld [vmem:[%s3162_s0 + $0x80] sm:$0xff]  ;;  %v60_v47 = vld [vmem:[%s3162_s0 + $0x168] sm:$0xff]  ;;  %v2382_v49 = vpack.c.bf16 %v1757_v45, %v1756_v44 }
  0x21   :  { %2031 = vmatprep.mubr.msk.f32.mxu0 %vm86_vm0, %v29_v39  ;;  %2074 = vmatmul.mubr.msk.f32.gmra.mrb[10].mxu1 %vm86_vm0, %v58_v40  ;;  %v61_v48 = vld [vmem:[%s3162_s0 + $0x170] sm:$0xff]  ;;  %v32_v50 = vld [vmem:[%s3162_s0 + $0x88] sm:$0xff]  ;;  %v1759_v52 = vld [vmem:[%s3163_s1 + $0xd8] sm:$0xff]  ;;  %v84_v29 = vsub.s32 0, %v2793_v28 }
  0x22   :  { %2076 = vmatprep.mubr.msk.f32.mxu1 %vm86_vm0, %v59_v41  ;;  %2377 = vmatpush3.bf16.msra.mxu1 %v2374_v35  ;;  %v1758_v51 = vld [vmem:[%s3163_s1 + $0xd0] sm:$0xff]  ;;  %v62_v54 = vld [vmem:[%s3162_s0 + $0x178] sm:$0xff]  ;;  %v63_v55 = vld [vmem:[%s3162_s0 + $0x180] sm:$0xff] }
  0x23   :  { %2379 = vmatprep.subr.bf16.mxu1 %v2378_v42  ;;  %v33_v53 = vld [vmem:[%s3162_s0 + $0x90] sm:$0xff]  ;;  %v2386_v56 = vpack.c.bf16 %v1759_v52, %v1758_v51  ;;  %v34_v57 = vld [vmem:[%s3162_s0 + $0x98] sm:$0xff]  ;;  %v1760_v58 = vld [vmem:[%s3163_s1 + $0xe0] sm:$0xff] }
  0x24   :  { %2032 = vmatmul.mubr.msk.f32.gmra.mrb[14].mxu0 %vm86_vm0, %v30_v43  ;;  %v1761_v59 = vld [vmem:[%s3163_s1 + $0xe8] sm:$0xff]  ;;  %v35_v60 = vld [vmem:[%s3162_s0 + $0xa0] sm:$0xff]  ;;  %v65_v62 = vld [vmem:[%s3162_s0 + $0x190] sm:$0xff] }
  0x25   :  { %2034 = vmatprep.mubr.msk.f32.mxu0 %vm86_vm0, %v31_v46  ;;  %2077 = vmatmul.mubr.msk.f32.gmra.mrb[12].mxu1 %vm86_vm0, %v60_v47  ;;  %v64_v61 = vld [vmem:[%s3162_s0 + $0x188] sm:$0xff]  ;;  %v2390_v63 = vpack.c.bf16 %v1761_v59, %v1760_v58  ;;  %v1762_v1 = vld [vmem:[%s3163_s1 + $0xf0] sm:$0xff]  ;;  %v1763_v2 = vld [vmem:[%s3163_s1 + $0xf8] sm:$0xff] }
  0x26   :  { %2079 = vmatprep.mubr.msk.f32.mxu1 %vm86_vm0, %v61_v48  ;;  %2381 = vmatpush3.bf16.msra.mxu1 %v2378_v42  ;;  %v36_v0 = vld [vmem:[%s3162_s0 + $0xa8] sm:$0xff]  ;;  %v37_v3 = vld [vmem:[%s3162_s0 + $0xb0] sm:$0xff]  ;;  %v66_v4 = vld [vmem:[%s3162_s0 + $0x198] sm:$0xff]  ;;  %v2394_v6 = vpack.c.bf16 %v1763_v2, %v1762_v1 }
  0x27   :  { %2383 = vmatprep.subr.bf16.mxu1 %v2382_v49  ;;  %v67_v5 = vld [vmem:[%s3162_s0 + $0x1a0] sm:$0xff]  ;;  %v38_v7 = vld [vmem:[%s3162_s0 + $0xb8] sm:$0xff]  ;;  %v68_v9 = vld [vmem:[%s3162_s0 + $0x1a8] sm:$0xff] }
  0x28   :  { %2035 = vmatmul.mubr.msk.f32.gmra.mrb[16].mxu0 %vm86_vm0, %v32_v50  ;;  %v39_v8 = vld [vmem:[%s3162_s0 + $0xc0] sm:$0xff]  ;;  %v69_v10 = vld [vmem:[%s3162_s0 + $0x1b0] sm:$0xff]  ;;  %v40_v11 = vld [vmem:[%s3162_s0 + $0xc8] sm:$0xff] }
  0x29   :  { %2037 = vmatprep.mubr.msk.f32.mxu0 %vm86_vm0, %v33_v53  ;;  %2080 = vmatmul.mubr.msk.f32.gmra.mrb[14].mxu1 %vm86_vm0, %v62_v54  ;;  %v41_v12 = vld [vmem:[%s3162_s0 + $0xd0] sm:$0xff]  ;;  %v70_v13 = vld [vmem:[%s3162_s0 + $0x1b8] sm:$0xff]  ;;  %v71_v14 = vld [vmem:[%s3162_s0 + $0x1c0] sm:$0xff] }
  0x2a   :  { %2082 = vmatprep.mubr.msk.f32.mxu1 %vm86_vm0, %v63_v55  ;;  %2385 = vmatpush3.bf16.msra.mxu1 %v2382_v49  ;;  %v42_v15 = vld [vmem:[%s3162_s0 + $0xd8] sm:$0xff]  ;;  %v43_v16 = vld [vmem:[%s3162_s0 + $0xe0] sm:$0xff]  ;;  %v72_v17 = vld [vmem:[%s3162_s0 + $0x1c8] sm:$0xff] }
  0x2b   :  { %2387 = vmatprep.subr.bf16.mxu1 %v2386_v56  ;;  %v73_v18 = vld [vmem:[%s3162_s0 + $0x1d0] sm:$0xff]  ;;  %v44_v19 = vld [vmem:[%s3162_s0 + $0xe8] sm:$0xff]  ;;  %v74_v21 = vld [vmem:[%s3162_s0 + $0x1d8] sm:$0xff] }
  0x2c   :  { %2038 = vmatmul.mubr.msk.f32.gmra.mrb[18].mxu0 %vm86_vm0, %v34_v57  ;;  %v45_v20 = vld [vmem:[%s3162_s0 + $0xf0] sm:$0xff]  ;;  %v75_v22 = vld [vmem:[%s3162_s0 + $0x1e0] sm:$0xff]  ;;  %v46_v23 = vld [vmem:[%s3162_s0 + $0xf8] sm:$0xff] }
  0x2d   :  { %2040 = vmatprep.mubr.msk.f32.mxu0 %vm86_vm0, %v35_v60  ;;  %2083 = vmatmul.mubr.msk.f32.gmra.mrb[16].mxu1 %vm86_vm0, %v64_v61  ;;  %v76_v24 = vld [vmem:[%s3162_s0 + $0x1e8] sm:$0xff]  ;;  %v77_v25 = vld [vmem:[%s3162_s0 + $0x1f0] sm:$0xff]  ;;  %v78_v26 = vld [vmem:[%s3162_s0 + $0x1f8] sm:$0xff] }
  0x2e   :  { %2085 = vmatprep.mubr.msk.f32.mxu1 %vm86_vm0, %v65_v62  ;;  %2389 = vmatpush3.bf16.msra.mxu1 %v2386_v56  ;;  %v2799_v30 = vld [vmem:[%s3164_s2] sm:$0x7]  ;;  %v1765_v37 = vld [vmem:[%s3163_s1 + $0x108] sm:$0xff]  ;;  %v1766_v38 = vld [vmem:[%s3163_s1 + $0x110] sm:$0xff] }
  0x2f   :  { %2391 = vmatprep.subr.bf16.mxu1 %v2390_v63  ;;  %v2802_v31 = vrot.slane %v2799_v30, %v84_v29  ;;  %v1764_v36 = vld [vmem:[%s3163_s1 + $0x100] sm:$0xff]  ;;  %v1767_v42 = vld [vmem:[%s3163_s1 + $0x118] sm:$0xff]  ;;  %v1769_v48 = vld [vmem:[%s3163_s1 + $0x128] sm:$0xff] }
  0x30   :  { %2041 = vmatmul.mubr.msk.f32.gmra.mrb[20].mxu0 %vm86_vm0, %v36_v0  ;;  %v2398_v41 = vpack.c.bf16 %v1765_v37, %v1764_v36  ;;  %v2402_v46 = vpack.c.bf16 %v1767_v42, %v1766_v38  ;;  %v1768_v47 = vld [vmem:[%s3163_s1 + $0x120] sm:$0xff]  ;;  %v1770_v58 = vld [vmem:[%s3163_s1 + $0x130] sm:$0xff]  ;;  %v1771_v59 = vld [vmem:[%s3163_s1 + $0x138] sm:$0xff] }
  0x31   :  { %2043 = vmatprep.mubr.msk.f32.mxu0 %vm86_vm0, %v37_v3  ;;  %2086 = vmatmul.mubr.msk.f32.gmra.mrb[18].mxu1 %vm86_vm0, %v66_v4  ;;  %v2406_v54 = vpack.c.bf16 %v1769_v48, %v1768_v47  ;;  %v2410_v1 = vpack.c.bf16 %v1771_v59, %v1770_v58  ;;  %v1776_v27 = vld [vmem:[%s3163_s1 + $0x160] sm:$0xff]  ;;  %v1777_v29 = vld [vmem:[%s3163_s1 + $0x168] sm:$0xff]  ;;  %v1779_v42 = vld [vmem:[%s3163_s1 + $0x178] sm:$0xff] }
  0x32   :  { %2088 = vmatprep.mubr.msk.f32.mxu1 %vm86_vm0, %v67_v5  ;;  %2393 = vmatpush3.bf16.msra.mxu1 %v2390_v63  ;;  %v1772_v5 = vld [vmem:[%s3163_s1 + $0x140] sm:$0xff]  ;;  %v2422_v37 = vpack.c.bf16 %v1777_v29, %v1776_v27 }
  0x33   :  { %2395 = vmatprep.subr.bf16.mxu1 %v2394_v6  ;;  %2399 = vmatprep.subr.bf16.mxu0 %v2398_v41 }
  0x34   :  { %2044 = vmatmul.mubr.msk.f32.gmra.mrb[22].mxu0 %vm86_vm0, %v38_v7 }
  0x35   :  { %2046 = vmatprep.mubr.msk.f32.mxu0 %vm86_vm0, %v39_v8  ;;  %2089 = vmatmul.mubr.msk.f32.gmra.mrb[20].mxu1 %vm86_vm0, %v68_v9 }
  0x36   :  { %2091 = vmatprep.mubr.msk.f32.mxu1 %vm86_vm0, %v69_v10  ;;  %2397 = vmatpush3.bf16.msra.mxu1 %v2394_v6  ;;  %v1773_v6 = vld [vmem:[%s3163_s1 + $0x148] sm:$0xff] }
  0x37   :  { %2401 = vmatpush3.bf16.msra.mxu0 %v2398_v41  ;;  %v1778_v41 = vld [vmem:[%s3163_s1 + $0x170] sm:$0xff] }
  0x38   :  { %2047 = vmatmul.mubr.msk.f32.gmra.mrb[24].mxu0 %vm86_vm0, %v40_v11  ;;  %2403 = vmatprep.subr.bf16.mxu0 %v2402_v46  ;;  %v2426_v48 = vpack.c.bf16 %v1779_v42, %v1778_v41 }
  0x39   :  { %2049 = vmatprep.mubr.msk.f32.mxu0 %vm86_vm0, %v41_v12  ;;  %2092 = vmatmul.mubr.msk.f32.gmra.mrb[22].mxu1 %vm86_vm0, %v70_v13  ;;  %v2414_v12 = vpack.c.bf16 %v1773_v6, %v1772_v5 }
  0x3a   :  { %2094 = vmatprep.mubr.msk.f32.mxu1 %vm86_vm0, %v71_v14 }
  0x3b   :  { %2405 = vmatpush3.bf16.msra.mxu0 %v2402_v46 }
  0x3c   :  { %2050 = vmatmul.mubr.msk.f32.gmra.mrb[26].mxu0 %vm86_vm0, %v42_v15  ;;  %2407 = vmatprep.subr.bf16.mxu0 %v2406_v54 }
  0x3d   :  { %2052 = vmatprep.mubr.msk.f32.mxu0 %vm86_vm0, %v43_v16  ;;  %2095 = vmatmul.mubr.msk.f32.gmra.mrb[24].mxu1 %vm86_vm0, %v72_v17  ;;  %v1774_v16 = vld [vmem:[%s3163_s1 + $0x150] sm:$0xff]  ;;  %v1775_v17 = vld [vmem:[%s3163_s1 + $0x158] sm:$0xff] }
  0x3e   :  { %2097 = vmatprep.mubr.msk.f32.mxu1 %vm86_vm0, %v73_v18 }
  0x3f   :  { %2409 = vmatpush3.bf16.msra.mxu0 %v2406_v54 }
  0x40   :  { %2053 = vmatmul.mubr.msk.f32.gmra.mrb[28].mxu0 %vm86_vm0, %v44_v19  ;;  %2411 = vmatprep.subr.bf16.mxu0 %v2410_v1 }
  0x41   :  { %2055 = vmatprep.mubr.msk.f32.mxu0 %vm86_vm0, %v45_v20  ;;  %2098 = vmatmul.mubr.msk.f32.gmra.mrb[26].mxu1 %vm86_vm0, %v74_v21 }
  0x42   :  { %2100 = vmatprep.mubr.msk.f32.mxu1 %vm86_vm0, %v75_v22 }
  0x43   :  { %2413 = vmatpush3.bf16.msra.mxu0 %v2410_v1 }
  0x44   :  { %2056 = vmatmul.mubr.msk.f32.gmra.mrb[30].mxu0 %vm86_vm0, %v46_v23  ;;  %2415 = vmatprep.subr.bf16.mxu0 %v2414_v12  ;;  %v2418_v23 = vpack.c.bf16 %v1775_v17, %v1774_v16 }
  0x45   :  { %2101 = vmatmul.mubr.msk.f32.gmra.mrb[28].mxu1 %vm86_vm0, %v76_v24 }
  0x46   :  { %2103 = vmatprep.mubr.msk.f32.mxu1 %vm86_vm0, %v77_v25 }
  0x47   :  { %2417 = vmatpush3.bf16.msra.mxu0 %v2414_v12 }
  0x48   :  { %2419 = vmatprep.subr.bf16.mxu0 %v2418_v23 }
  0x49   :  { %2104 = vmatmul.mubr.msk.f32.gmra.mrb[30].mxu1 %vm86_vm0, %v78_v26 }
  0x4b   :  { %2421 = vmatpush3.bf16.msra.mxu0 %v2418_v23 }
  0x4c   :  { %2423 = vmatprep.subr.bf16.mxu0 %v2422_v37 }
  0x4f   :  { %2425 = vmatpush3.bf16.msra.mxu0 %v2422_v37 }
  0x50   :  { %2427 = vmatprep.subr.bf16.mxu0 %v2426_v48 }
  0x53   :  { %2429 = vmatpush3.bf16.msra.mxu0 %v2426_v48 }
  0xdb   :  { %v2012_v32 = vpop.f32.mrb[0].mxu0  ;;  %v2826_v50 = vpop.f32.mrb[0].mxu1 }
  0xdc   :  { %v351_v33 = vadd.f32 %v2012_v32, %v2802_v31  ;;  %v345_v34 = vpop.f32.mrb[1].mxu0  ;;  %v2828_v51 = vpop.f32.mrb[1].mxu1 }
  0xdd   :  { %v346_v35 = vadd.f32 %v345_v34, %v2802_v31 }
  0xde   :  { %v665_v43 = vmax.f32 %v351_v33, 0.0 }
  0xdf   :  { %v664_v39 = vmax.f32 %v346_v35, 0.0  ;;  %v2015_v40 = vpop.f32.mrb[2].mxu0  ;;  %v2838_v61 = vpop.f32.mrb[2].mxu1 }
  0xe0   :  { %v361_v44 = vadd.f32 %v2015_v40, %v2802_v31  ;;  %v355_v45 = vpop.f32.mrb[3].mxu0  ;;  %v2840_v62 = vpop.f32.mrb[3].mxu1 }
  0xe1   :  { %v356_v49 = vadd.f32 %v355_v45, %v2802_v31  ;;  %2138 = vmatprep.mubr.f32.mxu1 %v664_v39 }
  0xe2   :  { %2139 = vmatmul.mubr.f32.vlgmr.msra.gmra.mrb[32].mxu1 %v665_v43  ;;  %v667_v55 = vmax.f32 %v361_v44, 0.0 }
  0xe3   :  { %v666_v52 = vmax.f32 %v356_v49, 0.0  ;;  %v2018_v53 = vpop.f32.mrb[4].mxu0  ;;  %v2850_v8 = vpop.f32.mrb[4].mxu1 }
  0xe4   :  { %v371_v56 = vadd.f32 %v2018_v53, %v2802_v31  ;;  %v365_v57 = vpop.f32.mrb[5].mxu0  ;;  %v2852_v9 = vpop.f32.mrb[5].mxu1 }
  0xe5   :  { %v366_v60 = vadd.f32 %v365_v57, %v2802_v31  ;;  %2141 = vmatprep.mubr.f32.mxu1 %v666_v52 }
  0xe6   :  { %2142 = vmatmul.mubr.f32.gmra.mrb[34].mxu1 %v667_v55  ;;  %v669_v2 = vmax.f32 %v371_v56, 0.0 }
  0xe7   :  { %v668_v63 = vmax.f32 %v366_v60, 0.0  ;;  %v2021_v0 = vpop.f32.mrb[6].mxu0  ;;  %v2862_v19 = vpop.f32.mrb[6].mxu1 }
  0xe8   :  { %v381_v3 = vadd.f32 %v2021_v0, %v2802_v31  ;;  %v375_v4 = vpop.f32.mrb[7].mxu0  ;;  %v2864_v20 = vpop.f32.mrb[7].mxu1 }
  0xe9   :  { %v376_v7 = vadd.f32 %v375_v4, %v2802_v31  ;;  %2144 = vmatprep.mubr.f32.mxu1 %v668_v63 }
  0xea   :  { %2145 = vmatmul.mubr.f32.gmra.mrb[36].mxu1 %v669_v2  ;;  %v671_v13 = vmax.f32 %v381_v3, 0.0 }
  0xeb   :  { %v670_v10 = vmax.f32 %v376_v7, 0.0  ;;  %v2024_v11 = vpop.f32.mrb[8].mxu0 }
  0xec   :  { %v391_v14 = vadd.f32 %v2024_v11, %v2802_v31  ;;  %v385_v15 = vpop.f32.mrb[9].mxu0 }
  0xed   :  { %v386_v18 = vadd.f32 %v385_v15, %v2802_v31  ;;  %2147 = vmatprep.mubr.f32.mxu1 %v670_v10 }
  0xee   :  { %2148 = vmatmul.mubr.f32.gmra.mrb[38].mxu1 %v671_v13  ;;  %v673_v24 = vmax.f32 %v391_v14, 0.0 }
  0xef   :  { %v672_v21 = vmax.f32 %v386_v18, 0.0  ;;  %v2027_v22 = vpop.f32.mrb[10].mxu0 }
  0xf0   :  { %v401_v25 = vadd.f32 %v2027_v22, %v2802_v31  ;;  %v395_v26 = vpop.f32.mrb[11].mxu0  ;;  %v2874_v33 = vpop.f32.mrb[8].mxu1 }
  0xf1   :  { %v396_v32 = vadd.f32 %v395_v26, %v2802_v31  ;;  %2150 = vmatprep.mubr.f32.mxu1 %v672_v21  ;;  %v2876_v34 = vpop.f32.mrb[9].mxu1 }
  0xf2   :  { %2151 = vmatmul.mubr.f32.gmra.mrb[40].mxu1 %v673_v24  ;;  %v675_v38 = vmax.f32 %v401_v25, 0.0 }
  0xf3   :  { %v674_v35 = vmax.f32 %v396_v32, 0.0  ;;  %v2030_v36 = vpop.f32.mrb[12].mxu0 }
  0xf4   :  { %v411_v39 = vadd.f32 %v2030_v36, %v2802_v31  ;;  %v405_v40 = vpop.f32.mrb[13].mxu0  ;;  %v2886_v44 = vpop.f32.mrb[10].mxu1 }
  0xf5   :  { %v406_v43 = vadd.f32 %v405_v40, %v2802_v31  ;;  %2153 = vmatprep.mubr.f32.mxu1 %v674_v35  ;;  %v2888_v45 = vpop.f32.mrb[11].mxu1 }
  0xf6   :  { %2154 = vmatmul.mubr.f32.gmra.mrb[42].mxu1 %v675_v38  ;;  %v677_v49 = vmax.f32 %v411_v39, 0.0 }
  0xf7   :  { %v676_v46 = vmax.f32 %v406_v43, 0.0  ;;  %v2033_v47 = vpop.f32.mrb[14].mxu0 }
  0xf8   :  { %v421_v52 = vadd.f32 %v2033_v47, %v2802_v31  ;;  %v415_v53 = vpop.f32.mrb[15].mxu0  ;;  %v2892_v55 = vpop.f32.mrb[12].mxu1 }
  0xf9   :  { %v416_v54 = vadd.f32 %v415_v53, %v2802_v31  ;;  %2156 = vmatprep.mubr.f32.mxu1 %v676_v46  ;;  %v2894_v56 = vpop.f32.mrb[13].mxu1 }
  0xfa   :  { %2157 = vmatmul.mubr.f32.gmra.mrb[44].mxu1 %v677_v49  ;;  %v679_v59 = vmax.f32 %v421_v52, 0.0 }
  0xfb   :  { %v678_v57 = vmax.f32 %v416_v54, 0.0  ;;  %v2036_v58 = vpop.f32.mrb[16].mxu0 }
  0xfc   :  { %v431_v60 = vadd.f32 %v2036_v58, %v2802_v31  ;;  %v425_v63 = vpop.f32.mrb[17].mxu0  ;;  %v2898_v1 = vpop.f32.mrb[14].mxu1 }
  0xfd   :  { %v426_v0 = vadd.f32 %v425_v63, %v2802_v31  ;;  %2159 = vmatprep.mubr.f32.mxu1 %v678_v57  ;;  %v2900_v2 = vpop.f32.mrb[15].mxu1 }
  0xfe   :  { %2160 = vmatmul.mubr.f32.gmra.mrb[46].mxu1 %v679_v59  ;;  %v681_v5 = vmax.f32 %v431_v60, 0.0 }
  0xff   :  { %v680_v3 = vmax.f32 %v426_v0, 0.0  ;;  %v2039_v4 = vpop.f32.mrb[18].mxu0 }
 0x100   :  { %v441_v6 = vadd.f32 %v2039_v4, %v2802_v31  ;;  %v435_v7 = vpop.f32.mrb[19].mxu0  ;;  %v2904_v11 = vpop.f32.mrb[16].mxu1 }
 0x101   :  { %v436_v10 = vadd.f32 %v435_v7, %v2802_v31  ;;  %2162 = vmatprep.mubr.f32.mxu1 %v680_v3  ;;  %v2906_v12 = vpop.f32.mrb[17].mxu1 }
 0x102   :  { %2163 = vmatmul.mubr.f32.gmra.mrb[48].mxu1 %v681_v5  ;;  %v683_v15 = vmax.f32 %v441_v6, 0.0 }
 0x103   :  { %v682_v13 = vmax.f32 %v436_v10, 0.0  ;;  %v2042_v14 = vpop.f32.mrb[20].mxu0  ;;  %v506_v10 = vadd.f32 %v2828_v51, %v2802_v31  ;;  %v511_v51 = vadd.f32 %v2826_v50, %v2802_v31  ;;  %v536_v50 = vadd.f32 %v2864_v20, %v2802_v31 }
 0x104   :  { %v451_v16 = vadd.f32 %v2042_v14, %v2802_v31  ;;  %v445_v17 = vpop.f32.mrb[21].mxu0  ;;  %v2910_v21 = vpop.f32.mrb[18].mxu1  ;;  %v556_v20 = vadd.f32 %v2888_v45, %v2802_v31  ;;  %v576_v45 = vadd.f32 %v2900_v2, %v2802_v31 }
 0x105   :  { %v446_v18 = vadd.f32 %v445_v17, %v2802_v31  ;;  %2165 = vmatprep.mubr.f32.mxu1 %v682_v13  ;;  %v2912_v22 = vpop.f32.mrb[19].mxu1 }
 0x106   :  { %2166 = vmatmul.mubr.f32.gmra.mrb[50].mxu1 %v683_v15  ;;  %v685_v25 = vmax.f32 %v451_v16, 0.0  ;;  %v596_v2 = vadd.f32 %v2912_v22, %v2802_v31 }
 0x107   :  { %v684_v23 = vmax.f32 %v446_v18, 0.0  ;;  %v2045_v24 = vpop.f32.mrb[22].mxu0 }
 0x108   :  { %v461_v26 = vadd.f32 %v2045_v24, %v2802_v31  ;;  %v455_v27 = vpop.f32.mrb[23].mxu0  ;;  %v2916_v32 = vpop.f32.mrb[20].mxu1  ;;  %v696_v24 = vmax.f32 %v506_v10, 0.0 }
 0x109   :  { %v456_v29 = vadd.f32 %v455_v27, %v2802_v31  ;;  %2168 = vmatprep.mubr.f32.mxu1 %v684_v23  ;;  %v2918_v35 = vpop.f32.mrb[21].mxu1 }
 0x10a   :  { %2169 = vmatmul.mubr.f32.gmra.mrb[52].mxu1 %v685_v25  ;;  %v687_v38 = vmax.f32 %v461_v26, 0.0  ;;  %v516_v25 = vadd.f32 %v2840_v62, %v2802_v31 }
 0x10b   :  { %v686_v36 = vmax.f32 %v456_v29, 0.0  ;;  %v2048_v37 = vpop.f32.mrb[24].mxu0 }
 0x10c   :  { %v471_v39 = vadd.f32 %v2048_v37, %v2802_v31  ;;  %v465_v40 = vpop.f32.mrb[25].mxu0  ;;  %v2922_v42 = vpop.f32.mrb[22].mxu1  ;;  %v526_v37 = vadd.f32 %v2852_v9, %v2802_v31  ;;  %v546_v9 = vadd.f32 %v2876_v34, %v2802_v31  ;;  %v566_v34 = vadd.f32 %v2894_v56, %v2802_v31 }
 0x10d   :  { %v466_v41 = vadd.f32 %v465_v40, %v2802_v31  ;;  %2171 = vmatprep.mubr.f32.mxu1 %v686_v36  ;;  %v2924_v43 = vpop.f32.mrb[23].mxu1  ;;  %v698_v36 = vmax.f32 %v516_v25, 0.0  ;;  %v586_v56 = vadd.f32 %v2906_v12, %v2802_v31  ;;  %v606_v12 = vadd.f32 %v2918_v35, %v2802_v31 }
 0x10e   :  { %2172 = vmatmul.mubr.f32.gmra.mrb[54].mxu1 %v687_v38  ;;  %v689_v48 = vmax.f32 %v471_v39, 0.0  ;;  %v697_v38 = vmax.f32 %v511_v51, 0.0  ;;  %v521_v39 = vadd.f32 %v2838_v61, %v2802_v31  ;;  %v700_v62 = vmax.f32 %v526_v37, 0.0 }
 0x10f   :  { %v688_v46 = vmax.f32 %v466_v41, 0.0  ;;  %v2051_v47 = vpop.f32.mrb[26].mxu0  ;;  %v531_v41 = vadd.f32 %v2850_v8, %v2802_v31  ;;  %v541_v61 = vadd.f32 %v2862_v19, %v2802_v31  ;;  %v551_v8 = vadd.f32 %v2874_v33, %v2802_v31 }
 0x110   :  { %v481_v49 = vadd.f32 %v2051_v47, %v2802_v31  ;;  %v475_v52 = vpop.f32.mrb[27].mxu0  ;;  %v2928_v54 = vpop.f32.mrb[24].mxu1  ;;  %v699_v40 = vmax.f32 %v521_v39, 0.0  ;;  %v561_v19 = vadd.f32 %v2886_v44, %v2802_v31  ;;  %v571_v33 = vadd.f32 %v2892_v55, %v2802_v31 }
 0x111   :  { %v476_v53 = vadd.f32 %v475_v52, %v2802_v31  ;;  %2174 = vmatprep.mubr.f32.mxu1 %v688_v46  ;;  %v2930_v57 = vpop.f32.mrb[25].mxu1  ;;  %v702_v46 = vmax.f32 %v536_v50, 0.0  ;;  %v701_v47 = vmax.f32 %v531_v41, 0.0  ;;  %v706_v52 = vmax.f32 %v556_v20, 0.0 }
 0x112   :  { %2175 = vmatmul.mubr.f32.gmra.mrb[56].mxu1 %v689_v48  ;;  %v691_v60 = vmax.f32 %v481_v49, 0.0  ;;  %v704_v48 = vmax.f32 %v546_v9, 0.0  ;;  %v703_v49 = vmax.f32 %v541_v61, 0.0  ;;  %v581_v44 = vadd.f32 %v2898_v1, %v2802_v31 }
 0x113   :  { %v690_v58 = vmax.f32 %v476_v53, 0.0  ;;  %v2054_v59 = vpop.f32.mrb[28].mxu0  ;;  %v705_v53 = vmax.f32 %v551_v8, 0.0  ;;  %v591_v55 = vadd.f32 %v2904_v11, %v2802_v31  ;;  %v601_v1 = vadd.f32 %v2910_v21, %v2802_v31 }
 0x114   :  { %v491_v63 = vadd.f32 %v2054_v59, %v2802_v31  ;;  %v485_v0 = vpop.f32.mrb[29].mxu0  ;;  %v2934_v4 = vpop.f32.mrb[26].mxu1  ;;  %v707_v59 = vmax.f32 %v561_v19, 0.0  ;;  %v716_v10 = vmax.f32 %v606_v12, 0.0  ;;  %v616_v22 = vadd.f32 %v2924_v43, %v2802_v31 }
 0x115   :  { %v486_v3 = vadd.f32 %v485_v0, %v2802_v31  ;;  %2177 = vmatprep.mubr.f32.mxu1 %v690_v58  ;;  %v2936_v5 = vpop.f32.mrb[27].mxu1  ;;  %v708_v58 = vmax.f32 %v566_v34, 0.0  ;;  %v712_v0 = vmax.f32 %v586_v56, 0.0  ;;  %v611_v11 = vadd.f32 %v2916_v32, %v2802_v31 }
 0x116   :  { %2178 = vmatmul.mubr.f32.gmra.mrb[58].mxu1 %v691_v60  ;;  %v693_v13 = vmax.f32 %v491_v63, 0.0  ;;  %v710_v60 = vmax.f32 %v576_v45, 0.0  ;;  %v709_v63 = vmax.f32 %v571_v33, 0.0  ;;  %v626_v35 = vadd.f32 %v2930_v57, %v2802_v31 }
 0x117   :  { %v692_v6 = vmax.f32 %v486_v3, 0.0  ;;  %v2057_v7 = vpop.f32.mrb[30].mxu0  ;;  %v711_v3 = vmax.f32 %v581_v44, 0.0  ;;  %v621_v21 = vadd.f32 %v2922_v42, %v2802_v31  ;;  %v636_v43 = vadd.f32 %v2936_v5, %v2802_v31 }
 0x118   :  { %v501_v14 = vadd.f32 %v2057_v7, %v2802_v31  ;;  %v495_v15 = vpop.f32.mrb[31].mxu0  ;;  %v2942_v17 = vpop.f32.mrb[28].mxu1  ;;  %v713_v7 = vmax.f32 %v591_v55, 0.0  ;;  %v631_v32 = vadd.f32 %v2928_v54, %v2802_v31  ;;  %v641_v42 = vadd.f32 %v2934_v4, %v2802_v31 }
 0x119   :  { %v496_v16 = vadd.f32 %v495_v15, %v2802_v31  ;;  %2180 = vmatprep.mubr.f32.mxu1 %v692_v6  ;;  %v2944_v18 = vpop.f32.mrb[29].mxu1  ;;  %v714_v6 = vmax.f32 %v596_v2, 0.0  ;;  %v717_v15 = vmax.f32 %v611_v11, 0.0  ;;  %v651_v54 = vadd.f32 %v2942_v17, %v2802_v31 }
 0x11a   :  { %2181 = vmatmul.mubr.f32.gmra.mrb[60].mxu1 %v693_v13  ;;  %v695_v26 = vmax.f32 %v501_v14, 0.0  ;;  %v715_v13 = vmax.f32 %v601_v1, 0.0  ;;  %v718_v14 = vmax.f32 %v616_v22, 0.0  ;;  %v646_v57 = vadd.f32 %v2944_v18, %v2802_v31 }
 0x11b   :  { %v694_v23 = vmax.f32 %v496_v16, 0.0  ;;  %v720_v16 = vmax.f32 %v626_v35, 0.0  ;;  %v721_v25 = vmax.f32 %v631_v32, 0.0  ;;  %v723_v51 = vmax.f32 %v641_v42, 0.0 }
 0x11c   :  { %v2950_v27 = vpop.f32.mrb[30].mxu1  ;;  %v725_v37 = vmax.f32 %v651_v54, 0.0 }
 0x11d   :  { %2183 = vmatprep.mubr.f32.mxu1 %v694_v23  ;;  %v2952_v29 = vpop.f32.mrb[31].mxu1  ;;  %v719_v23 = vmax.f32 %v621_v21, 0.0  ;;  %v661_v18 = vadd.f32 %v2950_v27, %v2802_v31 }
 0x11e   :  { %2184 = vmatmul.mubr.f32.gmra.mrb[62].mxu1 %v695_v26  ;;  %v724_v26 = vmax.f32 %v646_v57, 0.0  ;;  %v656_v5 = vadd.f32 %v2952_v29, %v2802_v31 }
 0x11f   :  { %2186 = vmatprep.mubr.f32.mxu1 %v696_v24  ;;  %v722_v24 = vmax.f32 %v636_v43, 0.0  ;;  %v727_v4 = vmax.f32 %v661_v18, 0.0 }
 0x122   :  { %2187 = vmatmul.mubr.f32.gmra.mrb[64].mxu1 %v697_v38  ;;  %v747_v38 = vsub.s32 1, %v2793_v28 }
 0x123   :  { %2189 = vmatprep.mubr.f32.mxu1 %v698_v36  ;;  %v726_v36 = vmax.f32 %v656_v5, 0.0 }
 0x124   :  { %v3014_v39 = vrot.slane %v2799_v30, %v747_v38 }
 0x126   :  { %2190 = vmatmul.mubr.f32.gmra.mrb[66].mxu1 %v699_v40 }
 0x127   :  { %2192 = vmatprep.mubr.f32.mxu1 %v700_v62 }
 0x12a   :  { %2193 = vmatmul.mubr.f32.gmra.mrb[68].mxu1 %v701_v47 }
 0x12b   :  { %2195 = vmatprep.mubr.f32.mxu1 %v702_v46 }
 0x12e   :  { %2196 = vmatmul.mubr.f32.gmra.mrb[70].mxu1 %v703_v49 }
 0x12f   :  { %2198 = vmatprep.mubr.f32.mxu1 %v704_v48 }
 0x132   :  { %2199 = vmatmul.mubr.f32.gmra.mrb[72].mxu1 %v705_v53 }
 0x133   :  { %2201 = vmatprep.mubr.f32.mxu1 %v706_v52 }
 0x136   :  { %2202 = vmatmul.mubr.f32.gmra.mrb[74].mxu1 %v707_v59 }
 0x137   :  { %2204 = vmatprep.mubr.f32.mxu1 %v708_v58 }
 0x13a   :  { %2205 = vmatmul.mubr.f32.gmra.mrb[76].mxu1 %v709_v63 }
 0x13b   :  { %2207 = vmatprep.mubr.f32.mxu1 %v710_v60 }
 0x13e   :  { %2208 = vmatmul.mubr.f32.gmra.mrb[78].mxu1 %v711_v3 }
 0x13f   :  { %2210 = vmatprep.mubr.f32.mxu1 %v712_v0 }
 0x142   :  { %2211 = vmatmul.mubr.f32.gmra.mrb[80].mxu1 %v713_v7 }
 0x143   :  { %2213 = vmatprep.mubr.f32.mxu1 %v714_v6 }
 0x146   :  { %2214 = vmatmul.mubr.f32.gmra.mrb[82].mxu1 %v715_v13 }
 0x147   :  { %2216 = vmatprep.mubr.f32.mxu1 %v716_v10 }
 0x14a   :  { %2217 = vmatmul.mubr.f32.gmra.mrb[84].mxu1 %v717_v15 }
 0x14b   :  { %2219 = vmatprep.mubr.f32.mxu1 %v718_v14 }
 0x14e   :  { %2220 = vmatmul.mubr.f32.gmra.mrb[86].mxu1 %v719_v23 }
 0x14f   :  { %2222 = vmatprep.mubr.f32.mxu1 %v720_v16 }
 0x152   :  { %2223 = vmatmul.mubr.f32.gmra.mrb[88].mxu1 %v721_v25 }
 0x153   :  { %2225 = vmatprep.mubr.f32.mxu1 %v722_v24 }
 0x156   :  { %2226 = vmatmul.mubr.f32.gmra.mrb[90].mxu1 %v723_v51 }
 0x157   :  { %2228 = vmatprep.mubr.f32.mxu1 %v724_v26 }
 0x15a   :  { %2229 = vmatmul.mubr.f32.gmra.mrb[92].mxu1 %v725_v37 }
 0x15b   :  { %2231 = vmatprep.mubr.f32.mxu1 %v726_v36 }
 0x15e   :  { %2232 = vmatmul.mubr.f32.gmra.mrb[94].mxu1 %v727_v4 }
 0x1b5   :  { %v2140_v29 = vpop.f32.mrb[32].mxu1 }
 0x1b6   :  { %v821_v62 = vadd.f32 %v2140_v29, %v3014_v39  ;;  %v815_v17 = vpop.f32.mrb[33].mxu1 }
 0x1b7   :  { %v816_v50 = vadd.f32 %v815_v17, %v3014_v39 }
 0x1b8   :  { %v1135_v46 = vmax.f32 %v821_v62, 0.0 }
 0x1b9   :  { %v1134_v40 = vmax.f32 %v816_v50, 0.0  ;;  %v2143_v41 = vpop.f32.mrb[34].mxu1 }
 0x1ba   :  { %v831_v31 = vadd.f32 %v2143_v41, %v3014_v39  ;;  %v825_v27 = vpop.f32.mrb[35].mxu1 }
 0x1bb   :  { %v826_v9 = vadd.f32 %v825_v27, %v3014_v39  ;;  %2266 = vmatprep.mubr.f32.mxu0 %v1134_v40 }
 0x1bc   :  { %2267 = vmatmul.mubr.f32.vlgmr.msra.gmra.mrb[32].mxu0 %v1135_v46  ;;  %v1137_v30 = vmax.f32 %v831_v31, 0.0 }
 0x1bd   :  { %v1136_v47 = vmax.f32 %v826_v9, 0.0  ;;  %v2146_v61 = vpop.f32.mrb[36].mxu1 }
 0x1be   :  { %v841_v48 = vadd.f32 %v2146_v61, %v3014_v39  ;;  %v835_v20 = vpop.f32.mrb[37].mxu1 }
 0x1bf   :  { %v836_v49 = vadd.f32 %v835_v20, %v3014_v39  ;;  %2269 = vmatprep.mubr.f32.mxu0 %v1136_v47 }
 0x1c0   :  { %2270 = vmatmul.mubr.f32.gmra.mrb[34].mxu0 %v1137_v30  ;;  %v1139_v34 = vmax.f32 %v841_v48, 0.0 }
 0x1c1   :  { %v1138_v8 = vmax.f32 %v836_v49, 0.0  ;;  %v2149_v52 = vpop.f32.mrb[38].mxu1 }
 0x1c2   :  { %v851_v53 = vadd.f32 %v2149_v52, %v3014_v39  ;;  %v845_v19 = vpop.f32.mrb[39].mxu1 }
 0x1c3   :  { %v846_v58 = vadd.f32 %v845_v19, %v3014_v39  ;;  %2272 = vmatprep.mubr.f32.mxu0 %v1138_v8 }
 0x1c4   :  { %2273 = vmatmul.mubr.f32.gmra.mrb[36].mxu0 %v1139_v34  ;;  %v1141_v33 = vmax.f32 %v851_v53, 0.0 }
 0x1c5   :  { %v1140_v45 = vmax.f32 %v846_v58, 0.0  ;;  %v2152_v59 = vpop.f32.mrb[40].mxu1 }
 0x1c6   :  { %v861_v60 = vadd.f32 %v2152_v59, %v3014_v39  ;;  %v855_v56 = vpop.f32.mrb[41].mxu1 }
 0x1c7   :  { %v856_v63 = vadd.f32 %v855_v56, %v3014_v39  ;;  %2275 = vmatprep.mubr.f32.mxu0 %v1140_v45 }
 0x1c8   :  { %2276 = vmatmul.mubr.f32.gmra.mrb[38].mxu0 %v1141_v33  ;;  %v1143_v2 = vmax.f32 %v861_v60, 0.0 }
 0x1c9   :  { %v1142_v44 = vmax.f32 %v856_v63, 0.0  ;;  %v2155_v0 = vpop.f32.mrb[42].mxu1 }
 0x1ca   :  { %v871_v3 = vadd.f32 %v2155_v0, %v3014_v39  ;;  %v865_v55 = vpop.f32.mrb[43].mxu1 }
 0x1cb   :  { %v866_v6 = vadd.f32 %v865_v55, %v3014_v39  ;;  %2278 = vmatprep.mubr.f32.mxu0 %v1142_v44 }
 0x1cc   :  { %2279 = vmatmul.mubr.f32.gmra.mrb[40].mxu0 %v1143_v2  ;;  %v1145_v1 = vmax.f32 %v871_v3, 0.0 }
 0x1cd   :  { %v1144_v12 = vmax.f32 %v866_v6, 0.0  ;;  %v2158_v7 = vpop.f32.mrb[44].mxu1 }
 0x1ce   :  { %v881_v10 = vadd.f32 %v2158_v7, %v3014_v39  ;;  %v875_v22 = vpop.f32.mrb[45].mxu1 }
 0x1cf   :  { %v876_v13 = vadd.f32 %v875_v22, %v3014_v39  ;;  %2281 = vmatprep.mubr.f32.mxu0 %v1144_v12 }
 0x1d0   :  { %2282 = vmatmul.mubr.f32.gmra.mrb[42].mxu0 %v1145_v1  ;;  %v1147_v35 = vmax.f32 %v881_v10, 0.0 }
 0x1d1   :  { %v1146_v11 = vmax.f32 %v876_v13, 0.0  ;;  %v2161_v14 = vpop.f32.mrb[46].mxu1 }
 0x1d2   :  { %v891_v15 = vadd.f32 %v2161_v14, %v3014_v39  ;;  %v885_v21 = vpop.f32.mrb[47].mxu1 }
 0x1d3   :  { %v886_v16 = vadd.f32 %v885_v21, %v3014_v39  ;;  %2284 = vmatprep.mubr.f32.mxu0 %v1146_v11 }
 0x1d4   :  { %2285 = vmatmul.mubr.f32.gmra.mrb[44].mxu0 %v1147_v35  ;;  %v1149_v32 = vmax.f32 %v891_v15, 0.0 }
 0x1d5   :  { %v1148_v43 = vmax.f32 %v886_v16, 0.0  ;;  %v2164_v23 = vpop.f32.mrb[48].mxu1 }
 0x1d6   :  { %v901_v24 = vadd.f32 %v2164_v23, %v3014_v39  ;;  %v895_v57 = vpop.f32.mrb[49].mxu1 }
 0x1d7   :  { %v896_v25 = vadd.f32 %v895_v57, %v3014_v39  ;;  %2287 = vmatprep.mubr.f32.mxu0 %v1148_v43 }
 0x1d8   :  { %2288 = vmatmul.mubr.f32.gmra.mrb[46].mxu0 %v1149_v32  ;;  %v1151_v5 = vmax.f32 %v901_v24, 0.0 }
 0x1d9   :  { %v1150_v42 = vmax.f32 %v896_v25, 0.0  ;;  %v2167_v26 = vpop.f32.mrb[50].mxu1 }
 0x1da   :  { %v911_v51 = vadd.f32 %v2167_v26, %v3014_v39  ;;  %v905_v54 = vpop.f32.mrb[51].mxu1 }
 0x1db   :  { %v906_v36 = vadd.f32 %v905_v54, %v3014_v39  ;;  %2290 = vmatprep.mubr.f32.mxu0 %v1150_v42 }
 0x1dc   :  { %2291 = vmatmul.mubr.f32.gmra.mrb[48].mxu0 %v1151_v5  ;;  %v1153_v4 = vmax.f32 %v911_v51, 0.0 }
 0x1dd   :  { %v1152_v37 = vmax.f32 %v906_v36, 0.0  ;;  %v2170_v18 = vpop.f32.mrb[52].mxu1 }
 0x1de   :  { %v921_v38 = vadd.f32 %v2170_v18, %v3014_v39  ;;  %v915_v29 = vpop.f32.mrb[53].mxu1 }
 0x1df   :  { %v916_v62 = vadd.f32 %v915_v29, %v3014_v39  ;;  %2293 = vmatprep.mubr.f32.mxu0 %v1152_v37 }
 0x1e0   :  { %2294 = vmatmul.mubr.f32.gmra.mrb[50].mxu0 %v1153_v4  ;;  %v1155_v40 = vmax.f32 %v921_v38, 0.0 }
 0x1e1   :  { %v1154_v17 = vmax.f32 %v916_v62, 0.0  ;;  %v2173_v50 = vpop.f32.mrb[54].mxu1 }
 0x1e2   :  { %v931_v41 = vadd.f32 %v2173_v50, %v3014_v39  ;;  %v925_v46 = vpop.f32.mrb[55].mxu1 }
 0x1e3   :  { %v926_v31 = vadd.f32 %v925_v46, %v3014_v39  ;;  %2296 = vmatprep.mubr.f32.mxu0 %v1154_v17 }
 0x1e4   :  { %2297 = vmatmul.mubr.f32.gmra.mrb[52].mxu0 %v1155_v40  ;;  %v1157_v47 = vmax.f32 %v931_v41, 0.0 }
 0x1e5   :  { %v1156_v27 = vmax.f32 %v926_v31, 0.0  ;;  %v2176_v9 = vpop.f32.mrb[56].mxu1 }
 0x1e6   :  { %v941_v61 = vadd.f32 %v2176_v9, %v3014_v39  ;;  %v935_v30 = vpop.f32.mrb[57].mxu1 }
 0x1e7   :  { %v936_v48 = vadd.f32 %v935_v30, %v3014_v39  ;;  %2299 = vmatprep.mubr.f32.mxu0 %v1156_v27 }
 0x1e8   :  { %2300 = vmatmul.mubr.f32.gmra.mrb[54].mxu0 %v1157_v47  ;;  %v1159_v8 = vmax.f32 %v941_v61, 0.0 }
 0x1e9   :  { %v1158_v20 = vmax.f32 %v936_v48, 0.0  ;;  %v2179_v49 = vpop.f32.mrb[58].mxu1 }
 0x1ea   :  { %v951_v52 = vadd.f32 %v2179_v49, %v3014_v39  ;;  %v945_v34 = vpop.f32.mrb[59].mxu1 }
 0x1eb   :  { %v946_v53 = vadd.f32 %v945_v34, %v3014_v39  ;;  %2302 = vmatprep.mubr.f32.mxu0 %v1158_v20 }
 0x1ec   :  { %2303 = vmatmul.mubr.f32.gmra.mrb[56].mxu0 %v1159_v8  ;;  %v1161_v45 = vmax.f32 %v951_v52, 0.0 }
 0x1ed   :  { %v1160_v19 = vmax.f32 %v946_v53, 0.0  ;;  %v2182_v58 = vpop.f32.mrb[60].mxu1 }
 0x1ee   :  { %v961_v59 = vadd.f32 %v2182_v58, %v3014_v39  ;;  %v955_v33 = vpop.f32.mrb[61].mxu1 }
 0x1ef   :  { %v956_v60 = vadd.f32 %v955_v33, %v3014_v39  ;;  %2305 = vmatprep.mubr.f32.mxu0 %v1160_v19 }
 0x1f0   :  { %2306 = vmatmul.mubr.f32.gmra.mrb[58].mxu0 %v1161_v45  ;;  %v1163_v44 = vmax.f32 %v961_v59, 0.0 }
 0x1f1   :  { %v1162_v56 = vmax.f32 %v956_v60, 0.0  ;;  %v2185_v63 = vpop.f32.mrb[62].mxu1 }
 0x1f2   :  { %v971_v0 = vadd.f32 %v2185_v63, %v3014_v39  ;;  %v965_v2 = vpop.f32.mrb[63].mxu1 }
 0x1f3   :  { %v966_v3 = vadd.f32 %v965_v2, %v3014_v39  ;;  %2308 = vmatprep.mubr.f32.mxu0 %v1162_v56 }
 0x1f4   :  { %2309 = vmatmul.mubr.f32.gmra.mrb[60].mxu0 %v1163_v44  ;;  %v1165_v12 = vmax.f32 %v971_v0, 0.0 }
 0x1f5   :  { %v1164_v55 = vmax.f32 %v966_v3, 0.0  ;;  %v2188_v6 = vpop.f32.mrb[64].mxu1 }
 0x1f6   :  { %v981_v7 = vadd.f32 %v2188_v6, %v3014_v39  ;;  %v975_v1 = vpop.f32.mrb[65].mxu1 }
 0x1f7   :  { %v976_v10 = vadd.f32 %v975_v1, %v3014_v39  ;;  %2311 = vmatprep.mubr.f32.mxu0 %v1164_v55 }
 0x1f8   :  { %2312 = vmatmul.mubr.f32.gmra.mrb[62].mxu0 %v1165_v12  ;;  %v1167_v11 = vmax.f32 %v981_v7, 0.0 }
 0x1f9   :  { %v1166_v22 = vmax.f32 %v976_v10, 0.0  ;;  %v2191_v13 = vpop.f32.mrb[66].mxu1 }
 0x1fa   :  { %v991_v14 = vadd.f32 %v2191_v13, %v3014_v39  ;;  %v985_v35 = vpop.f32.mrb[67].mxu1 }
 0x1fb   :  { %v986_v15 = vadd.f32 %v985_v35, %v3014_v39  ;;  %2314 = vmatprep.mubr.f32.mxu0 %v1166_v22 }
 0x1fc   :  { %2315 = vmatmul.mubr.f32.gmra.mrb[64].mxu0 %v1167_v11  ;;  %v1169_v43 = vmax.f32 %v991_v14, 0.0 }
 0x1fd   :  { %v1168_v21 = vmax.f32 %v986_v15, 0.0  ;;  %v2194_v16 = vpop.f32.mrb[68].mxu1 }
 0x1fe   :  { %v1001_v23 = vadd.f32 %v2194_v16, %v3014_v39  ;;  %v995_v32 = vpop.f32.mrb[69].mxu1 }
 0x1ff   :  { %v996_v24 = vadd.f32 %v995_v32, %v3014_v39  ;;  %2317 = vmatprep.mubr.f32.mxu0 %v1168_v21 }
 0x200   :  { %2318 = vmatmul.mubr.f32.gmra.mrb[66].mxu0 %v1169_v43  ;;  %v1171_v42 = vmax.f32 %v1001_v23, 0.0 }
 0x201   :  { %v1170_v57 = vmax.f32 %v996_v24, 0.0  ;;  %v2197_v25 = vpop.f32.mrb[70].mxu1 }
 0x202   :  { %v1011_v26 = vadd.f32 %v2197_v25, %v3014_v39  ;;  %v1005_v5 = vpop.f32.mrb[71].mxu1 }
 0x203   :  { %v1006_v51 = vadd.f32 %v1005_v5, %v3014_v39  ;;  %2320 = vmatprep.mubr.f32.mxu0 %v1170_v57 }
 0x204   :  { %2321 = vmatmul.mubr.f32.gmra.mrb[68].mxu0 %v1171_v42  ;;  %v1173_v37 = vmax.f32 %v1011_v26, 0.0 }
 0x205   :  { %v1172_v54 = vmax.f32 %v1006_v51, 0.0  ;;  %v2200_v36 = vpop.f32.mrb[72].mxu1 }
 0x206   :  { %v1021_v18 = vadd.f32 %v2200_v36, %v3014_v39  ;;  %v1015_v4 = vpop.f32.mrb[73].mxu1 }
 0x207   :  { %v1016_v38 = vadd.f32 %v1015_v4, %v3014_v39  ;;  %2323 = vmatprep.mubr.f32.mxu0 %v1172_v54 }
 0x208   :  { %2324 = vmatmul.mubr.f32.gmra.mrb[70].mxu0 %v1173_v37  ;;  %v1175_v17 = vmax.f32 %v1021_v18, 0.0 }
 0x209   :  { %v1174_v29 = vmax.f32 %v1016_v38, 0.0  ;;  %v2203_v62 = vpop.f32.mrb[74].mxu1 }
 0x20a   :  { %v1031_v50 = vadd.f32 %v2203_v62, %v3014_v39  ;;  %v1025_v40 = vpop.f32.mrb[75].mxu1 }
 0x20b   :  { %v1026_v41 = vadd.f32 %v1025_v40, %v3014_v39  ;;  %2326 = vmatprep.mubr.f32.mxu0 %v1174_v29 }
 0x20c   :  { %2327 = vmatmul.mubr.f32.gmra.mrb[72].mxu0 %v1175_v17  ;;  %v1177_v27 = vmax.f32 %v1031_v50, 0.0 }
 0x20d   :  { %v1176_v46 = vmax.f32 %v1026_v41, 0.0  ;;  %v2206_v31 = vpop.f32.mrb[76].mxu1 }
 0x20e   :  { %v1041_v9 = vadd.f32 %v2206_v31, %v3014_v39  ;;  %v1035_v47 = vpop.f32.mrb[77].mxu1  ;;  %v2435_v31 = vld [vmem:[%s3164_s2] sm:$0x7]  ;;  %s2460_s2 = smov [#allocation2]  }
 0x20f   :  { %v1036_v61 = vadd.f32 %v1035_v47, %v3014_v39  ;;  %2329 = vmatprep.mubr.f32.mxu0 %v1176_v46  ;;  %v1217_v46 = vsub.s32 2, %v2793_v28  ;;  %s1673_s20 = sshll.u32 %s2460_s2, 4  ;;  %s1674_s20 = int_to_ptr.vmem [resolvable:$true] %s1673_s20 }
 0x210   :  { %2330 = vmatmul.mubr.f32.gmra.mrb[74].mxu0 %v1177_v27  ;;  %v1179_v20 = vmax.f32 %v1041_v9, 0.0  ;;  %s2436_s21 = scalar_lea.vmem %s1674_s20, 8192  ;;  %p2441_p1 = scmp.lt.s32.totalorder %s1674_s20, %s1674_s20 }
 0x211   :  { %v1178_v30 = vmax.f32 %v1036_v61, 0.0  ;;  %v2209_v48 = vpop.f32.mrb[78].mxu1  ;;  %v3084_v27 = vrot.slane %v2435_v31, %v1217_v46  ;;  %p2437_p0 = scmp.ne.s32.totalorder %s1674_s20, %s2436_s21  ;;  %p2442_p2 = scmp.lt.s32.totalorder %s2436_s21, %s2436_s21 }
 0x212   :  { %v1051_v49 = vadd.f32 %v2209_v48, %v3014_v39  ;;  %v1045_v8 = vpop.f32.mrb[79].mxu1 }
 0x213   :  { %v1046_v52 = vadd.f32 %v1045_v8, %v3014_v39  ;;  %2332 = vmatprep.mubr.f32.mxu0 %v1178_v30  ;;  %p2443_p3 = por %p2442_p2, %p2441_p1 }
 0x214   :  { %2333 = vmatmul.mubr.f32.gmra.mrb[76].mxu0 %v1179_v20  ;;  %v1181_v19 = vmax.f32 %v1051_v49, 0.0 }
 0x215   :  { %v1180_v34 = vmax.f32 %v1046_v52, 0.0  ;;  %v2212_v53 = vpop.f32.mrb[80].mxu1  ;;  %p2444_p4 = pnand %p2443_p3, %p2437_p0 }
 0x216   :  { %v1061_v58 = vadd.f32 %v2212_v53, %v3014_v39  ;;  %v1055_v45 = vpop.f32.mrb[81].mxu1 }
 0x217   :  { %v1056_v59 = vadd.f32 %v1055_v45, %v3014_v39  ;;  %2335 = vmatprep.mubr.f32.mxu0 %v1180_v34 }
 0x218   :  { %2336 = vmatmul.mubr.f32.gmra.mrb[78].mxu0 %v1181_v19  ;;  %v1183_v56 = vmax.f32 %v1061_v58, 0.0 }
 0x219   :  { %v1182_v33 = vmax.f32 %v1056_v59, 0.0  ;;  %v2215_v60 = vpop.f32.mrb[82].mxu1 }
 0x21a   :  { %v1071_v63 = vadd.f32 %v2215_v60, %v3014_v39  ;;  %v1065_v44 = vpop.f32.mrb[83].mxu1 }
 0x21b   :  { %v1066_v0 = vadd.f32 %v1065_v44, %v3014_v39  ;;  %2338 = vmatprep.mubr.f32.mxu0 %v1182_v33 }
 0x21c   :  { %2339 = vmatmul.mubr.f32.gmra.mrb[80].mxu0 %v1183_v56  ;;  %v1185_v55 = vmax.f32 %v1071_v63, 0.0 }
 0x21d   :  { %v1184_v2 = vmax.f32 %v1066_v0, 0.0  ;;  %v2218_v3 = vpop.f32.mrb[84].mxu1 }
 0x21e   :  { %v1081_v6 = vadd.f32 %v2218_v3, %v3014_v39  ;;  %v1075_v12 = vpop.f32.mrb[85].mxu1 }
 0x21f   :  { %v1076_v7 = vadd.f32 %v1075_v12, %v3014_v39  ;;  %2341 = vmatprep.mubr.f32.mxu0 %v1184_v2 }
 0x220   :  { %2342 = vmatmul.mubr.f32.gmra.mrb[82].mxu0 %v1185_v55  ;;  %v1187_v22 = vmax.f32 %v1081_v6, 0.0 }
 0x221   :  { %v1186_v1 = vmax.f32 %v1076_v7, 0.0  ;;  %v2221_v10 = vpop.f32.mrb[86].mxu1 }
 0x222   :  { %v1091_v13 = vadd.f32 %v2221_v10, %v3014_v39  ;;  %v1085_v11 = vpop.f32.mrb[87].mxu1 }
 0x223   :  { %v1086_v14 = vadd.f32 %v1085_v11, %v3014_v39  ;;  %2344 = vmatprep.mubr.f32.mxu0 %v1186_v1 }
 0x224   :  { %2345 = vmatmul.mubr.f32.gmra.mrb[84].mxu0 %v1187_v22  ;;  %v1189_v21 = vmax.f32 %v1091_v13, 0.0 }
 0x225   :  { %v1188_v35 = vmax.f32 %v1086_v14, 0.0  ;;  %v2224_v15 = vpop.f32.mrb[88].mxu1 }
 0x226   :  { %v1101_v16 = vadd.f32 %v2224_v15, %v3014_v39  ;;  %v1095_v43 = vpop.f32.mrb[89].mxu1 }
 0x227   :  { %v1096_v23 = vadd.f32 %v1095_v43, %v3014_v39  ;;  %2347 = vmatprep.mubr.f32.mxu0 %v1188_v35 }
 0x228   :  { %2348 = vmatmul.mubr.f32.gmra.mrb[86].mxu0 %v1189_v21  ;;  %v1191_v57 = vmax.f32 %v1101_v16, 0.0 }
 0x229   :  { %v1190_v32 = vmax.f32 %v1096_v23, 0.0  ;;  %v2227_v24 = vpop.f32.mrb[90].mxu1 }
 0x22a   :  { %v1111_v25 = vadd.f32 %v2227_v24, %v3014_v39  ;;  %v1105_v42 = vpop.f32.mrb[91].mxu1 }
 0x22b   :  { %v1106_v26 = vadd.f32 %v1105_v42, %v3014_v39  ;;  %2350 = vmatprep.mubr.f32.mxu0 %v1190_v32 }
 0x22c   :  { %2351 = vmatmul.mubr.f32.gmra.mrb[88].mxu0 %v1191_v57  ;;  %v1193_v54 = vmax.f32 %v1111_v25, 0.0 }
 0x22d   :  { %v1192_v5 = vmax.f32 %v1106_v26, 0.0  ;;  %v2230_v51 = vpop.f32.mrb[92].mxu1 }
 0x22e   :  { %v1121_v36 = vadd.f32 %v2230_v51, %v3014_v39  ;;  %v1115_v37 = vpop.f32.mrb[93].mxu1 }
 0x22f   :  { %v1116_v18 = vadd.f32 %v1115_v37, %v3014_v39  ;;  %2353 = vmatprep.mubr.f32.mxu0 %v1192_v5 }
 0x230   :  { %2354 = vmatmul.mubr.f32.gmra.mrb[90].mxu0 %v1193_v54  ;;  %v1195_v29 = vmax.f32 %v1121_v36, 0.0 }
 0x231   :  { %v1194_v4 = vmax.f32 %v1116_v18, 0.0  ;;  %v2233_v38 = vpop.f32.mrb[94].mxu1 }
 0x232   :  { %v1131_v62 = vadd.f32 %v2233_v38, %v3014_v39  ;;  %v1125_v17 = vpop.f32.mrb[95].mxu1 }
 0x233   :  { %v1126_v50 = vadd.f32 %v1125_v17, %v3014_v39  ;;  %2356 = vmatprep.mubr.f32.mxu0 %v1194_v4 }
 0x234   :  { %2357 = vmatmul.mubr.f32.gmra.mrb[92].mxu0 %v1195_v29  ;;  %v1197_v41 = vmax.f32 %v1131_v62, 0.0 }
 0x235   :  { %v1196_v40 = vmax.f32 %v1126_v50, 0.0 }
 0x237   :  { %2359 = vmatprep.mubr.f32.mxu0 %v1196_v40 }
 0x238   :  { %2360 = vmatmul.mubr.f32.gmra.mrb[94].mxu0 %v1197_v41 }
 0x28f   :  { %v2268_v9 = vpop.f32.mrb[32].mxu0 }
 0x290   :  { %v1291_v47 = vadd.f32 %v2268_v9, %v3084_v27  ;;  %v1285_v61 = vpop.f32.mrb[33].mxu0 }
 0x291   :  { %v1286_v39 = vadd.f32 %v1285_v61, %v3084_v27 }
 0x292   :  { %1605 = vst [vmem:[#allocation2 + $0x8] sm:$0xff] %v1291_v47 }
 0x293   :  { %1604 = vst [vmem:[#allocation2] sm:$0xff] %v1286_v39  ;;  %v2271_v30 = vpop.f32.mrb[34].mxu0 }
 0x294   :  { %v1301_v48 = vadd.f32 %v2271_v30, %v3084_v27  ;;  %v1295_v20 = vpop.f32.mrb[35].mxu0 }
 0x295   :  { %v1296_v28 = vadd.f32 %v1295_v20, %v3084_v27 }
 0x296   :  { %1607 = vst [vmem:[#allocation2 + $0x18] sm:$0xff] %v1301_v48 }
 0x297   :  { %1606 = vst [vmem:[#allocation2 + $0x10] sm:$0xff] %v1296_v28  ;;  %v2274_v49 = vpop.f32.mrb[36].mxu0 }
 0x298   :  { %v1311_v8 = vadd.f32 %v2274_v49, %v3084_v27  ;;  %v1305_v52 = vpop.f32.mrb[37].mxu0 }
 0x299   :  { %v1306_v34 = vadd.f32 %v1305_v52, %v3084_v27 }
 0x29a   :  { %1609 = vst [vmem:[#allocation2 + $0x28] sm:$0xff] %v1311_v8 }
 0x29b   :  { %1608 = vst [vmem:[#allocation2 + $0x20] sm:$0xff] %v1306_v34  ;;  %v2277_v53 = vpop.f32.mrb[38].mxu0 }
 0x29c   :  { %v1321_v19 = vadd.f32 %v2277_v53, %v3084_v27  ;;  %v1315_v58 = vpop.f32.mrb[39].mxu0 }
 0x29d   :  { %v1316_v45 = vadd.f32 %v1315_v58, %v3084_v27 }
 0x29e   :  { %1611 = vst [vmem:[#allocation2 + $0x38] sm:$0xff] %v1321_v19 }
 0x29f   :  { %1610 = vst [vmem:[#allocation2 + $0x30] sm:$0xff] %v1316_v45  ;;  %v2280_v59 = vpop.f32.mrb[40].mxu0 }
 0x2a0   :  { %v1331_v33 = vadd.f32 %v2280_v59, %v3084_v27  ;;  %v1325_v60 = vpop.f32.mrb[41].mxu0 }
 0x2a1   :  { %v1326_v56 = vadd.f32 %v1325_v60, %v3084_v27 }
 0x2a2   :  { %1613 = vst [vmem:[#allocation2 + $0x48] sm:$0xff] %v1331_v33 }
 0x2a3   :  { %1612 = vst [vmem:[#allocation2 + $0x40] sm:$0xff] %v1326_v56  ;;  %v2283_v63 = vpop.f32.mrb[42].mxu0 }
 0x2a4   :  { %v1341_v44 = vadd.f32 %v2283_v63, %v3084_v27  ;;  %v1335_v0 = vpop.f32.mrb[43].mxu0 }
 0x2a5   :  { %v1336_v2 = vadd.f32 %v1335_v0, %v3084_v27 }
 0x2a6   :  { %1615 = vst [vmem:[#allocation2 + $0x58] sm:$0xff] %v1341_v44 }
 0x2a7   :  { %1614 = vst [vmem:[#allocation2 + $0x50] sm:$0xff] %v1336_v2  ;;  %v2286_v3 = vpop.f32.mrb[44].mxu0 }
 0x2a8   :  { %v1351_v55 = vadd.f32 %v2286_v3, %v3084_v27  ;;  %v1345_v6 = vpop.f32.mrb[45].mxu0 }
 0x2a9   :  { %v1346_v12 = vadd.f32 %v1345_v6, %v3084_v27 }
 0x2aa   :  { %1617 = vst [vmem:[#allocation2 + $0x68] sm:$0xff] %v1351_v55 }
 0x2ab   :  { %1616 = vst [vmem:[#allocation2 + $0x60] sm:$0xff] %v1346_v12  ;;  %v2289_v7 = vpop.f32.mrb[46].mxu0 }
 0x2ac   :  { %v1361_v1 = vadd.f32 %v2289_v7, %v3084_v27  ;;  %v1355_v10 = vpop.f32.mrb[47].mxu0 }
 0x2ad   :  { %v1356_v22 = vadd.f32 %v1355_v10, %v3084_v27 }
 0x2ae   :  { %1619 = vst [vmem:[#allocation2 + $0x78] sm:$0xff] %v1361_v1 }
 0x2af   :  { %1618 = vst [vmem:[#allocation2 + $0x70] sm:$0xff] %v1356_v22  ;;  %v2292_v13 = vpop.f32.mrb[48].mxu0 }
 0x2b0   :  { %v1371_v11 = vadd.f32 %v2292_v13, %v3084_v27  ;;  %v1365_v14 = vpop.f32.mrb[49].mxu0 }
 0x2b1   :  { %v1366_v35 = vadd.f32 %v1365_v14, %v3084_v27 }
 0x2b2   :  { %1621 = vst [vmem:[#allocation2 + $0x88] sm:$0xff] %v1371_v11 }
 0x2b3   :  { %1620 = vst [vmem:[#allocation2 + $0x80] sm:$0xff] %v1366_v35  ;;  %v2295_v15 = vpop.f32.mrb[50].mxu0 }
 0x2b4   :  { %v1381_v21 = vadd.f32 %v2295_v15, %v3084_v27  ;;  %v1375_v16 = vpop.f32.mrb[51].mxu0 }
 0x2b5   :  { %v1376_v43 = vadd.f32 %v1375_v16, %v3084_v27 }
 0x2b6   :  { %1623 = vst [vmem:[#allocation2 + $0x98] sm:$0xff] %v1381_v21 }
 0x2b7   :  { %1622 = vst [vmem:[#allocation2 + $0x90] sm:$0xff] %v1376_v43  ;;  %v2298_v23 = vpop.f32.mrb[52].mxu0 }
 0x2b8   :  { %v1391_v32 = vadd.f32 %v2298_v23, %v3084_v27  ;;  %v1385_v24 = vpop.f32.mrb[53].mxu0 }
 0x2b9   :  { %v1386_v57 = vadd.f32 %v1385_v24, %v3084_v27 }
 0x2ba   :  { %1625 = vst [vmem:[#allocation2 + $0xa8] sm:$0xff] %v1391_v32 }
 0x2bb   :  { %1624 = vst [vmem:[#allocation2 + $0xa0] sm:$0xff] %v1386_v57  ;;  %v2301_v25 = vpop.f32.mrb[54].mxu0 }
 0x2bc   :  { %v1401_v42 = vadd.f32 %v2301_v25, %v3084_v27  ;;  %v1395_v26 = vpop.f32.mrb[55].mxu0 }
 0x2bd   :  { %v1396_v5 = vadd.f32 %v1395_v26, %v3084_v27 }
 0x2be   :  { %1627 = vst [vmem:[#allocation2 + $0xb8] sm:$0xff] %v1401_v42 }
 0x2bf   :  { %1626 = vst [vmem:[#allocation2 + $0xb0] sm:$0xff] %v1396_v5  ;;  %v2304_v51 = vpop.f32.mrb[56].mxu0 }
 0x2c0   :  { %v1411_v54 = vadd.f32 %v2304_v51, %v3084_v27  ;;  %v1405_v36 = vpop.f32.mrb[57].mxu0 }
 0x2c1   :  { %v1406_v37 = vadd.f32 %v1405_v36, %v3084_v27 }
 0x2c2   :  { %1629 = vst [vmem:[#allocation2 + $0xc8] sm:$0xff] %v1411_v54 }
 0x2c3   :  { %1628 = vst [vmem:[#allocation2 + $0xc0] sm:$0xff] %v1406_v37  ;;  %v2307_v18 = vpop.f32.mrb[58].mxu0 }
 0x2c4   :  { %v1421_v4 = vadd.f32 %v2307_v18, %v3084_v27  ;;  %v1415_v38 = vpop.f32.mrb[59].mxu0 }
 0x2c5   :  { %v1416_v29 = vadd.f32 %v1415_v38, %v3084_v27 }
 0x2c6   :  { %1631 = vst [vmem:[#allocation2 + $0xd8] sm:$0xff] %v1421_v4 }
 0x2c7   :  { %1630 = vst [vmem:[#allocation2 + $0xd0] sm:$0xff] %v1416_v29  ;;  %v2310_v62 = vpop.f32.mrb[60].mxu0 }
 0x2c8   :  { %v1431_v17 = vadd.f32 %v2310_v62, %v3084_v27  ;;  %v1425_v50 = vpop.f32.mrb[61].mxu0 }
 0x2c9   :  { %v1426_v40 = vadd.f32 %v1425_v50, %v3084_v27 }
 0x2ca   :  { %1633 = vst [vmem:[#allocation2 + $0xe8] sm:$0xff] %v1431_v17 }
 0x2cb   :  { %1632 = vst [vmem:[#allocation2 + $0xe0] sm:$0xff] %v1426_v40  ;;  %v2313_v41 = vpop.f32.mrb[62].mxu0 }
 0x2cc   :  { %v1441_v46 = vadd.f32 %v2313_v41, %v3084_v27  ;;  %v1435_v31 = vpop.f32.mrb[63].mxu0 }
 0x2cd   :  { %v1436_v9 = vadd.f32 %v1435_v31, %v3084_v27 }
 0x2ce   :  { %1635 = vst [vmem:[#allocation2 + $0xf8] sm:$0xff] %v1441_v46 }
 0x2cf   :  { %1634 = vst [vmem:[#allocation2 + $0xf0] sm:$0xff] %v1436_v9  ;;  %v2316_v47 = vpop.f32.mrb[64].mxu0 }
 0x2d0   :  { %v1451_v61 = vadd.f32 %v2316_v47, %v3084_v27  ;;  %v1445_v39 = vpop.f32.mrb[65].mxu0 }
 0x2d1   :  { %v1446_v30 = vadd.f32 %v1445_v39, %v3084_v27 }
 0x2d2   :  { %1637 = vst [vmem:[#allocation2 + $0x108] sm:$0xff] %v1451_v61 }
 0x2d3   :  { %1636 = vst [vmem:[#allocation2 + $0x100] sm:$0xff] %v1446_v30  ;;  %v2319_v48 = vpop.f32.mrb[66].mxu0 }
 0x2d4   :  { %v1461_v20 = vadd.f32 %v2319_v48, %v3084_v27  ;;  %v1455_v28 = vpop.f32.mrb[67].mxu0 }
 0x2d5   :  { %v1456_v49 = vadd.f32 %v1455_v28, %v3084_v27 }
 0x2d6   :  { %1639 = vst [vmem:[#allocation2 + $0x118] sm:$0xff] %v1461_v20 }
 0x2d7   :  { %1638 = vst [vmem:[#allocation2 + $0x110] sm:$0xff] %v1456_v49  ;;  %v2322_v8 = vpop.f32.mrb[68].mxu0 }
 0x2d8   :  { %v1471_v52 = vadd.f32 %v2322_v8, %v3084_v27  ;;  %v1465_v34 = vpop.f32.mrb[69].mxu0 }
 0x2d9   :  { %v1466_v53 = vadd.f32 %v1465_v34, %v3084_v27 }
 0x2da   :  { %1641 = vst [vmem:[#allocation2 + $0x128] sm:$0xff] %v1471_v52 }
 0x2db   :  { %1640 = vst [vmem:[#allocation2 + $0x120] sm:$0xff] %v1466_v53  ;;  %v2325_v19 = vpop.f32.mrb[70].mxu0 }
 0x2dc   :  { %v1481_v58 = vadd.f32 %v2325_v19, %v3084_v27  ;;  %v1475_v45 = vpop.f32.mrb[71].mxu0 }
 0x2dd   :  { %v1476_v59 = vadd.f32 %v1475_v45, %v3084_v27 }
 0x2de   :  { %1643 = vst [vmem:[#allocation2 + $0x138] sm:$0xff] %v1481_v58 }
 0x2df   :  { %1642 = vst [vmem:[#allocation2 + $0x130] sm:$0xff] %v1476_v59  ;;  %v2328_v33 = vpop.f32.mrb[72].mxu0 }
 0x2e0   :  { %v1491_v60 = vadd.f32 %v2328_v33, %v3084_v27  ;;  %v1485_v56 = vpop.f32.mrb[73].mxu0 }
 0x2e1   :  { %v1486_v63 = vadd.f32 %v1485_v56, %v3084_v27 }
 0x2e2   :  { %1645 = vst [vmem:[#allocation2 + $0x148] sm:$0xff] %v1491_v60 }
 0x2e3   :  { %1644 = vst [vmem:[#allocation2 + $0x140] sm:$0xff] %v1486_v63  ;;  %v2331_v44 = vpop.f32.mrb[74].mxu0 }
 0x2e4   :  { %v1501_v0 = vadd.f32 %v2331_v44, %v3084_v27  ;;  %v1495_v2 = vpop.f32.mrb[75].mxu0 }
 0x2e5   :  { %v1496_v3 = vadd.f32 %v1495_v2, %v3084_v27 }
 0x2e6   :  { %1647 = vst [vmem:[#allocation2 + $0x158] sm:$0xff] %v1501_v0 }
 0x2e7   :  { %1646 = vst [vmem:[#allocation2 + $0x150] sm:$0xff] %v1496_v3  ;;  %v2334_v55 = vpop.f32.mrb[76].mxu0 }
 0x2e8   :  { %v1511_v6 = vadd.f32 %v2334_v55, %v3084_v27  ;;  %v1505_v12 = vpop.f32.mrb[77].mxu0 }
 0x2e9   :  { %v1506_v7 = vadd.f32 %v1505_v12, %v3084_v27 }
 0x2ea   :  { %1649 = vst [vmem:[#allocation2 + $0x168] sm:$0xff] %v1511_v6 }
 0x2eb   :  { %1648 = vst [vmem:[#allocation2 + $0x160] sm:$0xff] %v1506_v7  ;;  %v2337_v1 = vpop.f32.mrb[78].mxu0 }
 0x2ec   :  { %v1521_v10 = vadd.f32 %v2337_v1, %v3084_v27  ;;  %v1515_v22 = vpop.f32.mrb[79].mxu0 }
 0x2ed   :  { %v1516_v13 = vadd.f32 %v1515_v22, %v3084_v27 }
 0x2ee   :  { %1651 = vst [vmem:[#allocation2 + $0x178] sm:$0xff] %v1521_v10 }
 0x2ef   :  { %1650 = vst [vmem:[#allocation2 + $0x170] sm:$0xff] %v1516_v13  ;;  %v2340_v11 = vpop.f32.mrb[80].mxu0 }
 0x2f0   :  { %v1531_v14 = vadd.f32 %v2340_v11, %v3084_v27  ;;  %v1525_v35 = vpop.f32.mrb[81].mxu0 }
 0x2f1   :  { %v1526_v15 = vadd.f32 %v1525_v35, %v3084_v27 }
 0x2f2   :  { %1653 = vst [vmem:[#allocation2 + $0x188] sm:$0xff] %v1531_v14 }
 0x2f3   :  { %1652 = vst [vmem:[#allocation2 + $0x180] sm:$0xff] %v1526_v15  ;;  %v2343_v21 = vpop.f32.mrb[82].mxu0 }
 0x2f4   :  { %v1541_v16 = vadd.f32 %v2343_v21, %v3084_v27  ;;  %v1535_v43 = vpop.f32.mrb[83].mxu0 }
 0x2f5   :  { %v1536_v23 = vadd.f32 %v1535_v43, %v3084_v27 }
 0x2f6   :  { %1655 = vst [vmem:[#allocation2 + $0x198] sm:$0xff] %v1541_v16 }
 0x2f7   :  { %1654 = vst [vmem:[#allocation2 + $0x190] sm:$0xff] %v1536_v23  ;;  %v2346_v32 = vpop.f32.mrb[84].mxu0 }
 0x2f8   :  { %v1551_v24 = vadd.f32 %v2346_v32, %v3084_v27  ;;  %v1545_v57 = vpop.f32.mrb[85].mxu0 }
 0x2f9   :  { %v1546_v25 = vadd.f32 %v1545_v57, %v3084_v27 }
 0x2fa   :  { %1657 = vst [vmem:[#allocation2 + $0x1a8] sm:$0xff] %v1551_v24 }
 0x2fb   :  { %1656 = vst [vmem:[#allocation2 + $0x1a0] sm:$0xff] %v1546_v25  ;;  %v2349_v42 = vpop.f32.mrb[86].mxu0 }
 0x2fc   :  { %v1561_v26 = vadd.f32 %v2349_v42, %v3084_v27  ;;  %v1555_v5 = vpop.f32.mrb[87].mxu0 }
 0x2fd   :  { %v1556_v51 = vadd.f32 %v1555_v5, %v3084_v27 }
 0x2fe   :  { %1659 = vst [vmem:[#allocation2 + $0x1b8] sm:$0xff] %v1561_v26 }
 0x2ff   :  { %1658 = vst [vmem:[#allocation2 + $0x1b0] sm:$0xff] %v1556_v51  ;;  %v2352_v54 = vpop.f32.mrb[88].mxu0 }
 0x300   :  { %v1571_v36 = vadd.f32 %v2352_v54, %v3084_v27  ;;  %v1565_v37 = vpop.f32.mrb[89].mxu0 }
 0x301   :  { %v1566_v18 = vadd.f32 %v1565_v37, %v3084_v27 }
 0x302   :  { %1661 = vst [vmem:[#allocation2 + $0x1c8] sm:$0xff] %v1571_v36 }
 0x303   :  { %1660 = vst [vmem:[#allocation2 + $0x1c0] sm:$0xff] %v1566_v18  ;;  %v2355_v4 = vpop.f32.mrb[90].mxu0 }
 0x304   :  { %v1581_v38 = vadd.f32 %v2355_v4, %v3084_v27  ;;  %v1575_v29 = vpop.f32.mrb[91].mxu0 }
 0x305   :  { %v1576_v62 = vadd.f32 %v1575_v29, %v3084_v27 }
 0x306   :  { %1663 = vst [vmem:[#allocation2 + $0x1d8] sm:$0xff] %v1581_v38 }
 0x307   :  { %1662 = vst [vmem:[#allocation2 + $0x1d0] sm:$0xff] %v1576_v62  ;;  %v2358_v17 = vpop.f32.mrb[92].mxu0 }
 0x308   :  { %v1591_v50 = vadd.f32 %v2358_v17, %v3084_v27  ;;  %v1585_v40 = vpop.f32.mrb[93].mxu0 }
 0x309   :  { %v1586_v41 = vadd.f32 %v1585_v40, %v3084_v27 }
 0x30a   :  { %1665 = vst [vmem:[#allocation2 + $0x1e8] sm:$0xff] %v1591_v50 }
 0x30b   :  { %1664 = vst [vmem:[#allocation2 + $0x1e0] sm:$0xff] %v1586_v41  ;;  %v2361_v46 = vpop.f32.mrb[94].mxu0 }
 0x30c   :  { %v1601_v31 = vadd.f32 %v2361_v46, %v3084_v27  ;;  %v1595_v9 = vpop.f32.mrb[95].mxu0 }
 0x30d   :  { %v1596_v47 = vadd.f32 %v1595_v9, %v3084_v27 }
 0x30e   :  { %1667 = vst [vmem:[#allocation2 + $0x1f8] sm:$0xff] %v1601_v31 }
 0x30f   :  { %1666 = vst [vmem:[#allocation2 + $0x1f0] sm:$0xff] %v1596_v47 }
 0x310   :  { %2447 = shalt.err (!%p2444_p4)
}
 0x311   :  { %s2448_s24 = scalar_lea.hbm %s3165_s3, 8192 }
 0x312   :  { %p2449_p5 = scmp.ne.s32.totalorder %s3165_s3, %s2448_s24  ;;  %p2452_p6 = scmp.lt.u32.totalorder %s2448_s24, %s3165_s3 }
 0x314   :  { %p2454_p7 = pnand %p2452_p6, %p2449_p5 }
 0x316   :  { %2457 = shalt.err (!%p2454_p7)
}
 0x317   :  { %s2461_s29 = smov 128   ;;  %s2462_s30 = smov 8  }
 0x318   :  { %1679 = dma.vmem_to_hbm [thread:$0]  %s1674_s20, 8192, %s3165_s3, [#allocation3], %s2461_s29, %s2461_s29, %s2462_s30  }
 0x319   :  { %2458 = dma.done.wait [#allocation3], 8192  }
 0x31a   :  { %2459 = vsyncadd [#allocation3], 4294959104 }
 0x31b   :  { %1683 = vsyncpa [#allocation3], 1 }

</bundles_post_ra>
